<compile_context>
chip_gen: v6e
topology: v6e:2x2x1
jax: 0.10.0
libtpu: 0.0.40
codegen_flags: <defaults>
</compile_context>

<pallas_src>
import jax
import jax.numpy as jnp
from jax import lax
from jax.experimental import pallas as pl
from jax.experimental.pallas import tpu as pltpu


def scale_pred_kernel(x_ref, w1_ref, shift_ref, w2t_ref, b2_ref, o_ref):
    # x_ref:     (NB, H+2, W+2, Cin)  bf16 padded NHWC tile (NB batch elems)
    # w1_ref:    (9*Cin, Cmid)        bf16 3x3 weights, BN scale pre-folded,
    #                                 K row order = (dy, dx, cin)
    # shift_ref: (1, Cmid)            f32 folded BN shift
    # w2t_ref:   (C2, Cmid)           bf16 1x1 conv weights (output-major)
    # b2_ref:    (C2, 1)              f32 1x1 conv bias
    # o_ref:     (NB, C2, H*W)        f32 lane-dense output slab
    NB = x_ref.shape[0]
    Hp = x_ref.shape[1]
    Wp = x_ref.shape[2]
    Cin = x_ref.shape[3]
    H, W = Hp - 2, Wp - 2
    HW = H * W

    x = x_ref[...]  # (NB, H+2, W+2, Cin) bf16

    # im2col: concatenate the 9 shifted taps along K so the whole 3x3 conv is
    # a single MXU contraction with K = 9*Cin (instead of 9 tiny K=Cin dots).
    taps = [
        x[:, dy:dy + H, dx:dx + W, :].reshape(NB * HW, Cin)
        for dy in range(3) for dx in range(3)
    ]
    patches = jnp.concatenate(taps, axis=1)             # (NB*HW, 9*Cin) bf16

    # 3x3 conv (pad=1, no bias) with BN scale folded into the weights:
    # one bf16 matmul, f32 accumulation.
    y = jnp.dot(patches, w1_ref[...],
                preferred_element_type=jnp.float32)     # (NB*HW, Cmid) f32

    # Remaining eval-mode BN shift + LeakyReLU(0.1), f32 epilogue.
    y = y + shift_ref[...]
    y = jnp.where(y > 0, y, 0.1 * y)

    # 1x1 conv with bias, computed transposed: (C2, Cmid) x (NB*HW, Cmid)^T so
    # the result is (C2, NB*HW) — last dim is a multiple of 128 lanes.
    out_t = lax.dot_general(
        w2t_ref[...], y.astype(jnp.bfloat16),
        dimension_numbers=(((1,), (1,)), ((), ())),
        preferred_element_type=jnp.float32)             # (C2, NB*HW) f32
    out_t = out_t + b2_ref[...]

    # Per-batch stores; slice offsets are multiples of HW (= 2*128 lanes) so
    # every store is an unmasked, lane-dense vst.
    for n in range(NB):  # static unroll, NB is small
        o_ref[n] = out_t[:, n * HW:(n + 1) * HW]


def scale_prediction(x_nchw, params, num_classes, *, max_batch_block=8):
    """x_nchw: (N, Cin, H, W) float32. Returns (N, 3, H, W, num_classes + 5)."""
    w1, bn_scale, bn_shift, w2t, b2 = params
    N, Cin, H, W = x_nchw.shape
    Cmid = w1.shape[1]
    C2 = w2t.shape[0]
    assert C2 == 3 * (num_classes + 5)
    assert w1.shape[0] == 9 * Cin

    # Batch block: largest divisor of N not exceeding max_batch_block.
    nb = 1
    for d in range(min(N, max_batch_block), 0, -1):
        if N % d == 0:
            nb = d
            break

    # NCHW -> NHWC, bf16 cast, and 1-pixel zero halo for the pad=1 3x3 conv.
    # XLA fuses transpose + convert + pad into a single producer pass.
    x_nhwc = jnp.transpose(x_nchw, (0, 2, 3, 1)).astype(jnp.bfloat16)
    x_pad = jnp.pad(x_nhwc, ((0, 0), (1, 1), (1, 1), (0, 0)))
    Hp, Wp = H + 2, W + 2

    # Fold eval-mode BN scale into the 3x3 conv weights (constant prep on a
    # tiny (9*Cin, Cmid) matrix); the additive shift stays as a kernel bias.
    w1_bf = (w1 * bn_scale[None, :]).astype(jnp.bfloat16)
    w2t_bf = w2t.astype(jnp.bfloat16)
    shift2 = bn_shift.reshape(1, Cmid).astype(jnp.float32)
    b2_2 = b2.reshape(C2, 1).astype(jnp.float32)

    # Grid-invariant operands are single-buffered: no point double-buffering
    # weights whose block index never changes over the grid.
    weight_mode = pl.Buffered(1)

    grid_spec = pltpu.PrefetchScalarGridSpec(
        num_scalar_prefetch=0,
        grid=(N // nb,),
        in_specs=[
            pl.BlockSpec((nb, Hp, Wp, Cin), lambda i: (i, 0, 0, 0)),
            pl.BlockSpec((9 * Cin, Cmid), lambda i: (0, 0),
                         pipeline_mode=weight_mode),
            pl.BlockSpec((1, Cmid), lambda i: (0, 0),
                         pipeline_mode=weight_mode),
            pl.BlockSpec((C2, Cmid), lambda i: (0, 0),
                         pipeline_mode=weight_mode),
            pl.BlockSpec((C2, 1), lambda i: (0, 0),
                         pipeline_mode=weight_mode),
        ],
        out_specs=pl.BlockSpec((nb, C2, H * W), lambda i: (i, 0, 0)),
    )

    out_t = pl.pallas_call(
        scale_pred_kernel,
        out_shape=jax.ShapeDtypeStruct((N, C2, H * W), jnp.float32),
        grid_spec=grid_spec,
        compiler_params=pltpu.CompilerParams(
            dimension_semantics=("parallel",),
            # Explicit scoped-VMEM budget, safe on v5e/v6e/v7x (usage << 1 MiB).
            vmem_limit_bytes=32 * 1024 * 1024,
        ),
    )(x_pad, w1_bf, shift2, w2t_bf, b2_2)

    # out_t is the 1x1-conv output in flattened-NCHW layout (N, C2, H*W).
    # Finish exactly like the PyTorch module:
    #   (N, C2, H, W) -> reshape (N, 3, nc+5, H, W) -> permute (0,1,3,4,2).
    out = out_t.reshape(N, 3, num_classes + 5, H, W)
    return jnp.transpose(out, (0, 1, 3, 4, 2))


def make_params(key, in_channels, num_classes):
    Cin = in_channels
    Cmid = 2 * in_channels
    C2 = 3 * (num_classes + 5)
    ks = jax.random.split(key, 7)
    # PyTorch conv weight layout (Cout, Cin, KH, KW); converted for the kernel.
    w1_torch = jax.random.normal(ks[0], (Cmid, Cin, 3, 3), jnp.float32) * 0.1
    gamma = jax.random.normal(ks[1], (Cmid,), jnp.float32) * 0.1 + 1.0
    beta = jax.random.normal(ks[2], (Cmid,), jnp.float32) * 0.1
    running_mean = jax.random.normal(ks[3], (Cmid,), jnp.float32) * 0.1
    running_var = jax.random.uniform(ks[4], (Cmid,), jnp.float32, 0.5, 1.5)
    w2_torch = jax.random.normal(ks[5], (C2, Cmid, 1, 1), jnp.float32) * 0.1
    b2 = jax.random.normal(ks[6], (C2,), jnp.float32) * 0.1

    eps = 1e-5
    bn_scale = gamma / jnp.sqrt(running_var + eps)
    bn_shift = beta - running_mean * bn_scale

    # (Cout, Cin, 3, 3) -> (KH, KW, Cin, Cout) -> (9*Cin, Cmid); the K row
    # order (dy, dx, cin) matches the tap-concatenation order in the kernel.
    w1_k = jnp.transpose(w1_torch, (2, 3, 1, 0)).reshape(9 * Cin, Cmid)
    # (C2, Cmid, 1, 1) -> (C2, Cmid): the "output-major" form used by the
    # transposed 1x1 conv in the kernel.
    w2t_k = w2_torch[:, :, 0, 0]

    kernel_params = (w1_k, bn_scale, bn_shift, w2t_k, b2)
    torch_like_params = (w1_torch, bn_scale, bn_shift, w2_torch, b2)
    return kernel_params, torch_like_params


def reference_forward(x_nchw, torch_like_params, num_classes):
    """Pure-JAX f32 reference mirroring the PyTorch module (eval-mode BN)."""
    w1_t, bn_scale, bn_shift, w2_t, b2 = torch_like_params
    N, Cin, H, W = x_nchw.shape
    y = lax.conv_general_dilated(
        x_nchw, w1_t, window_strides=(1, 1), padding=((1, 1), (1, 1)),
        dimension_numbers=("NCHW", "OIHW", "NCHW"))
    y = y * bn_scale[None, :, None, None] + bn_shift[None, :, None, None]
    y = jnp.where(y > 0, y, 0.1 * y)
    y = lax.conv_general_dilated(
        y, w2_t, window_strides=(1, 1), padding=((0, 0), (0, 0)),
        dimension_numbers=("NCHW", "OIHW", "NCHW"))
    y = y + b2[None, :, None, None]
    y = y.reshape(N, 3, num_classes + 5, H, W)
    return jnp.transpose(y, (0, 1, 3, 4, 2))


if __name__ == "__main__":
    key = jax.random.PRNGKey(0)
    k_x, k_p = jax.random.split(key)

    batch, in_channels, H, W = 2, 8, 16, 16
    num_classes = 3

    x = jax.random.normal(k_x, (batch, in_channels, H, W), jnp.float32)
    kernel_params, torch_like_params = make_params(k_p, in_channels, num_classes)

    out = scale_prediction(x, kernel_params, num_classes)
    out = jax.block_until_ready(out)

    ref = reference_forward(x, torch_like_params, num_classes)
    assert out.shape == (batch, 3, H, W, num_classes + 5), out.shape
    # bf16 activations/weights with f32 accumulation -> bf16-appropriate tol.
    max_err = float(jnp.max(jnp.abs(out - ref)))
    assert jnp.allclose(out, ref, rtol=3e-2, atol=3e-2), max_err

    print("KERNEL_OK")
</pallas_src>

<mosaic_0001>
module attributes {stable_mosaic.version = 11 : i64} {
  func.func @scale_pred_kernel(%arg0: i32, %arg1: memref<2x18x18x8xbf16, #tpu.memory_space<vmem>>, %arg2: memref<72x16xbf16, #tpu.memory_space<vmem>>, %arg3: memref<1x16xf32, #tpu.memory_space<vmem>>, %arg4: memref<24x16xbf16, #tpu.memory_space<vmem>>, %arg5: memref<24x1xf32, #tpu.memory_space<vmem>>, %arg6: memref<2x24x256xf32, #tpu.memory_space<vmem>>) attributes {dimension_semantics = [#tpu.dimension_semantics<parallel>], iteration_bounds = array<i64: 1>, scalar_prefetch = 0 : i64, scratch_operands = 0 : i64, tpu.core_type = #tpu.core_type<tc>, window_params = [{transform_indices = @transform_0, window_bounds = array<i64: 2, 18, 18, 8>}, {pipeline_mode = #tpu.pipeline_mode<synchronous>, transform_indices = @transform_1, window_bounds = array<i64: 72, 16>}, {pipeline_mode = #tpu.pipeline_mode<synchronous>, transform_indices = @transform_2, window_bounds = array<i64: 1, 16>}, {pipeline_mode = #tpu.pipeline_mode<synchronous>, transform_indices = @transform_3, window_bounds = array<i64: 24, 16>}, {pipeline_mode = #tpu.pipeline_mode<synchronous>, transform_indices = @transform_4, window_bounds = array<i64: 24, 1>}, {transform_indices = @transform_5, window_bounds = array<i64: 2, 24, 256>}]} {
    %c0 = arith.constant 0 : index
    %c0_0 = arith.constant 0 : index
    %c0_1 = arith.constant 0 : index
    %c0_2 = arith.constant 0 : index
    %0 = vector.load %arg1[%c0, %c0_0, %c0_1, %c0_2] : memref<2x18x18x8xbf16, #tpu.memory_space<vmem>>, vector<2x18x18x8xbf16>
    %1 = vector.extract_strided_slice %0 {offsets = [0, 0, 0, 0], sizes = [2, 16, 16, 8], strides = [1, 1, 1, 1]} : vector<2x18x18x8xbf16> to vector<2x16x16x8xbf16>
    %2 = vector.shape_cast %1 : vector<2x16x16x8xbf16> to vector<512x8xbf16>
    %3 = vector.extract_strided_slice %0 {offsets = [0, 0, 1, 0], sizes = [2, 16, 16, 8], strides = [1, 1, 1, 1]} : vector<2x18x18x8xbf16> to vector<2x16x16x8xbf16>
    %4 = vector.shape_cast %3 : vector<2x16x16x8xbf16> to vector<512x8xbf16>
    %5 = vector.extract_strided_slice %0 {offsets = [0, 0, 2, 0], sizes = [2, 16, 16, 8], strides = [1, 1, 1, 1]} : vector<2x18x18x8xbf16> to vector<2x16x16x8xbf16>
    %6 = vector.shape_cast %5 : vector<2x16x16x8xbf16> to vector<512x8xbf16>
    %7 = vector.extract_strided_slice %0 {offsets = [0, 1, 0, 0], sizes = [2, 16, 16, 8], strides = [1, 1, 1, 1]} : vector<2x18x18x8xbf16> to vector<2x16x16x8xbf16>
    %8 = vector.shape_cast %7 : vector<2x16x16x8xbf16> to vector<512x8xbf16>
    %9 = vector.extract_strided_slice %0 {offsets = [0, 1, 1, 0], sizes = [2, 16, 16, 8], strides = [1, 1, 1, 1]} : vector<2x18x18x8xbf16> to vector<2x16x16x8xbf16>
    %10 = vector.shape_cast %9 : vector<2x16x16x8xbf16> to vector<512x8xbf16>
    %11 = vector.extract_strided_slice %0 {offsets = [0, 1, 2, 0], sizes = [2, 16, 16, 8], strides = [1, 1, 1, 1]} : vector<2x18x18x8xbf16> to vector<2x16x16x8xbf16>
    %12 = vector.shape_cast %11 : vector<2x16x16x8xbf16> to vector<512x8xbf16>
    %13 = vector.extract_strided_slice %0 {offsets = [0, 2, 0, 0], sizes = [2, 16, 16, 8], strides = [1, 1, 1, 1]} : vector<2x18x18x8xbf16> to vector<2x16x16x8xbf16>
    %14 = vector.shape_cast %13 : vector<2x16x16x8xbf16> to vector<512x8xbf16>
    %15 = vector.extract_strided_slice %0 {offsets = [0, 2, 1, 0], sizes = [2, 16, 16, 8], strides = [1, 1, 1, 1]} : vector<2x18x18x8xbf16> to vector<2x16x16x8xbf16>
    %16 = vector.shape_cast %15 : vector<2x16x16x8xbf16> to vector<512x8xbf16>
    %17 = vector.extract_strided_slice %0 {offsets = [0, 2, 2, 0], sizes = [2, 16, 16, 8], strides = [1, 1, 1, 1]} : vector<2x18x18x8xbf16> to vector<2x16x16x8xbf16>
    %18 = vector.shape_cast %17 : vector<2x16x16x8xbf16> to vector<512x8xbf16>
    %19 = tpu.concatenate %2, %4, %6, %8, %10, %12, %14, %16, %18 in 1 : vector<512x8xbf16>, vector<512x8xbf16>, vector<512x8xbf16>, vector<512x8xbf16>, vector<512x8xbf16>, vector<512x8xbf16>, vector<512x8xbf16>, vector<512x8xbf16>, vector<512x8xbf16> -> vector<512x72xbf16>
    %c0_3 = arith.constant 0 : index
    %c0_4 = arith.constant 0 : index
    %20 = vector.load %arg2[%c0_3, %c0_4] : memref<72x16xbf16, #tpu.memory_space<vmem>>, vector<72x16xbf16>
    %cst = arith.constant dense<0.000000e+00> : vector<512x16xf32>
    %21 = tpu.matmul %19, %20, %cst {dimension_numbers = #tpu.dot_dimension_numbers<[1], [0], [0], [1], [0, 0, 1, 1], [], []>} : vector<512x72xbf16>, vector<72x16xbf16>, vector<512x16xf32> -> vector<512x16xf32>
    %c0_5 = arith.constant 0 : index
    %c0_6 = arith.constant 0 : index
    %22 = vector.load %arg3[%c0_5, %c0_6] : memref<1x16xf32, #tpu.memory_space<vmem>>, vector<1x16xf32>
    %23 = vector.broadcast %22 : vector<1x16xf32> to vector<512x16xf32>
    %24 = arith.addf %21, %23 : vector<512x16xf32>
    %cst_7 = arith.constant 0.000000e+00 : f32
    %25 = vector.broadcast %cst_7 : f32 to vector<512x16xf32>
    %26 = arith.cmpf ogt, %24, %25 : vector<512x16xf32>
    %cst_8 = arith.constant 1.000000e-01 : f32
    %27 = vector.broadcast %cst_8 : f32 to vector<512x16xf32>
    %28 = arith.mulf %27, %24 : vector<512x16xf32>
    %29 = arith.select %26, %24, %28 : vector<512x16xi1>, vector<512x16xf32>
    %c0_9 = arith.constant 0 : index
    %c0_10 = arith.constant 0 : index
    %30 = vector.load %arg4[%c0_9, %c0_10] : memref<24x16xbf16, #tpu.memory_space<vmem>>, vector<24x16xbf16>
    %31 = arith.truncf %29 : vector<512x16xf32> to vector<512x16xbf16>
    %cst_11 = arith.constant dense<0.000000e+00> : vector<24x512xf32>
    %32 = tpu.matmul %30, %31, %cst_11 {dimension_numbers = #tpu.dot_dimension_numbers<[1], [1], [0], [0], [0, 0, 1, 0], [], []>} : vector<24x16xbf16>, vector<512x16xbf16>, vector<24x512xf32> -> vector<24x512xf32>
    %c0_12 = arith.constant 0 : index
    %c0_13 = arith.constant 0 : index
    %33 = vector.load %arg5[%c0_12, %c0_13] : memref<24x1xf32, #tpu.memory_space<vmem>>, vector<24x1xf32>
    %34 = vector.broadcast %33 : vector<24x1xf32> to vector<24x512xf32>
    %35 = arith.addf %32, %34 : vector<24x512xf32>
    %36 = vector.extract_strided_slice %35 {offsets = [0, 0], sizes = [24, 256], strides = [1, 1]} : vector<24x512xf32> to vector<24x256xf32>
    %c0_14 = arith.constant 0 : index
    %c0_15 = arith.constant 0 : index
    %c0_16 = arith.constant 0 : index
    %37 = vector.load %arg6[%c0_14, %c0_15, %c0_16] : memref<2x24x256xf32, #tpu.memory_space<vmem>>, vector<1x24x256xf32>
    %38 = vector.shape_cast %37 : vector<1x24x256xf32> to vector<24x256xf32>
    %39 = vector.shape_cast %36 : vector<24x256xf32> to vector<1x24x256xf32>
    tpu.vector_store %arg6[%c0_14, %c0_15, %c0_16], %39 {strides = array<i32>} : memref<2x24x256xf32, #tpu.memory_space<vmem>>, vector<1x24x256xf32>,
    %40 = vector.extract_strided_slice %35 {offsets = [0, 256], sizes = [24, 256], strides = [1, 1]} : vector<24x512xf32> to vector<24x256xf32>
    %c1 = arith.constant 1 : index
    %c0_17 = arith.constant 0 : index
    %c0_18 = arith.constant 0 : index
    %41 = vector.load %arg6[%c1, %c0_17, %c0_18] : memref<2x24x256xf32, #tpu.memory_space<vmem>>, vector<1x24x256xf32>
    %42 = vector.shape_cast %41 : vector<1x24x256xf32> to vector<24x256xf32>
    %43 = vector.shape_cast %40 : vector<24x256xf32> to vector<1x24x256xf32>
    tpu.vector_store %arg6[%c1, %c0_17, %c0_18], %43 {strides = array<i32>} : memref<2x24x256xf32, #tpu.memory_space<vmem>>, vector<1x24x256xf32>,
    return
  }
  func.func @transform_0(%arg0: i32) -> (i32, i32, i32, i32) {
    %c0_i32 = arith.constant 0 : i32
    %c0_i32_0 = arith.constant 0 : i32
    %c0_i32_1 = arith.constant 0 : i32
    %c0_i32_2 = arith.constant 0 : i32
    return %arg0, %c0_i32, %c0_i32_0, %c0_i32_1 : i32, i32, i32, i32
  }
  func.func @transform_1(%arg0: i32) -> (i32, i32) {
    %c0_i32 = arith.constant 0 : i32
    %c0_i32_0 = arith.constant 0 : i32
    %c0_i32_1 = arith.constant 0 : i32
    return %c0_i32, %c0_i32_0 : i32, i32
  }
  func.func @transform_2(%arg0: i32) -> (i32, i32) {
    %c0_i32 = arith.constant 0 : i32
    %c0_i32_0 = arith.constant 0 : i32
    %c0_i32_1 = arith.constant 0 : i32
    return %c0_i32, %c0_i32_0 : i32, i32
  }
  func.func @transform_3(%arg0: i32) -> (i32, i32) {
    %c0_i32 = arith.constant 0 : i32
    %c0_i32_0 = arith.constant 0 : i32
    %c0_i32_1 = arith.constant 0 : i32
    return %c0_i32, %c0_i32_0 : i32, i32
  }
  func.func @transform_4(%arg0: i32) -> (i32, i32) {
    %c0_i32 = arith.constant 0 : i32
    %c0_i32_0 = arith.constant 0 : i32
    %c0_i32_1 = arith.constant 0 : i32
    return %c0_i32, %c0_i32_0 : i32, i32
  }
  func.func @transform_5(%arg0: i32) -> (i32, i32, i32) {
    %c0_i32 = arith.constant 0 : i32
    %c0_i32_0 = arith.constant 0 : i32
    %c0_i32_1 = arith.constant 0 : i32
    return %arg0, %c0_i32, %c0_i32_0 : i32, i32, i32
  }
}

</mosaic_0001>

<bundles_post_ra>
// kernel: tpu_custom_call.1
= control target key start
LH: loop header
LB: loop body
LE: loop exit
PB: predicated region body
PF: predicated region fallthrough
CT: control target
= control target key end

     0   :  { %vm997_vm0 = vcmask 1042432   ;;  %s4072_s28 = smov 24   ;;  %vm998_vm1 = vcmask 1046532   ;;  %vm130_vm3 = vsmask.f32 3328  ;;  %s4073_s12 = smov 16   ;;  %s6806_s0 = inlined_call_operand.vmem [shape: bf16[2,18,18,8], index: 0, kind: input, shape index: {}]   ;;  %s6807_s1 = inlined_call_operand.vmem [shape: bf16[72,16], index: 1, kind: input, shape index: {}]   ;;  %s6808_s2 = inlined_call_operand.vmem [shape: f32[1,16], index: 2, kind: input, shape index: {}]   ;;  %s6809_s3 = inlined_call_operand.vmem [shape: bf16[24,16], index: 3, kind: input, shape index: {}]   ;;  %s6810_s4 = inlined_call_operand.vmem [shape: f32[24,1], index: 4, kind: input, shape index: {}]   ;;  %s6811_s5 = inlined_call_operand.hbm [shape: f32[2,24,256], index: 5, kind: output, shape index: {}]  }
   0x1   :  { %v4116_v0 = vld [vmem:[%s6806_s0 + $0x18] sm:$0xf]  ;;  %v4121_v1 = vld [vmem:[%s6806_s0 + $0x1c] sm:$0xf]  ;;  %v25_v6 = vld [vmem:[%s6806_s0 + $0xc] sm:$0xf] }
   0x2   :  { %v195_v2 = vshrl.u32 %v4121_v1, 16  ;;  %v4126_v3 = vcombine.low %v4116_v0, %v4121_v1  ;;  %v182_v4 = vshrl.u32 %v4116_v0, 16  ;;  %v185_v5 = vshll.u32 %v4116_v0, 16  ;;  %v26_v7 = vld [vmem:[%s6806_s0 + $0x10] sm:$0xf]  ;;  %vm4160_vm2 = vmor %vm997_vm0, %vm998_vm1  ;;  %s4074_s17 = smov 8  }
   0x3   :  { %v158_v8 = vshrl.u32 %v25_v6, 16  ;;  %v161_v9 = vshll.u32 %v25_v6, 16  ;;  %v4139_v10 = vld [vmem:[%s6806_s0] sm:$0xf]  ;;  %v167_v11 = vshll.u32 %v26_v7, 16  ;;  %v171_v12 = vshrl.u32 %v26_v7, 16 }
   0x4   :  { %1784 = vrot.lane.b32.xlu1 %v4126_v3, %s4072_s28  ;;  %v4143_v13 = vcombine.low %v25_v6, %v26_v7  ;;  %v4148_v14 = vld [vmem:[%s6806_s0 + $0x4] sm:$0xf]  ;;  %v24_v15 = vld [vmem:[%s6806_s0 + $0x8] sm:$0x1]  ;;  %v3635_v18 = vrot.slane %v4139_v10, 9  ;;  %v3636_v24 = vrot.slane %v25_v6, 9 }
   0x5   :  { %v160_v16 = vrot.slane %v158_v8, 4  ;;  %v163_v17 = vrot.slane %v161_v9, 5  ;;  %v27_v19 = vld [vmem:[%s6806_s0 + $0x14] sm:$0x1]  ;;  %v173_v20 = vrot.slane %v171_v12, 4  ;;  %v1002_v22 = vrot.slane %v4148_v14, 5 }
   0x6   :  { %1782 = vrot.lane.b32.xlu0 %v4143_v13, %s4072_s28  ;;  %v1005_v23 = vrot.slane %v24_v15, 5  ;;  %v1009_v25 = vrot.slane %v26_v7, 5  ;;  %v1012_v26 = vrot.slane %v27_v19, 5  ;;  %vm131_vm4 = vsmask.f32 7440  ;;  %s4075_s20 = smov 32  }
   0x7   :  { %v1003_v27 = vsel %vm4160_vm2, %v3635_v18, %v1002_v22  ;;  %v1004_v28 = vrot.slane %v1002_v22, 4  ;;  %v134_v29 = vshrl.u32 %v4139_v10, 16  ;;  %v137_v30 = vshll.u32 %v4139_v10, 16  ;;  %v30_v43 = vld [vmem:[%s6806_s0 + $0x20] sm:$0x1]  ;;  %vm4185_vm5 = vmor %vm130_vm3, %vm131_vm4  ;;  %s4076_s21 = smov 40  }
   0x8   :  { %v1010_v31 = vsel %vm4160_vm2, %v3636_v24, %v1009_v25  ;;  %v1011_v32 = vrot.slane %v1009_v25, 4  ;;  %v143_v33 = vshll.u32 %v4148_v14, 16  ;;  %v147_v34 = vshrl.u32 %v4148_v14, 16  ;;  %v4199_v8 = vld [vmem:[%s6806_s0 + $0x24] sm:$0xf]  ;;  %s4077_s26 = smov 48  }
   0x9   :  { %v1006_v35 = vsel %vm4160_vm2, %v1004_v28, %v1005_v23  ;;  %v136_v36 = vrot.slane %v134_v29, 4  ;;  %v139_v37 = vrot.slane %v137_v30, 5  ;;  %v153_v38 = vshll.u32 %v24_v15, 16  ;;  %v4204_v9 = vld [vmem:[%s6806_s0 + $0x28] sm:$0xf]  ;;  %s4078_s30 = smov 56  }
   0xa   :  { %v3735_v39 = vcombine.low %v1003_v27, %v1006_v35  ;;  %v1013_v40 = vsel %vm4160_vm2, %v1011_v32, %v1012_v26  ;;  %v145_v41 = vrot.slane %v143_v33, 5  ;;  %v149_v42 = vrot.slane %v147_v34, 4 }
   0xb   :  { %v4180_v44 = vcombine.low %v1010_v31, %v1013_v40  ;;  %v140_v45 = vor.u32 %v139_v37, %v136_v36  ;;  %v155_v46 = vrot.slane %v153_v38, 5  ;;  %v184_v47 = vrot.slane %v182_v4, 4 }
   0xc   :  { %1712 = vrot.lane.b32.xlu1 %v3735_v39, %s4073_s12  ;;  %v150_v49 = vor.u32 %v149_v42, %v145_v41  ;;  %v187_v50 = vrot.slane %v185_v5, 5  ;;  %v191_v51 = vshll.u32 %v4121_v1, 16  ;;  %v197_v52 = vrot.slane %v195_v2, 4 }
   0xd   :  { %v141_v53 = vrot.slane %v140_v45, 4  ;;  %v201_v54 = vshll.u32 %v30_v43, 16  ;;  %v164_v55 = vor.u32 %v163_v17, %v160_v16  ;;  %v169_v56 = vrot.slane %v167_v11, 5 }
   0xe   :  { %v151_v57 = vrot.slane %v150_v49, 4  ;;  %v188_v58 = vor.u32 %v187_v50, %v184_v47  ;;  %v193_v59 = vrot.slane %v191_v51, 5  ;;  %v177_v60 = vshll.u32 %v27_v19, 16  ;;  %v35_v47 = vld [vmem:[%s6806_s0 + $0x34] sm:$0xf] }
   0xf   :  { %v146_v61 = vsel %vm4185_vm5, %v141_v53, %v145_v41  ;;  %v203_v62 = vrot.slane %v201_v54, 5  ;;  %v165_v63 = vrot.slane %v164_v55, 4  ;;  %v174_v4 = vor.u32 %v173_v20, %v169_v56 }
  0x10   :  { %1714 = vrot.lane.b32.xlu1 %v4180_v44, %s4073_s12  ;;  %v156_v2 = vsel %vm4185_vm5, %v151_v57, %v155_v46  ;;  %v189_v5 = vrot.slane %v188_v58, 4  ;;  %v198_v6 = vor.u32 %v197_v52, %v193_v59  ;;  %v179_v7 = vrot.slane %v177_v60, 5  ;;  %v4244_v46 = vld [vmem:[%s6806_s0 + $0x30] sm:$0xf] }
  0x11   :  { %v3703_v11 = vcombine.low %v146_v61, %v156_v2  ;;  %v170_v12 = vsel %vm4185_vm5, %v165_v63, %v169_v56  ;;  %v175_v15 = vrot.slane %v174_v4, 4  ;;  %v3637_v16 = vrot.slane %v4116_v0, 9  ;;  %v33_v0 = vld [vmem:[%s6806_s0 + $0x2c] sm:$0x1] }
  0x12   :  { %v194_v17 = vsel %vm4185_vm5, %v189_v5, %v193_v59  ;;  %v199_v18 = vrot.slane %v198_v6, 4  ;;  %v1016_v19 = vrot.slane %v4121_v1, 5  ;;  %v1019_v20 = vrot.slane %v30_v43, 5  ;;  %v36_v59 = vld [vmem:[%s6806_s0 + $0x38] sm:$0x1] }
  0x13   :  { %1552 = vrot.lane.b32.xlu0 %v3703_v11, %s4074_s17  ;;  %v180_v22 = vsel %vm4185_vm5, %v175_v15, %v179_v7  ;;  %v206_v23 = vshrl.u32 %v4199_v8, 16  ;;  %v209_v24 = vshll.u32 %v4199_v8, 16  ;;  %v219_v25 = vshrl.u32 %v4204_v9, 16 }
  0x14   :  { %v204_v1 = vsel %vm4185_vm5, %v199_v18, %v203_v62  ;;  %v3704_v26 = vcombine.low %v170_v12, %v180_v22  ;;  %v1017_v27 = vsel %vm4160_vm2, %v3637_v16, %v1016_v19  ;;  %v1018_v28 = vrot.slane %v1016_v19, 4 }
  0x15   :  { %v3705_v29 = vcombine.low %v194_v17, %v204_v1  ;;  %v208_v30 = vrot.slane %v206_v23, 4  ;;  %v211_v31 = vrot.slane %v209_v24, 5  ;;  %v215_v33 = vshll.u32 %v4204_v9, 16 }
  0x16   :  { %v1020_v32 = vsel %vm4160_vm2, %v1018_v28, %v1019_v20  ;;  %v221_v34 = vrot.slane %v219_v25, 4  ;;  %v225_v35 = vshll.u32 %v33_v0, 16  ;;  %v4237_v42 = vcombine.low %v4199_v8, %v4204_v9 }
  0x17   :  { %1854 = vrot.lane.b32.xlu1 %v3705_v29, %s4075_s20  ;;  %1554 = vrot.lane.b32.xlu0 %v3704_v26, %s4074_s17  ;;  %v4230_v36 = vcombine.low %v1017_v27, %v1020_v32  ;;  %v212_v37 = vor.u32 %v211_v31, %v208_v30  ;;  %v217_v38 = vrot.slane %v215_v33, 5  ;;  %v1023_v50 = vrot.slane %v4204_v9, 5 }
  0x18   :  { %v227_v41 = vrot.slane %v225_v35, 5  ;;  %v230_v52 = vshrl.u32 %v4244_v46, 16  ;;  %v233_v53 = vshll.u32 %v4244_v46, 16  ;;  %v243_v54 = vshrl.u32 %v35_v47, 16 }
  0x19   :  { %v213_v39 = vrot.slane %v212_v37, 4  ;;  %v222_v40 = vor.u32 %v221_v34, %v217_v38  ;;  %v239_v55 = vshll.u32 %v35_v47, 16  ;;  %v3638_v56 = vrot.slane %v4199_v8, 9 }
  0x1a   :  { %v1025_v57 = vrot.slane %v1023_v50, 4  ;;  %v1026_v58 = vrot.slane %v33_v0, 5  ;;  %v235_v60 = vrot.slane %v233_v53, 5  ;;  %v245_v62 = vrot.slane %v243_v54, 4 }
  0x1b   :  { %1924 = vrot.lane.b32.xlu1 %v4230_v36, %s4076_s21  ;;  %1852 = vrot.lane.b32.xlu0 %v3704_v26, %s4075_s20  ;;  %v218_v43 = vsel %vm4185_vm5, %v213_v39, %v217_v38  ;;  %v223_v45 = vrot.slane %v222_v40, 4  ;;  %v241_v61 = vrot.slane %v239_v55, 5 }
  0x1d   :  { %v228_v49 = vsel %vm4185_vm5, %v223_v45, %v227_v41 }
  0x1e   :  { %v4256_v51 = vcombine.low %v218_v43, %v228_v49 }
  0x1f   :  { %1994 = vrot.lane.b32.xlu1 %v4237_v42, %s4077_s26  ;;  %1922 = vrot.lane.b32.xlu0 %v4180_v44, %s4076_s21  ;;  %v232_v44 = vrot.slane %v230_v52, 4 }
  0x23   :  { %2064 = vrot.lane.b32.xlu1 %v4256_v51, %s4078_s30  ;;  %1992 = vrot.lane.b32.xlu0 %v4126_v3, %s4077_s26 }
  0x24   :  { %10 = vsyncpa [#allocation3], 0  ;;  %v1024_v63 = vsel %vm4160_vm2, %v3638_v56, %v1023_v50  ;;  %v1027_v4 = vsel %vm4160_vm2, %v1025_v57, %v1026_v58  ;;  %v236_v2 = vor.u32 %v235_v60, %v232_v44  ;;  %v249_v5 = vshll.u32 %v36_v59, 16  ;;  %v4277_v7 = vld [vmem:[%s6806_s0 + $0x3c] sm:$0xf]  ;;  %s4079_s10 = smov 64  }
  0x25   :  { %v246_v6 = vor.u32 %v245_v62, %v241_v61  ;;  %v4282_v8 = vld [vmem:[%s6806_s0 + $0x40] sm:$0xf]  ;;  %v3738_v9 = vcombine.low %v1024_v63, %v1027_v4  ;;  %v1030_v15 = vrot.slane %v35_v47, 5  ;;  %v254_v16 = vshrl.u32 %v4277_v7, 16  ;;  %v39_v30 = vld [vmem:[%s6806_s0 + $0x44] sm:$0x1] }
  0x26   :  { %v237_v11 = vrot.slane %v236_v2, 4  ;;  %v251_v12 = vrot.slane %v249_v5, 5  ;;  %v257_v18 = vshll.u32 %v4277_v7, 16  ;;  %v267_v19 = vshrl.u32 %v4282_v8, 16  ;;  %v4014_v49 = vld [vmem:[%s6807_s1 + $0x20] ss:$0 sps:$4 sm:$0xff]  }
  0x27   :  { %1556 = vrot.lane.b32.xlu1 %v3705_v29, %s4074_s17  ;;  %2062 = vrot.lane.b32.xlu0 %v3705_v29, %s4078_s30  ;;  %v247_v17 = vrot.slane %v246_v6, 4  ;;  %v263_v20 = vshll.u32 %v4282_v8, 16  ;;  %v4293_v22 = vcombine.low %v4244_v46, %v35_v47  ;;  %v3639_v23 = vrot.slane %v4244_v46, 9  ;;  %v4333_v46 = vld [vmem:[%s6806_s0 + $0x48] sm:$0xf]  ;;  %v4015_v52 = vld [vmem:[%s6807_s1 + $0x18] sm:$0xff]  }
  0x28   :  { %v242_v24 = vsel %vm4185_vm5, %v237_v11, %v241_v61  ;;  %v1032_v25 = vrot.slane %v1030_v15, 4  ;;  %v1033_v0 = vrot.slane %v36_v59, 5  ;;  %v256_v1 = vrot.slane %v254_v16, 4  ;;  %v4343_v50 = vld [vmem:[%s6806_s0 + $0x4c] sm:$0xf]  ;;  %v4017_v44 = vld [vmem:[%s6807_s1 + $0x10] sm:$0xff]  }
  0x29   :  { %v252_v26 = vsel %vm4185_vm5, %v247_v17, %v251_v12  ;;  %v259_v27 = vrot.slane %v257_v18, 5  ;;  %v265_v28 = vrot.slane %v263_v20, 5  ;;  %v269_v29 = vrot.slane %v267_v19, 4  ;;  %v42_v4 = vld [vmem:[%s6806_s0 + $0x50] sm:$0x1]  ;;  %v4018_v6 = vld [vmem:[%s6807_s1 + $0x8] sm:$0xff]  }
  0x2a   :  { %v3707_v31 = vcombine.low %v242_v24, %v252_v26  ;;  %v1031_v32 = vsel %vm4160_vm2, %v3639_v23, %v1030_v15  ;;  %v1034_v33 = vsel %vm4160_vm2, %v1032_v25, %v1033_v0  ;;  %v273_v37 = vshll.u32 %v39_v30, 16  ;;  %v4381_v15 = vld [vmem:[%s6806_s0 + $0x54] sm:$0xf]  ;;  %v4386_v16 = vld [vmem:[%s6806_s0 + $0x58] sm:$0xf]  ;;  %v4019_v18 = vld [vmem:[%s6807_s1] sm:$0xff]  }
  0x2b   :  { %1558 = vrot.lane.b32.xlu1 %v4256_v51, %s4074_s17  ;;  %2132 = vrot.lane.b32.xlu0 %v4230_v36, %s4079_s10  ;;  %v260_v34 = vor.u32 %v259_v27, %v256_v1  ;;  %v270_v35 = vor.u32 %v269_v29, %v265_v28  ;;  %v4316_v38 = vcombine.low %v1031_v32, %v1034_v33  ;;  %v278_v54 = vshrl.u32 %v4333_v46, 16 }
  0x2c   :  { %v4324_v41 = vcombine.low %v4277_v7, %v4282_v8  ;;  %v3671_v47 = vcombine.low %v4139_v10, %v4148_v14  ;;  %v281_v55 = vshll.u32 %v4333_v46, 16  ;;  %vm2856_vm6 = vcmask 1043456  }
  0x2d   :  { %v261_v39 = vrot.slane %v260_v34, 4  ;;  %v271_v40 = vrot.slane %v270_v35, 4  ;;  %v291_v56 = vshrl.u32 %v4343_v50, 16  ;;  %v287_v57 = vshll.u32 %v4343_v50, 16  ;;  %3974 = vmatprep.subr.msk.bf16.mxu0 %vm2856_vm6, %v4014_v49 }
  0x2e   :  { %v2858_v58 = vsel %vm2856_vm6, %v4014_v49, 0  ;;  %v3640_v59 = vrot.slane %v4277_v7, 9  ;;  %v1040_v61 = vrot.slane %v39_v30, 5  ;;  %v280_v62 = vrot.slane %v278_v54, 4 }
  0x2f   :  { %1718 = vrot.lane.b32.xlu1 %v3738_v9, %s4073_s12  ;;  %2134 = vrot.lane.b32.xlu0 %v3738_v9, %s4079_s10  ;;  %v266_v43 = vsel %vm4185_vm5, %v261_v39, %v265_v28  ;;  %v283_v63 = vrot.slane %v281_v55, 5  ;;  %v289_v2 = vrot.slane %v287_v57, 5  ;;  %v293_v5 = vrot.slane %v291_v56, 4  ;;  %v45_v39 = vld [vmem:[%s6806_s0 + $0x5c] sm:$0x1] }
  0x30   :  { %3901 = vmatpush3.bf16.msra.mxu0 %v2858_v58  ;;  %v297_v11 = vshll.u32 %v42_v4, 16  ;;  %v1044_v23 = vrot.slane %v4343_v50, 5  ;;  %v302_v24 = vshrl.u32 %v4381_v15, 16  ;;  %v305_v0 = vshll.u32 %v4381_v15, 16  ;;  %v46_v57 = vld [vmem:[%s6806_s0 + $0x60] sm:$0xf] }
  0x31   :  { %3902 = vmatprep.subr.bf16.mxu0 %v4015_v52  ;;  %v294_v12 = vor.u32 %v293_v5, %v289_v2  ;;  %v315_v1 = vshrl.u32 %v4386_v16, 16  ;;  %v311_v26 = vshll.u32 %v4386_v16, 16  ;;  %v4402_v27 = vcombine.low %v4333_v46, %v4343_v50  ;;  %v47_v58 = vld [vmem:[%s6806_s0 + $0x64] sm:$0xf] }
  0x32   :  { %v299_v20 = vrot.slane %v297_v11, 5  ;;  %v3641_v28 = vrot.slane %v4333_v46, 9  ;;  %v1046_v30 = vrot.slane %v1044_v23, 4  ;;  %v304_v32 = vrot.slane %v302_v24, 4 }
  0x33   :  { %1788 = vrot.lane.b32.xlu1 %v4293_v22, %s4072_s28  ;;  %1716 = vrot.lane.b32.xlu0 %v4230_v36, %s4073_s12  ;;  %v275_v36 = vrot.slane %v273_v37, 5  ;;  %v295_v25 = vrot.slane %v294_v12, 4  ;;  %v307_v34 = vrot.slane %v305_v0, 5  ;;  %v313_v35 = vrot.slane %v311_v26, 5 }
  0x34   :  { %3903 = vmatpush3.bf16.msra.mxu0 %v4015_v52  ;;  %v317_v37 = vrot.slane %v315_v1, 4  ;;  %v321_v49 = vshll.u32 %v45_v39, 16  ;;  %vm2196_vm7 = vcmask 64512   ;;  %vm2293_vm8 = vcmask 130048  }
  0x35   :  { %v276_v45 = vsel %vm4185_vm5, %v271_v40, %v275_v36  ;;  %3904 = vmatprep.subr.bf16.mxu0 %v4017_v44  ;;  %v300_v33 = vsel %vm4185_vm5, %v295_v25, %v299_v20  ;;  %v1045_v36 = vsel %vm4160_vm2, %v3641_v28, %v1044_v23  ;;  %v1058_v25 = vrot.slane %v47_v58, 5 }
  0x36   :  { %v4352_v53 = vcombine.low %v266_v43, %v276_v45  ;;  %v308_v45 = vor.u32 %v307_v34, %v304_v32  ;;  %v318_v46 = vor.u32 %v317_v37, %v313_v35  ;;  %v323_v54 = vrot.slane %v321_v49, 5 }
  0x37   :  { %1858 = vrot.lane.b32.xlu1 %v3707_v31, %s4075_s20  ;;  %1786 = vrot.lane.b32.xlu0 %v4237_v42, %s4072_s28  ;;  %vm2358_vm9 = vcmask 195584   ;;  %vm2423_vm10 = vcmask 261120   ;;  %vm2488_vm11 = vcmask 326656   ;;  %vm2553_vm12 = vcmask 392192  }
  0x38   :  { %3905 = vmatpush3.bf16.msra.mxu0 %v4017_v44  ;;  %v319_v52 = vrot.slane %v318_v46, 4  ;;  %v326_v44 = vshrl.u32 %v46_v57, 16  ;;  %vm2618_vm13 = vcmask 457728   ;;  %vm2683_vm14 = vcmask 523264  }
  0x39   :  { %3906 = vmatprep.subr.bf16.mxu0 %v4018_v6  ;;  %vm2791_vm15 = vcmask 588800  }
  0x3a   :  { %v324_v56 = vsel %vm4185_vm5, %v319_v52, %v323_v54  ;;  %v328_v5 = vrot.slane %v326_v44, 4 }
  0x3b   :  { %1928 = vrot.lane.b32.xlu1 %v4316_v38, %s4076_s21  ;;  %1856 = vrot.lane.b32.xlu0 %v4256_v51, %s4075_s20  ;;  %v1037_v51 = vrot.slane %v4282_v8, 5 }
  0x3c   :  { %3907 = vmatpush3.bf16.msra.mxu0 %v4018_v6 }
  0x3d   :  { %v1039_v60 = vrot.slane %v1037_v51, 4  ;;  %v1038_v7 = vsel %vm4160_vm2, %v3640_v59, %v1037_v51  ;;  %3908 = vmatprep.subr.bf16.mxu0 %v4019_v18  ;;  %v309_v51 = vrot.slane %v308_v45, 4  ;;  %v1051_v59 = vrot.slane %v4386_v16, 5 }
  0x3f   :  { %1998 = vrot.lane.b32.xlu1 %v4324_v41, %s4077_s26  ;;  %1926 = vrot.lane.b32.xlu0 %v3738_v9, %s4076_s21  ;;  %v1041_v8 = vsel %vm4160_vm2, %v1039_v60, %v1040_v61  ;;  %v284_v9 = vor.u32 %v283_v63, %v280_v62  ;;  %v314_v55 = vsel %vm4185_vm5, %v309_v51, %v313_v35  ;;  %v329_v60 = vshll.u32 %v46_v57, 16 }
  0x40   :  { %v3740_v17 = vcombine.low %v1038_v7, %v1041_v8  ;;  %3909 = vmatpush3.bf16.msra.mxu0 %v4019_v18  ;;  %v339_v61 = vshrl.u32 %v47_v58, 16  ;;  %v335_v62 = vshll.u32 %v47_v58, 16  ;;  %v3642_v63 = vrot.slane %v4381_v15, 9  ;;  %v48_v7 = vld [vmem:[%s6806_s0 + $0x68] sm:$0x1] }
  0x41   :  { %v285_v19 = vrot.slane %v284_v9, 4  ;;  %v331_v6 = vrot.slane %v329_v60, 5  ;;  %v4465_v18 = vld [vmem:[%s6806_s0 + $0x6c] sm:$0xf]  ;;  %v1061_v34 = vrot.slane %v48_v7, 5 }
  0x42   :  { %v337_v8 = vrot.slane %v335_v62, 5  ;;  %v341_v9 = vrot.slane %v339_v61, 4  ;;  %v1052_v11 = vsel %vm4160_vm2, %v3642_v63, %v1051_v59  ;;  %v350_v0 = vshrl.u32 %v4465_v18, 16  ;;  %v4519_v61 = vld [vmem:[%s6806_s0 + $0x78] sm:$0xf] }
  0x43   :  { %2068 = vrot.lane.b32.xlu1 %v4352_v53, %s4078_s30  ;;  %1996 = vrot.lane.b32.xlu0 %v4293_v22, %s4077_s26  ;;  %v290_v29 = vsel %vm4185_vm5, %v285_v19, %v289_v2  ;;  %v1054_v2 = vrot.slane %v45_v39, 5  ;;  %v4470_v19 = vld [vmem:[%s6806_s0 + $0x70] sm:$0xf]  ;;  %v353_v26 = vshll.u32 %v4465_v18, 16  ;;  %v4524_v62 = vld [vmem:[%s6806_s0 + $0x7c] sm:$0xf] }
  0x44   :  { %v3709_v40 = vcombine.low %v290_v29, %v300_v33  ;;  %v363_v28 = vshrl.u32 %v4470_v19, 16  ;;  %v359_v29 = vshll.u32 %v4470_v19, 16  ;;  %v1060_v33 = vrot.slane %v1058_v25, 4 }
  0x45   :  { %v352_v35 = vrot.slane %v350_v0, 4  ;;  %v355_v39 = vrot.slane %v353_v26, 5 }
  0x46   :  { %v1062_v49 = vsel %vm4160_vm2, %v1060_v33, %v1061_v34 }
  0x47   :  { %1560 = vrot.lane.b32.xlu1 %v3707_v31, %s4074_s17  ;;  %2066 = vrot.lane.b32.xlu0 %v3707_v31, %s4078_s30  ;;  %v1047_v31 = vrot.slane %v42_v4, 5  ;;  %v1053_v4 = vrot.slane %v1051_v59, 4  ;;  %v356_v51 = vor.u32 %v355_v39, %v352_v35  ;;  %v4510_v59 = vcombine.low %v4465_v18, %v4470_v19 }
  0x49   :  { %v1048_v43 = vsel %vm4160_vm2, %v1046_v30, %v1047_v31  ;;  %v1055_v12 = vsel %vm4160_vm2, %v1053_v4, %v1054_v2  ;;  %v4479_v30 = vcombine.low %v46_v57, %v47_v58  ;;  %v3643_v31 = vrot.slane %v46_v57, 9 }
  0x4a   :  { %v3741_v50 = vcombine.low %v1045_v36, %v1048_v43  ;;  %v3742_v20 = vcombine.low %v1052_v11, %v1055_v12  ;;  %v365_v36 = vrot.slane %v363_v28, 4  ;;  %v51_v43 = vld [vmem:[%s6806_s0 + $0x74] sm:$0x1]  ;;  %v1065_v2 = vrot.slane %v4470_v19, 5  ;;  %v54_v19 = vld [vmem:[%s6806_s0 + $0x80] sm:$0x1] }
  0x4b   :  { %1562 = vrot.lane.b32.xlu1 %v4352_v53, %s4074_s17  ;;  %2136 = vrot.lane.b32.xlu0 %v4316_v38, %s4079_s10  ;;  %v1059_v46 = vsel %vm4160_vm2, %v3643_v31, %v1058_v25  ;;  %v369_v54 = vshll.u32 %v51_v43, 16  ;;  %v4559_v28 = vld [vmem:[%s6806_s0 + $0x84] sm:$0xf] }
  0x4c   :  { %v1067_v12 = vrot.slane %v1065_v2, 4  ;;  %v398_v39 = vshrl.u32 %v4559_v28, 16 }
  0x4d   :  { %v371_v58 = vrot.slane %v369_v54, 5 }
  0x4f   :  { %1722 = vrot.lane.b32.xlu1 %v3740_v17, %s4073_s12  ;;  %2138 = vrot.lane.b32.xlu0 %v3740_v17, %s4079_s10 }
  0x53   :  { %1792 = vrot.lane.b32.xlu1 %v4402_v27, %s4072_s28  ;;  %1720 = vrot.lane.b32.xlu0 %v4316_v38, %s4073_s12  ;;  %v4430_v38 = vcombine.low %v4381_v15, %v4386_v16  ;;  %v332_v15 = vor.u32 %v331_v6, %v328_v5  ;;  %v345_v16 = vshll.u32 %v48_v7, 16  ;;  %v374_v5 = vshrl.u32 %v4519_v61, 16 }
  0x54   :  { %v377_v6 = vshll.u32 %v4519_v61, 16  ;;  %v387_v7 = vshrl.u32 %v4524_v62, 16 }
  0x55   :  { %v333_v23 = vrot.slane %v332_v15, 4  ;;  %v347_v24 = vrot.slane %v345_v16, 5  ;;  %v1068_v15 = vrot.slane %v51_v43, 5  ;;  %v376_v16 = vrot.slane %v374_v5, 4 }
  0x57   :  { %1862 = vrot.lane.b32.xlu1 %v3709_v40, %s4075_s20  ;;  %1790 = vrot.lane.b32.xlu0 %v4324_v41, %s4072_s28  ;;  %v338_v32 = vsel %vm4185_vm5, %v333_v23, %v337_v8  ;;  %v389_v23 = vrot.slane %v387_v7, 4  ;;  %v1069_v25 = vsel %vm4160_vm2, %v1067_v12, %v1068_v15 }
  0x5b   :  { %1932 = vrot.lane.b32.xlu1 %v3741_v50, %s4076_s21  ;;  %1860 = vrot.lane.b32.xlu0 %v4352_v53, %s4075_s20  ;;  %v4445_v53 = vcombine.low %v314_v55, %v324_v56  ;;  %v4500_v55 = vcombine.low %v1059_v46, %v1062_v49 }
  0x5f   :  { %2002 = vrot.lane.b32.xlu1 %v4430_v38, %s4077_s26  ;;  %1930 = vrot.lane.b32.xlu0 %v3740_v17, %s4076_s21  ;;  %v342_v17 = vor.u32 %v341_v9, %v337_v8  ;;  %v383_v8 = vshll.u32 %v4524_v62, 16  ;;  %v3644_v9 = vrot.slane %v4465_v18, 9 }
  0x61   :  { %v343_v1 = vrot.slane %v342_v17, 4  ;;  %v379_v17 = vrot.slane %v377_v6, 5  ;;  %v1066_v18 = vsel %vm4160_vm2, %v3644_v9, %v1065_v2  ;;  %v4597_v6 = vld [vmem:[%s6806_s0 + $0x8c] sm:$0x1] }
  0x62   :  { %v4568_v33 = vcombine.low %v1066_v18, %v1069_v25  ;;  %v417_v10 = vshll.u32 %v4597_v6, 16 }
  0x63   :  { %2072 = vrot.lane.b32.xlu1 %v4445_v53, %s4078_s30  ;;  %2000 = vrot.lane.b32.xlu0 %v4402_v27, %s4077_s26  ;;  %v348_v37 = vsel %vm4185_vm5, %v343_v1, %v347_v24  ;;  %v380_v0 = vor.u32 %v379_v17, %v376_v16  ;;  %v393_v1 = vshll.u32 %v54_v19, 16 }
  0x64   :  { %v3711_v45 = vcombine.low %v338_v32, %v348_v37  ;;  %v4566_v32 = vld [vmem:[%s6806_s0 + $0x88] sm:$0xf]  ;;  %v1072_v37 = vrot.slane %v4524_v62, 5 }
  0x65   :  { %v381_v34 = vrot.slane %v380_v0, 4  ;;  %v395_v35 = vrot.slane %v393_v1, 5  ;;  %v411_v43 = vshrl.u32 %v4566_v32, 16 }
  0x67   :  { %1564 = vrot.lane.b32.xlu1 %v3709_v40, %s4074_s17  ;;  %2070 = vrot.lane.b32.xlu0 %v3709_v40, %s4078_s30  ;;  %v361_v40 = vrot.slane %v359_v29, 5  ;;  %v413_v2 = vrot.slane %v411_v43, 4 }
  0x69   :  { %v366_v52 = vor.u32 %v365_v36, %v361_v40  ;;  %v401_v36 = vshll.u32 %v4559_v28, 16 }
  0x6b   :  { %1566 = vrot.lane.b32.xlu1 %v4445_v53, %s4074_s17  ;;  %2140 = vrot.lane.b32.xlu0 %v3741_v50, %s4079_s10  ;;  %v367_v57 = vrot.slane %v366_v52, 4  ;;  %v3645_v52 = vrot.slane %v4519_v61, 9 }
  0x6d   :  { %v372_v60 = vsel %vm4185_vm5, %v367_v57, %v371_v58  ;;  %v1075_v57 = vrot.slane %v54_v19, 5  ;;  %v400_v58 = vrot.slane %v398_v39, 4  ;;  %v1073_v7 = vsel %vm4160_vm2, %v3645_v52, %v1072_v37 }
  0x6f   :  { %1726 = vrot.lane.b32.xlu1 %v3742_v20, %s4073_s12  ;;  %2142 = vrot.lane.b32.xlu0 %v3742_v20, %s4079_s10 }
  0x73   :  { %1796 = vrot.lane.b32.xlu1 %v4479_v30, %s4072_s28  ;;  %1724 = vrot.lane.b32.xlu0 %v3741_v50, %s4073_s12  ;;  %v357_v50 = vrot.slane %v356_v51, 4  ;;  %v4583_v51 = vcombine.low %v4519_v61, %v4524_v62 }
  0x75   :  { %v362_v44 = vsel %vm4185_vm5, %v357_v50, %v361_v40  ;;  %v1074_v50 = vrot.slane %v1072_v37, 4 }
  0x76   :  { %v4502_v56 = vpop.permute.xlu1 %1784  ;;  %v4533_v4 = vcombine.low %v362_v44, %v372_v60  ;;  %v403_v60 = vrot.slane %v401_v36, 5  ;;  %v1079_v36 = vrot.slane %v4566_v32, 5 }
  0x77   :  { %1866 = vrot.lane.b32.xlu1 %v3711_v45, %s4075_s20  ;;  %1794 = vrot.lane.b32.xlu0 %v4430_v38, %s4072_s28  ;;  %v1076_v15 = vsel %vm4160_vm2, %v1074_v50, %v1075_v57 }
  0x78   :  { %v4531_v63 = vpop.permute.xlu0 %1782  ;;  %v404_v16 = vor.u32 %v403_v60, %v400_v58  ;;  %v1081_v60 = vrot.slane %v1079_v36, 4 }
  0x7b   :  { %1936 = vrot.lane.b32.xlu1 %v4500_v55, %s4076_s21  ;;  %1864 = vrot.lane.b32.xlu0 %v4445_v53, %s4075_s20 }
  0x7e   :  { %v4526_v53 = vpop.permute.xlu1 %1712 }
  0x7f   :  { %2006 = vrot.lane.b32.xlu1 %v4510_v59, %s4077_s26  ;;  %1934 = vrot.lane.b32.xlu0 %v3742_v20, %s4076_s21  ;;  %v385_v20 = vrot.slane %v383_v8, 5 }
  0x81   :  { %v390_v26 = vor.u32 %v389_v23, %v385_v20  ;;  %v386_v54 = vsel %vm4185_vm5, %v381_v34, %v385_v20  ;;  %v405_v20 = vrot.slane %v404_v16, 4 }
  0x82   :  { %v4545_v11 = vpop.permute.xlu1 %1714 }
  0x83   :  { %2076 = vrot.lane.b32.xlu1 %v4533_v4, %s4078_s30  ;;  %2004 = vrot.lane.b32.xlu0 %v4479_v30, %s4077_s26  ;;  %v391_v40 = vrot.slane %v390_v26, 4 }
  0x85   :  { %v1553_v24 = vpop.permute.xlu0 %1552  ;;  %v396_v44 = vsel %vm4185_vm5, %v391_v40, %v395_v35 }
  0x86   :  { %v2199_v8 = vsel %vm2196_vm7, %v3671_v47, %v1553_v24  ;;  %v4611_v12 = vcombine.low %v386_v54, %v396_v44  ;;  %v419_v24 = vrot.slane %v417_v10, 5  ;;  %v3646_v44 = vrot.slane %v4559_v28, 9 }
  0x87   :  { %1568 = vrot.lane.b32.xlu1 %v3711_v45, %s4074_s17  ;;  %2074 = vrot.lane.b32.xlu0 %v3711_v45, %s4078_s30  ;;  %v407_v45 = vshll.u32 %v4566_v32, 16 }
  0x89   :  { %v4561_v29 = vpop.permute.xlu1 %1854  ;;  %v1555_v31 = vpop.permute.xlu0 %1554  ;;  %v409_v62 = vrot.slane %v407_v45, 5 }
  0x8a   :  { %v2202_v9 = vsel %vm2196_vm7, %v4143_v13, %v1555_v31  ;;  %v2295_v13 = vsel %vm2293_vm8, %v2199_v8, %v4526_v53 }
  0x8b   :  { %1570 = vrot.lane.b32.xlu1 %v4533_v4, %s4074_s17  ;;  %2144 = vrot.lane.b32.xlu0 %v4500_v55, %s4079_s10  ;;  %v414_v17 = vor.u32 %v413_v2, %v409_v62  ;;  %v2297_v19 = vsel %vm2293_vm8, %v2202_v9, %v4545_v11  ;;  %v2360_v53 = vsel %vm2358_vm9, %v2295_v13, %v4531_v63 }
  0x8c   :  { %v2362_v18 = vsel %vm2358_vm9, %v2297_v19, %v4502_v56  ;;  %v4640_v56 = vcombine.low %v4559_v28, %v4566_v32  ;;  %v410_v31 = vsel %vm4185_vm5, %v405_v20, %v409_v62  ;;  %v1082_v62 = vrot.slane %v4597_v6, 5 }
  0x8d   :  { %v4579_v46 = vpop.permute.xlu1 %1924  ;;  %v1853_v49 = vpop.permute.xlu0 %1852  ;;  %v415_v23 = vrot.slane %v414_v17, 4  ;;  %v2427_v63 = vsel %vm2423_vm10, %v2362_v18, %v4561_v29  ;;  %v4660_v29 = vld [vmem:[%s6806_s0 + $0x94] sm:$0xf]  ;;  %v1080_v6 = vsel %vm4160_vm2, %v3646_v44, %v1079_v36 }
  0x8e   :  { %v2425_v0 = vsel %vm2423_vm10, %v2360_v53, %v1853_v49  ;;  %v2492_v43 = vsel %vm2488_vm11, %v2427_v63, %v4579_v46  ;;  %v435_v32 = vshrl.u32 %v4660_v29, 16  ;;  %v431_v46 = vshll.u32 %v4660_v29, 16 }
  0x8f   :  { %1730 = vrot.lane.b32.xlu1 %v4568_v33, %s4073_s12  ;;  %2146 = vrot.lane.b32.xlu0 %v4568_v33, %s4079_s10  ;;  %v420_v34 = vsel %vm4185_vm5, %v415_v23, %v419_v24  ;;  %v1086_v24 = vrot.slane %v4660_v29, 5 }
  0x90   :  { %v4670_v45 = vcombine.low %v410_v31, %v420_v34  ;;  %v437_v8 = vrot.slane %v435_v32, 4  ;;  %v4741_v32 = vld [vmem:[%s6806_s0 + $0xa4] sm:$0x1] }
  0x91   :  { %v1995_v5 = vpop.permute.xlu1 %1994  ;;  %v1923_v61 = vpop.permute.xlu0 %1922 }
  0x92   :  { %v2490_v1 = vsel %vm2488_vm11, %v2425_v0, %v1923_v61  ;;  %v2557_v54 = vsel %vm2553_vm12, %v2492_v43, %v1995_v5  ;;  %v60_v61 = vld [vmem:[%s6806_s0 + $0x98] sm:$0x1] }
  0x93   :  { %1800 = vrot.lane.b32.xlu1 %v4583_v51, %s4072_s28  ;;  %1728 = vrot.lane.b32.xlu0 %v4500_v55, %s4073_s12  ;;  %v4624_v55 = vcombine.low %v1073_v7, %v1076_v15  ;;  %v433_v7 = vrot.slane %v431_v46, 5  ;;  %v1083_v15 = vsel %vm4160_vm2, %v1081_v60, %v1082_v62  ;;  %v441_v17 = vshll.u32 %v60_v61, 16 }
  0x94   :  { %v4714_v19 = vcombine.low %v1080_v6, %v1083_v15  ;;  %v465_v60 = vshll.u32 %v4741_v32, 16 }
  0x95   :  { %v2065_v14 = vpop.permute.xlu1 %2064  ;;  %v1993_v47 = vpop.permute.xlu0 %1992  ;;  %v438_v10 = vor.u32 %v437_v8, %v433_v7  ;;  %v443_v23 = vrot.slane %v441_v17, 5 }
  0x96   :  { %v2555_v26 = vsel %vm2553_vm12, %v2490_v1, %v1993_v47  ;;  %v2622_v50 = vsel %vm2618_vm13, %v2557_v54, %v2065_v14  ;;  %v4705_v14 = vld [vmem:[%s6806_s0 + $0x9c] sm:$0xf]  ;;  %v467_v15 = vrot.slane %v465_v60, 5 }
  0x97   :  { %1870 = vrot.lane.b32.xlu1 %v4611_v12, %s4075_s20  ;;  %1798 = vrot.lane.b32.xlu0 %v4510_v59, %s4072_s28  ;;  %v446_v18 = vshrl.u32 %v4705_v14, 16  ;;  %v439_v53 = vrot.slane %v438_v10, 4 }
  0x99   :  { %v4630_v11 = vpop.permute.xlu1 %1556  ;;  %v2063_v25 = vpop.permute.xlu0 %2062  ;;  %v448_v36 = vrot.slane %v446_v18, 4  ;;  %v444_v43 = vsel %vm4185_vm5, %v439_v53, %v443_v23  ;;  %v4800_v53 = vld [vmem:[%s6806_s0 + $0xac] sm:$0xf] }
  0x9a   :  { %v2620_v35 = vsel %vm2618_vm13, %v2555_v26, %v2063_v25  ;;  %v449_v25 = vshll.u32 %v4705_v14, 16 }
  0x9b   :  { %1940 = vrot.lane.b32.xlu1 %v4624_v55, %s4076_s21  ;;  %1868 = vrot.lane.b32.xlu0 %v4533_v4, %s4075_s20  ;;  %v4652_v4 = vld [vmem:[%s6806_s0 + $0x90] sm:$0xf] }
  0x9c   :  { %v422_v49 = vshrl.u32 %v4652_v4, 16  ;;  %v425_v52 = vshll.u32 %v4652_v4, 16  ;;  %v4727_v31 = vcombine.low %v4652_v4, %v4660_v29  ;;  %v3647_v34 = vrot.slane %v4652_v4, 9 }
  0x9d   :  { %v4655_v37 = vpop.permute.xlu1 %1558  ;;  %v2133_v39 = vpop.permute.xlu0 %2132 }
  0x9e   :  { %v2685_v40 = vsel %vm2683_vm14, %v2620_v35, %v2133_v39  ;;  %v424_v2 = vrot.slane %v422_v49, 4  ;;  %v427_v5 = vrot.slane %v425_v52, 5  ;;  %v1088_v39 = vrot.slane %v1086_v24, 4 }
  0x9f   :  { %2010 = vrot.lane.b32.xlu1 %v4640_v56, %s4077_s26  ;;  %1938 = vrot.lane.b32.xlu0 %v4568_v33, %s4076_s21  ;;  %v451_v49 = vrot.slane %v449_v25, 5 }
  0xa0   :  { %3910 = vmatprep.mubr.msk.bf16.mxu0 %vm2791_vm15, %v2685_v40  ;;  %v428_v16 = vor.u32 %v427_v5, %v424_v2  ;;  %v1089_v40 = vrot.slane %v60_v61, 5  ;;  %v2205_v5 = vsel %vm2196_vm7, %v4126_v3, %v4630_v11 }
  0xa1   :  { %v4679_v57 = vpop.permute.xlu1 %1718  ;;  %v2135_v58 = vpop.permute.xlu0 %2134 }
  0xa2   :  { %v2687_v33 = vsel %vm2683_vm14, %v2622_v50, %v2135_v58  ;;  %v429_v20 = vrot.slane %v428_v16, 4  ;;  %v1087_v50 = vsel %vm4160_vm2, %v3647_v34, %v1086_v24  ;;  %v1090_v58 = vsel %vm4160_vm2, %v1088_v39, %v1089_v40 }
  0xa3   :  { %2080 = vrot.lane.b32.xlu1 %v4670_v45, %s4078_s30  ;;  %2008 = vrot.lane.b32.xlu0 %v4583_v51, %s4077_s26  ;;  %v4764_v61 = vcombine.low %v1087_v50, %v1090_v58 }
  0xa4   :  { %3911 = vmatmul.mubr.msk.bf16.vlgmr.msra.gmra.mxu0 %vm2791_vm15, %v2687_v33  ;;  %v434_v35 = vsel %vm4185_vm5, %v429_v20, %v433_v7  ;;  %v452_v33 = vor.u32 %v451_v49, %v448_v36  ;;  %v4790_v20 = vld [vmem:[%s6806_s0 + $0xa8] sm:$0xf]  ;;  %v1096_v49 = vrot.slane %v4741_v32, 5 }
  0xa5   :  { %v4692_v28 = vpop.permute.xlu1 %1788  ;;  %v1717_v9 = vpop.permute.xlu0 %1716  ;;  %v4747_v46 = vcombine.low %v434_v35, %v444_v43  ;;  %v470_v34 = vshrl.u32 %v4790_v20, 16  ;;  %v3648_v43 = vrot.slane %v4705_v14, 9 }
  0xa6   :  { %v2299_v7 = vsel %vm2293_vm8, %v2205_v5, %v1717_v9  ;;  %v453_v8 = vrot.slane %v452_v33, 4  ;;  %v4846_v5 = vld [vmem:[%s6806_s0 + $0xb4] sm:$0xf] }
  0xa7   :  { %1572 = vrot.lane.b32.xlu1 %v4611_v12, %s4074_s17  ;;  %2078 = vrot.lane.b32.xlu0 %v4611_v12, %s4078_s30  ;;  %v4712_v12 = vld [vmem:[%s6806_s0 + $0xa0] sm:$0xf] }
  0xa8   :  { %v459_v0 = vshrl.u32 %v4712_v12, 16  ;;  %v455_v1 = vshll.u32 %v4712_v12, 16  ;;  %v4780_v9 = vcombine.low %v4705_v14, %v4712_v12 }
  0xa9   :  { %v4707_v47 = vpop.permute.xlu1 %1858  ;;  %v1787_v13 = vpop.permute.xlu0 %1786 }
  0xaa   :  { %v457_v29 = vrot.slane %v455_v1, 5  ;;  %v461_v52 = vrot.slane %v459_v0, 4  ;;  %v2364_v16 = vsel %vm2358_vm9, %v2299_v7, %v1787_v13 }
  0xab   :  { %1574 = vrot.lane.b32.xlu1 %v4670_v45, %s4074_s17  ;;  %2148 = vrot.lane.b32.xlu0 %v4624_v55, %s4079_s10 }
  0xac   :  { %v462_v44 = vor.u32 %v461_v52, %v457_v29  ;;  %v458_v13 = vsel %vm4185_vm5, %v453_v8, %v457_v29  ;;  %v66_v52 = vld [vmem:[%s6806_s0 + $0xb0] sm:$0x1] }
  0xad   :  { %v1929_v63 = vpop.permute.xlu1 %1928  ;;  %v1857_v26 = vpop.permute.xlu0 %1856  ;;  %v489_v60 = vshll.u32 %v66_v52, 16 }
  0xae   :  { %v463_v6 = vrot.slane %v462_v44, 4 }
  0xaf   :  { %1734 = vrot.lane.b32.xlu1 %v4714_v19, %s4073_s12  ;;  %2150 = vrot.lane.b32.xlu0 %v4714_v19, %s4079_s10 }
  0xb1   :  { %v1999_v54 = vpop.permute.xlu1 %1998  ;;  %v1927_v4 = vpop.permute.xlu0 %1926 }
  0xb3   :  { %1804 = vrot.lane.b32.xlu1 %v4727_v31, %s4072_s28  ;;  %1732 = vrot.lane.b32.xlu0 %v4624_v55, %s4073_s12  ;;  %v2208_v55 = vsel %vm2196_vm7, %v4237_v42, %v4655_v37  ;;  %v2429_v37 = vsel %vm2423_vm10, %v2364_v16, %v1857_v26  ;;  %v1093_v26 = vrot.slane %v4712_v12, 5  ;;  %v479_v12 = vshll.u32 %v4800_v53, 16 }
  0xb4   :  { %v2301_v42 = vsel %vm2293_vm8, %v2208_v55, %v4679_v57  ;;  %v2494_v17 = vsel %vm2488_vm11, %v2429_v37, %v1927_v4  ;;  %v468_v57 = vsel %vm4185_vm5, %v463_v6, %v467_v15  ;;  %v491_v6 = vrot.slane %v489_v60, 5 }
  0xb5   :  { %v2069_v62 = vpop.permute.xlu1 %2068  ;;  %v1997_v2 = vpop.permute.xlu0 %1996  ;;  %v1095_v29 = vrot.slane %v1093_v26, 4  ;;  %v481_v50 = vrot.slane %v479_v12, 5  ;;  %v1094_v33 = vsel %vm4160_vm2, %v3648_v43, %v1093_v26  ;;  %v1100_v15 = vrot.slane %v4800_v53, 5 }
  0xb6   :  { %v2559_v10 = vsel %vm2553_vm12, %v2494_v17, %v1997_v2  ;;  %v494_v16 = vshrl.u32 %v4846_v5, 16 }
  0xb7   :  { %1874 = vrot.lane.b32.xlu1 %v4747_v46, %s4075_s20  ;;  %1802 = vrot.lane.b32.xlu0 %v4640_v56, %s4072_s28  ;;  %v1097_v44 = vsel %vm4160_vm2, %v1095_v29, %v1096_v49 }
  0xb8   :  { %v4855_v8 = vcombine.low %v1094_v33, %v1097_v44 }
  0xb9   :  { %v4768_v3 = vpop.permute.xlu1 %1560  ;;  %v2067_v11 = vpop.permute.xlu0 %2066 }
  0xba   :  { %v2624_v23 = vsel %vm2618_vm13, %v2559_v10, %v2067_v11  ;;  %v497_v11 = vshll.u32 %v4846_v5, 16 }
  0xbb   :  { %1944 = vrot.lane.b32.xlu1 %v4764_v61, %s4076_s21  ;;  %1872 = vrot.lane.b32.xlu0 %v4670_v45, %s4075_s20  ;;  %v2366_v45 = vsel %vm2358_vm9, %v2301_v42, %v4692_v28  ;;  %v4811_v28 = vcombine.low %v458_v13, %v468_v57 }
  0xbc   :  { %v2431_v25 = vsel %vm2423_vm10, %v2366_v45, %v4707_v47  ;;  %v473_v47 = vshll.u32 %v4790_v20, 16  ;;  %v4868_v45 = vcombine.low %v4790_v20, %v4800_v53 }
  0xbd   :  { %v4795_v24 = vpop.permute.xlu1 %1562  ;;  %v2137_v18 = vpop.permute.xlu0 %2136  ;;  %v2496_v1 = vsel %vm2488_vm11, %v2431_v25, %v1929_v63  ;;  %v483_v63 = vshrl.u32 %v4800_v53, 16  ;;  %v1103_v25 = vrot.slane %v66_v52, 5 }
  0xbe   :  { %v2689_v0 = vsel %vm2683_vm14, %v2624_v23, %v2137_v18  ;;  %v2561_v35 = vsel %vm2553_vm12, %v2496_v1, %v1999_v54  ;;  %v472_v54 = vrot.slane %v470_v34, 4  ;;  %v475_v4 = vrot.slane %v473_v47, 5 }
  0xbf   :  { %2014 = vrot.lane.b32.xlu1 %v4780_v9, %s4077_s26  ;;  %1942 = vrot.lane.b32.xlu0 %v4714_v19, %s4076_s21  ;;  %v2626_v39 = vsel %vm2618_vm13, %v2561_v35, %v2069_v62  ;;  %v485_v58 = vrot.slane %v483_v63, 4  ;;  %v3649_v23 = vrot.slane %v4790_v20, 9  ;;  %v1102_v18 = vrot.slane %v1100_v15, 4  ;;  %v4882_v63 = vld [vmem:[%s6806_s0 + $0xbc] sm:$0x1] }
  0xc0   :  { %3914 = vmatprep.mubr.msk.bf16.mxu0 %vm2791_vm15, %v2689_v0  ;;  %v476_v62 = vor.u32 %v475_v4, %v472_v54  ;;  %v496_v0 = vrot.slane %v494_v16, 4  ;;  %v499_v1 = vrot.slane %v497_v11, 5  ;;  %v513_v49 = vshll.u32 %v4882_v63, 16 }
  0xc1   :  { %v4820_v40 = vpop.permute.xlu1 %1722  ;;  %v2139_v36 = vpop.permute.xlu0 %2138  ;;  %v486_v2 = vor.u32 %v485_v58, %v481_v50  ;;  %v2211_v54 = vsel %vm2196_vm7, %v4293_v22, %v4768_v3 }
  0xc2   :  { %v2691_v19 = vsel %vm2683_vm14, %v2626_v39, %v2139_v36  ;;  %v477_v42 = vrot.slane %v476_v62, 4  ;;  %v500_v39 = vor.u32 %v499_v1, %v496_v0  ;;  %v1101_v36 = vsel %vm4160_vm2, %v3649_v23, %v1100_v15 }
  0xc3   :  { %2084 = vrot.lane.b32.xlu1 %v4811_v28, %s4078_s30  ;;  %2012 = vrot.lane.b32.xlu0 %v4727_v31, %s4077_s26  ;;  %v487_v37 = vrot.slane %v486_v2, 4  ;;  %v515_v44 = vrot.slane %v513_v49, 5 }
  0xc4   :  { %3915 = vmatmul.mubr.msk.bf16.gmra.mxu0 %vm2791_vm15, %v2691_v19  ;;  %v482_v26 = vsel %vm4185_vm5, %v477_v42, %v481_v50  ;;  %v1104_v19 = vsel %vm4160_vm2, %v1102_v18, %v1103_v25  ;;  %v501_v50 = vrot.slane %v500_v39, 4  ;;  %v4983_v39 = vld [vmem:[%s6806_s0 + $0xd0] sm:$0xf] }
  0xc5   :  { %v4833_v14 = vpop.permute.xlu1 %1792  ;;  %v1721_v32 = vpop.permute.xlu0 %1720  ;;  %v492_v34 = vsel %vm4185_vm5, %v487_v37, %v491_v6  ;;  %v4905_v4 = vcombine.low %v1101_v36, %v1104_v19  ;;  %v3650_v36 = vrot.slane %v4846_v5, 9 }
  0xc6   :  { %v4888_v12 = vcombine.low %v482_v26, %v492_v34  ;;  %v2303_v58 = vsel %vm2293_vm8, %v2211_v54, %v1721_v32  ;;  %v4922_v32 = vld [vmem:[%s6806_s0 + $0xc4] sm:$0xf] }
  0xc7   :  { %1576 = vrot.lane.b32.xlu1 %v4747_v46, %s4074_s17  ;;  %2082 = vrot.lane.b32.xlu0 %v4747_v46, %s4078_s30  ;;  %v4853_v46 = vld [vmem:[%s6806_s0 + $0xb8] sm:$0xf] }
  0xc8   :  { %v507_v17 = vshrl.u32 %v4853_v46, 16  ;;  %v503_v10 = vshll.u32 %v4853_v46, 16  ;;  %v1107_v1 = vrot.slane %v4853_v46, 5 }
  0xc9   :  { %v4848_v55 = vpop.permute.xlu1 %1862  ;;  %v1791_v7 = vpop.permute.xlu0 %1790 }
  0xca   :  { %v505_v53 = vrot.slane %v503_v10, 5  ;;  %v509_v35 = vrot.slane %v507_v17, 4  ;;  %v2368_v60 = vsel %vm2358_vm9, %v2303_v58, %v1791_v7  ;;  %v4931_v7 = vcombine.low %v4846_v5, %v4853_v46  ;;  %v4974_v46 = vld [vmem:[%s6806_s0 + $0xcc] sm:$0xf] }
  0xcb   :  { %1578 = vrot.lane.b32.xlu1 %v4811_v28, %s4074_s17  ;;  %2152 = vrot.lane.b32.xlu0 %v4764_v61, %s4079_s10  ;;  %v1238_v10 = vshrl.u32 %v4922_v32, 16  ;;  %v1109_v19 = vrot.slane %v1107_v1, 4  ;;  %v1296_v58 = vshll.u32 %v4974_v46, 16  ;;  %v1302_v5 = vshll.u32 %v4983_v39, 16 }
  0xcc   :  { %v510_v43 = vor.u32 %v509_v35, %v505_v53 }
  0xcd   :  { %v1933_v13 = vpop.permute.xlu1 %1932  ;;  %v1861_v57 = vpop.permute.xlu0 %1860 }
  0xce   :  { %v511_v33 = vrot.slane %v510_v43, 4  ;;  %v2433_v62 = vsel %vm2423_vm10, %v2368_v60, %v1861_v57  ;;  %v1234_v57 = vshll.u32 %v4922_v32, 16  ;;  %v1110_v43 = vrot.slane %v4882_v63, 5  ;;  %v5005_v63 = vld [vmem:[%s6806_s0 + $0xd8] sm:$0xf] }
  0xcf   :  { %1738 = vrot.lane.b32.xlu1 %v4855_v8, %s4073_s12  ;;  %2154 = vrot.lane.b32.xlu0 %v4855_v8, %s4079_s10 }
  0xd0   :  { %v516_v15 = vsel %vm4185_vm5, %v511_v33, %v515_v44  ;;  %v4963_v35 = vrot.slane %v1234_v57, 5  ;;  %v1306_v33 = vshrl.u32 %v4983_v39, 16  ;;  %v1108_v44 = vsel %vm4160_vm2, %v3650_v36, %v1107_v1  ;;  %v5034_v57 = vld [vmem:[%s6806_s0 + $0xd4] sm:$0x1] }
  0xd1   :  { %v2003_v47 = vpop.permute.xlu1 %2002  ;;  %v1931_v20 = vpop.permute.xlu0 %1930  ;;  %v1111_v60 = vsel %vm4160_vm2, %v1109_v19, %v1110_v43 }
  0xd2   :  { %v2498_v2 = vsel %vm2488_vm11, %v2433_v62, %v1931_v20  ;;  %v1240_v20 = vrot.slane %v1238_v10, 4  ;;  %v1280_v10 = vrot.slane %v4922_v32, 5 }
  0xd3   :  { %1808 = vrot.lane.b32.xlu1 %v4868_v45, %s4072_s28  ;;  %1736 = vrot.lane.b32.xlu0 %v4764_v61, %s4073_s12  ;;  %v2214_v61 = vsel %vm2196_vm7, %v4324_v41, %v4795_v24  ;;  %v4914_v41 = vld [vmem:[%s6806_s0 + $0xc0] sm:$0xf] }
  0xd4   :  { %v2305_v24 = vsel %vm2293_vm8, %v2214_v61, %v4820_v40  ;;  %v506_v40 = vsel %vm4185_vm5, %v501_v50, %v505_v53  ;;  %v1225_v16 = vshrl.u32 %v4914_v41, 16  ;;  %v1228_v11 = vshll.u32 %v4914_v41, 16 }
  0xd5   :  { %v2073_v29 = vpop.permute.xlu1 %2072  ;;  %v2001_v52 = vpop.permute.xlu0 %2000  ;;  %v2370_v42 = vsel %vm2358_vm9, %v2305_v24, %v4833_v14  ;;  %v4955_v14 = vcombine.low %v506_v40, %v516_v15  ;;  %v1241_v54 = vor.u32 %v1240_v20, %v4963_v35  ;;  %v1293_v50 = vshrl.u32 %v4974_v46, 16  ;;  %v5014_v24 = vld [vmem:[%s6806_s0 + $0xdc] sm:$0xf]  ;;  %v5053_v20 = vld [vmem:[%s6806_s0 + $0xe4] sm:$0xf] }
  0xd6   :  { %v2563_v6 = vsel %vm2553_vm12, %v2498_v2, %v2001_v52  ;;  %v2435_v23 = vsel %vm2423_vm10, %v2370_v42, %v4848_v55  ;;  %v1227_v26 = vrot.slane %v1225_v16, 4  ;;  %v1230_v55 = vrot.slane %v1228_v11, 5 }
  0xd7   :  { %1878 = vrot.lane.b32.xlu1 %v4888_v12, %s4075_s20  ;;  %1806 = vrot.lane.b32.xlu0 %v4780_v9, %s4072_s28  ;;  %v2500_v25 = vsel %vm2488_vm11, %v2435_v23, %v1933_v13  ;;  %v1242_v2 = vrot.slane %v1241_v54, 4  ;;  %v1298_v15 = vrot.slane %v1296_v58, 5  ;;  %v5020_v16 = vrot.slane %v1302_v5, 5 }
  0xd8   :  { %v2565_v0 = vsel %vm2553_vm12, %v2500_v25, %v2003_v47  ;;  %v4969_v47 = vld [vmem:[%s6806_s0 + $0xc8] sm:$0x1]  ;;  %v1231_v49 = vor.u32 %v1230_v55, %v1227_v26  ;;  %v1308_v11 = vrot.slane %v1306_v33, 4  ;;  %v518_v42 = vshrl.u32 %v5005_v63, 16 }
  0xd9   :  { %v4909_v22 = vpop.permute.xlu1 %1564  ;;  %v2071_v3 = vpop.permute.xlu0 %2070  ;;  %v2630_v34 = vsel %vm2618_vm13, %v2565_v0, %v2073_v29  ;;  %v1244_v61 = vshll.u32 %v4969_v47, 16  ;;  %v527_v23 = vshll.u32 %v5014_v24, 16  ;;  %v5040_v25 = vcombine.low %v4914_v41, %v4922_v32 }
  0xda   :  { %v1309_v32 = vor.u32 %v1308_v11, %v5020_v16  ;;  %v520_v36 = vrot.slane %v518_v42, 4  ;;  %v1283_v43 = vrot.slane %v4969_v47, 5  ;;  %v545_v58 = vshll.u32 %v5053_v20, 16 }
  0xdb   :  { %1948 = vrot.lane.b32.xlu1 %v4905_v4, %s4076_s21  ;;  %1876 = vrot.lane.b32.xlu0 %v4811_v28, %s4075_s20  ;;  %v2628_v28 = vsel %vm2618_vm13, %v2563_v6, %v2071_v3  ;;  %v1232_v3 = vrot.slane %v1231_v49, 4  ;;  %v1246_v40 = vrot.slane %v1244_v61, 5  ;;  %v1295_v6 = vrot.slane %v1293_v50, 4  ;;  %v5072_v61 = vld [vmem:[%s6806_s0 + $0xe0] sm:$0x1] }
  0xdc   :  { %v5067_v49 = vrot.slane %v527_v23, 5  ;;  %v542_v50 = vshrl.u32 %v5053_v20, 16 }
  0xdd   :  { %v4943_v37 = vpop.permute.xlu1 %1566  ;;  %v2141_v17 = vpop.permute.xlu0 %2140  ;;  %v1237_v26 = vsel %vm4185_vm5, %v1232_v3, %v4963_v35  ;;  %v1247_v55 = vsel %vm4185_vm5, %v1242_v2, %v1246_v40  ;;  %v5060_v35 = vld [vmem:[%s6806_s0 + $0xe8] sm:$0xf]  ;;  %v1310_v2 = vrot.slane %v1309_v32, 4 }
  0xde   :  { %v2693_v18 = vsel %vm2683_vm14, %v2628_v28, %v2141_v17  ;;  %v521_v28 = vshll.u32 %v5005_v63, 16  ;;  %v5028_v17 = vcombine.low %v1108_v44, %v1111_v60  ;;  %v5078_v44 = vcombine.low %v1237_v26, %v1247_v55 }
  0xdf   :  { %2018 = vrot.lane.b32.xlu1 %v4931_v7, %s4077_s26  ;;  %1946 = vrot.lane.b32.xlu0 %v4855_v8, %s4076_s21  ;;  %v551_v60 = vshll.u32 %v5060_v35, 16  ;;  %v555_v47 = vshrl.u32 %v5060_v35, 16  ;;  %v544_v23 = vrot.slane %v542_v50, 4 }
  0xe0   :  { %3918 = vmatprep.mubr.msk.bf16.mxu0 %vm2791_vm15, %v2693_v18  ;;  %v531_v18 = vshrl.u32 %v5014_v24, 16  ;;  %v523_v19 = vrot.slane %v521_v28, 5  ;;  %v537_v28 = vshll.u32 %v5072_v61, 16 }
  0xe1   :  { %v4961_v53 = vpop.permute.xlu1 %1726  ;;  %v2143_v13 = vpop.permute.xlu0 %2142  ;;  %v557_v32 = vrot.slane %v555_v47, 4 }
  0xe2   :  { %v2695_v8 = vsel %vm2683_vm14, %v2630_v34, %v2143_v13  ;;  %v3667_v34 = vrot.slane %v4914_v41, 9  ;;  %v1299_v13 = vor.u32 %v1298_v15, %v1295_v6  ;;  %v1282_v41 = vrot.slane %v1280_v10, 4 }
  0xe3   :  { %2088 = vrot.lane.b32.xlu1 %v4955_v14, %s4078_s30  ;;  %2016 = vrot.lane.b32.xlu0 %v4868_v45, %s4077_s26  ;;  %v533_v54 = vrot.slane %v531_v18, 4  ;;  %v524_v6 = vor.u32 %v523_v19, %v520_v36  ;;  %v547_v18 = vrot.slane %v545_v58, 5  ;;  %v2217_v19 = vsel %vm2196_vm7, %v4402_v27, %v4909_v22 }
  0xe4   :  { %3919 = vmatmul.mubr.msk.bf16.gmra.mxu0 %vm2791_vm15, %v2695_v8  ;;  %v1312_v8 = vshll.u32 %v5034_v57, 16  ;;  %v1300_v3 = vrot.slane %v1299_v13, 4  ;;  %v1281_v15 = vsel %vm4160_vm2, %v3667_v34, %v1280_v10  ;;  %v1284_v11 = vsel %vm4160_vm2, %v1282_v41, %v1283_v43  ;;  %v5095_v13 = vld [vmem:[%s6806_s0 + $0xec] sm:$0x1] }
  0xe5   :  { %v4988_v29 = vpop.permute.xlu1 %1796  ;;  %v4990_v52 = vpop.permute.xlu0 %1724  ;;  %v534_v42 = vor.u32 %v533_v54, %v5067_v49  ;;  %v5099_v10 = vcombine.low %v1281_v15, %v1284_v11  ;;  %v525_v36 = vrot.slane %v524_v6, 4  ;;  %v2220_v41 = vsel %vm2196_vm7, %v4430_v38, %v4943_v37 }
  0xe6   :  { %v1314_v40 = vrot.slane %v1312_v8, 5  ;;  %v1305_v34 = vsel %vm4185_vm5, %v1300_v3, %v5020_v16  ;;  %v539_v16 = vrot.slane %v537_v28, 5  ;;  %v2307_v54 = vsel %vm2293_vm8, %v2217_v19, %v4990_v52 }
  0xe7   :  { %1580 = vrot.lane.b32.xlu1 %v4888_v12, %s4074_s17  ;;  %2086 = vrot.lane.b32.xlu0 %v4888_v12, %s4078_s30  ;;  %v535_v43 = vrot.slane %v534_v42, 4  ;;  %v548_v50 = vor.u32 %v547_v18, %v544_v23  ;;  %v561_v58 = vshll.u32 %v5095_v13, 16  ;;  %v3773_v3 = vcombine.low %v4974_v46, %v4983_v39 }
  0xe8   :  { %v1315_v8 = vsel %vm4185_vm5, %v1310_v2, %v1314_v40  ;;  %v1121_v15 = vrot.slane %v5060_v35, 5  ;;  %v1348_v18 = vrot.slane %v4983_v39, 5 }
  0xe9   :  { %v5016_v62 = vpop.permute.xlu1 %1866  ;;  %v5018_v12 = vpop.permute.xlu0 %1794  ;;  %v3775_v52 = vcombine.low %v1305_v34, %v1315_v8  ;;  %v549_v40 = vrot.slane %v548_v50, 4  ;;  %v563_v6 = vrot.slane %v561_v58, 5  ;;  %v1124_v58 = vrot.slane %v5095_v13, 5 }
  0xea   :  { %v2372_v27 = vsel %vm2358_vm9, %v2307_v54, %v5018_v12  ;;  %v530_v12 = vsel %vm4185_vm5, %v525_v36, %v5067_v49 }
  0xeb   :  { %1582 = vrot.lane.b32.xlu1 %v4955_v14, %s4074_s17  ;;  %2156 = vrot.lane.b32.xlu0 %v4905_v4, %s4079_s10 }
  0xed   :  { %v5042_v0 = vpop.permute.xlu1 %1936  ;;  %v1865_v1 = vpop.permute.xlu0 %1864 }
  0xee   :  { %v2437_v47 = vsel %vm2423_vm10, %v2372_v27, %v1865_v1  ;;  %v5142_v1 = vld [vmem:[%s6806_s0 + $0xf0] sm:$0xf] }
  0xef   :  { %1742 = vrot.lane.b32.xlu1 %v5028_v17, %s4073_s12  ;;  %2158 = vrot.lane.b32.xlu0 %v5028_v17, %s4079_s10  ;;  %v566_v34 = vshrl.u32 %v5142_v1, 16  ;;  %v569_v8 = vshll.u32 %v5142_v1, 16 }
  0xf1   :  { %v5076_v33 = vpop.permute.xlu1 %2006  ;;  %v1935_v5 = vpop.permute.xlu0 %1934 }
  0xf2   :  { %v2502_v2 = vsel %vm2488_vm11, %v2437_v47, %v1935_v5 }
  0xf3   :  { %1812 = vrot.lane.b32.xlu1 %v5040_v25, %s4072_s28  ;;  %1740 = vrot.lane.b32.xlu0 %v4905_v4, %s4073_s12  ;;  %v5097_v4 = vrot.slane %v551_v60, 5  ;;  %v2309_v60 = vsel %vm2293_vm8, %v2220_v41, %v4961_v53  ;;  %v540_v53 = vsel %vm4185_vm5, %v535_v43, %v539_v16  ;;  %v1123_v43 = vrot.slane %v1121_v15, 4 }
  0xf4   :  { %v2374_v49 = vsel %vm2358_vm9, %v2309_v60, %v4988_v29  ;;  %v3719_v36 = vcombine.low %v530_v12, %v540_v53  ;;  %v1114_v60 = vrot.slane %v5014_v24, 5  ;;  %v3651_v12 = vrot.slane %v5005_v63, 9  ;;  %v5217_v63 = vld [vmem:[%s6806_s0 + $0xfc] sm:$0xf] }
  0xf5   :  { %v2077_v26 = vpop.permute.xlu1 %2076  ;;  %v2005_v55 = vpop.permute.xlu0 %2004  ;;  %v558_v37 = vor.u32 %v557_v32, %v5097_v4  ;;  %v554_v41 = vsel %vm4185_vm5, %v549_v40, %v5097_v4  ;;  %v571_v4 = vrot.slane %v569_v8, 5  ;;  %v1125_v24 = vsel %vm4160_vm2, %v1123_v43, %v1124_v58 }
  0xf6   :  { %v2567_v5 = vsel %vm2553_vm12, %v2502_v2, %v2005_v55  ;;  %v2439_v55 = vsel %vm2423_vm10, %v2374_v49, %v5016_v62  ;;  %v1117_v53 = vrot.slane %v5072_v61, 5  ;;  %v5222_v61 = vld [vmem:[%s6806_s0 + $0x100] sm:$0xf] }
  0xf7   :  { %1882 = vrot.lane.b32.xlu1 %v5078_v44, %s4075_s20  ;;  %1810 = vrot.lane.b32.xlu0 %v4931_v7, %s4072_s28  ;;  %v559_v23 = vrot.slane %v558_v37, 4  ;;  %v2504_v29 = vsel %vm2488_vm11, %v2439_v55, %v5042_v0  ;;  %v3652_v0 = vrot.slane %v5053_v20, 9  ;;  %v568_v37 = vrot.slane %v566_v34, 4 }
  0xf8   :  { %v2569_v62 = vsel %vm2553_vm12, %v2504_v29, %v5076_v33  ;;  %v3669_v33 = vrot.slane %v4974_v46, 9  ;;  %v84_v46 = vld [vmem:[%s6806_s0 + $0xf8] sm:$0x1] }
  0xf9   :  { %v5121_v22 = vpop.permute.xlu1 %1568  ;;  %v2075_v38 = vpop.permute.xlu0 %2074  ;;  %v2634_v16 = vsel %vm2618_vm13, %v2569_v62, %v2077_v26  ;;  %v564_v50 = vsel %vm4185_vm5, %v559_v23, %v563_v6  ;;  %v1351_v26 = vrot.slane %v5034_v57, 5  ;;  %v1116_v6 = vrot.slane %v1114_v60, 4 }
  0xfa   :  { %v2632_v11 = vsel %vm2618_vm13, %v2567_v5, %v2075_v38  ;;  %v1350_v38 = vrot.slane %v1348_v18, 4  ;;  %v1349_v57 = vsel %vm4160_vm2, %v3669_v33, %v1348_v18  ;;  %v572_v5 = vor.u32 %v571_v4, %v568_v37 }
  0xfb   :  { %1952 = vrot.lane.b32.xlu1 %v5099_v10, %s4076_s21  ;;  %1880 = vrot.lane.b32.xlu0 %v4955_v14, %s4075_s20  ;;  %v5149_v14 = vld [vmem:[%s6806_s0 + $0xf4] sm:$0xf]  ;;  %v585_v49 = vshll.u32 %v84_v46, 16  ;;  %v1115_v18 = vsel %vm4160_vm2, %v3651_v12, %v1114_v60  ;;  %v599_v62 = vshll.u32 %v5222_v61, 16  ;;  %v1131_v33 = vrot.slane %v84_v46, 5 }
  0xfc   :  { %v579_v39 = vshrl.u32 %v5149_v14, 16  ;;  %v575_v19 = vshll.u32 %v5149_v14, 16  ;;  %v1352_v40 = vsel %vm4160_vm2, %v1350_v38, %v1351_v26  ;;  %v573_v55 = vrot.slane %v572_v5, 4  ;;  %v5254_v60 = vld [vmem:[%s6806_s0 + $0x104] sm:$0x1] }
  0xfd   :  { %v5154_v42 = vpop.permute.xlu1 %1570  ;;  %v2145_v28 = vpop.permute.xlu0 %2144  ;;  %v3777_v23 = vcombine.low %v1349_v57, %v1352_v40  ;;  %v587_v8 = vrot.slane %v585_v49, 5  ;;  %v1128_v29 = vrot.slane %v5149_v14, 5  ;;  %v609_v57 = vshll.u32 %v5254_v60, 16 }
  0xfe   :  { %v2697_v32 = vsel %vm2683_vm14, %v2632_v11, %v2145_v28  ;;  %v577_v47 = vrot.slane %v575_v19, 5  ;;  %v603_v19 = vshrl.u32 %v5222_v61, 16  ;;  %v2223_v5 = vsel %vm2196_vm7, %v4479_v30, %v5121_v22 }
  0xff   :  { %2022 = vrot.lane.b32.xlu1 %v3773_v3, %s4077_s26  ;;  %1950 = vrot.lane.b32.xlu0 %v5028_v17, %s4076_s21  ;;  %v581_v3 = vrot.slane %v579_v39, 4  ;;  %v593_v39 = vshll.u32 %v5217_v63, 16  ;;  %v1130_v58 = vrot.slane %v1128_v29, 4  ;;  %v611_v49 = vrot.slane %v609_v57, 5 }
 0x100   :  { %3922 = vmatprep.mubr.msk.bf16.mxu0 %vm2791_vm15, %v2697_v32  ;;  %v1118_v32 = vsel %vm4160_vm2, %v1116_v6, %v1117_v53  ;;  %v605_v37 = vrot.slane %v603_v19, 4 }
 0x101   :  { %v5177_v17 = vpop.permute.xlu1 %1730  ;;  %v2147_v54 = vpop.permute.xlu0 %2146  ;;  %v3751_v43 = vcombine.low %v1115_v18, %v1118_v32  ;;  %v595_v38 = vrot.slane %v593_v39, 5  ;;  %v1132_v46 = vsel %vm4160_vm2, %v1130_v58, %v1131_v33  ;;  %v5307_v32 = vld [vmem:[%s6806_s0 + $0x108] sm:$0xf] }
 0x102   :  { %v2699_v27 = vsel %vm2683_vm14, %v2634_v16, %v2147_v54  ;;  %v578_v16 = vsel %vm4185_vm5, %v573_v55, %v577_v47 }
 0x103   :  { %2092 = vrot.lane.b32.xlu1 %v3775_v52, %s4078_s30  ;;  %2020 = vrot.lane.b32.xlu0 %v5040_v25, %s4077_s26  ;;  %v5197_v52 = vcombine.low %v554_v41, %v564_v50  ;;  %v1122_v25 = vsel %vm4160_vm2, %v3652_v0, %v1121_v15  ;;  %v582_v15 = vor.u32 %v581_v3, %v577_v47  ;;  %v3653_v50 = vrot.slane %v5142_v1, 9 }
 0x104   :  { %3923 = vmatmul.mubr.msk.bf16.gmra.mxu0 %vm2791_vm15, %v2699_v27 }
 0x105   :  { %v5193_v13 = vpop.permute.xlu1 %1800  ;;  %v5195_v2 = vpop.permute.xlu0 %1728  ;;  %v583_v34 = vrot.slane %v582_v15, 4  ;;  %v1129_v3 = vsel %vm4160_vm2, %v3653_v50, %v1128_v29 }
 0x106   :  { %v2311_v40 = vsel %vm2293_vm8, %v2223_v5, %v5195_v2  ;;  %v5297_v2 = vcombine.low %v5217_v63, %v5222_v61 }
 0x107   :  { %1584 = vrot.lane.b32.xlu1 %v3719_v36, %s4074_s17  ;;  %2090 = vrot.lane.b32.xlu0 %v5078_v44, %s4078_s30  ;;  %v5224_v44 = vcombine.low %v1122_v25, %v1125_v24  ;;  %v590_v36 = vshrl.u32 %v5217_v63, 16  ;;  %v588_v54 = vsel %vm4185_vm5, %v583_v34, %v587_v8 }
 0x108   :  { %v5259_v47 = vcombine.low %v578_v16, %v588_v54 }
 0x109   :  { %v5212_v11 = vpop.permute.xlu1 %1870  ;;  %v1799_v28 = vpop.permute.xlu0 %1798  ;;  %v592_v27 = vrot.slane %v590_v36, 4  ;;  %v5317_v36 = vld [vmem:[%s6806_s0 + $0x10c] sm:$0xf] }
 0x10a   :  { %v2376_v30 = vsel %vm2358_vm9, %v2311_v40, %v1799_v28  ;;  %v623_v54 = vshll.u32 %v5317_v36, 16 }
 0x10b   :  { %1586 = vrot.lane.b32.xlu1 %v5197_v52, %s4074_s17  ;;  %2160 = vrot.lane.b32.xlu0 %v5099_v10, %s4079_s10  ;;  %v5241_v10 = vcombine.low %v5142_v1, %v5149_v14  ;;  %v601_v14 = vrot.slane %v599_v62, 5  ;;  %v5263_v1 = vcombine.low %v5053_v20, %v5060_v35  ;;  %v596_v25 = vor.u32 %v595_v38, %v592_v27 }
 0x10c   :  { %v2226_v20 = vsel %vm2196_vm7, %v4510_v59, %v5154_v42  ;;  %v5280_v35 = vcombine.low %v1129_v3, %v1132_v46  ;;  %v3654_v27 = vrot.slane %v5217_v63, 9 }
 0x10d   :  { %v1941_v41 = vpop.permute.xlu1 %1940  ;;  %v1869_v0 = vpop.permute.xlu0 %1868  ;;  %v606_v24 = vor.u32 %v605_v37, %v601_v14  ;;  %v597_v6 = vrot.slane %v596_v25, 4  ;;  %v2313_v59 = vsel %vm2293_vm8, %v2226_v20, %v5177_v17  ;;  %v1138_v37 = vrot.slane %v5254_v60, 5  ;;  %v90_v25 = vld [vmem:[%s6806_s0 + $0x110] sm:$0x1]  ;;  %v5359_v60 = vld [vmem:[%s6806_s0 + $0x114] sm:$0xf] }
 0x10e   :  { %v2441_v42 = vsel %vm2423_vm10, %v2376_v30, %v1869_v0  ;;  %v614_v0 = vshrl.u32 %v5307_v32, 16  ;;  %v633_v5 = vshll.u32 %v90_v25, 16  ;;  %v638_v40 = vshrl.u32 %v5359_v60, 16 }
 0x10f   :  { %1746 = vrot.lane.b32.xlu1 %v5224_v44, %s4073_s12  ;;  %2162 = vrot.lane.b32.xlu0 %v3777_v23, %s4079_s10  ;;  %v607_v15 = vrot.slane %v606_v24, 4  ;;  %v602_v55 = vsel %vm4185_vm5, %v597_v6, %v601_v14  ;;  %v5364_v24 = vld [vmem:[%s6806_s0 + $0x118] sm:$0xf]  ;;  %v641_v6 = vshll.u32 %v5359_v60, 16 }
 0x111   :  { %v2011_v4 = vpop.permute.xlu1 %2010  ;;  %v1939_v26 = vpop.permute.xlu0 %1938  ;;  %v612_v17 = vsel %vm4185_vm5, %v607_v15, %v611_v49  ;;  %v651_v15 = vshrl.u32 %v5364_v24, 16  ;;  %v647_v49 = vshll.u32 %v5364_v24, 16 }
 0x112   :  { %v2506_v18 = vsel %vm2488_vm11, %v2441_v42, %v1939_v26  ;;  %v635_v42 = vrot.slane %v633_v5, 5 }
 0x113   :  { %1816 = vrot.lane.b32.xlu1 %v5241_v10, %s4072_s28  ;;  %1744 = vrot.lane.b32.xlu0 %v3751_v43, %s4073_s12  ;;  %v617_v43 = vshll.u32 %v5307_v32, 16 }
 0x115   :  { %v2081_v12 = vpop.permute.xlu1 %2080  ;;  %v2009_v53 = vpop.permute.xlu0 %2008  ;;  %v619_v38 = vrot.slane %v617_v43, 5  ;;  %v3655_v43 = vrot.slane %v5307_v32, 9 }
 0x116   :  { %v2571_v28 = vsel %vm2553_vm12, %v2506_v18, %v2009_v53  ;;  %v1142_v18 = vrot.slane %v5317_v36, 5 }
 0x117   :  { %1886 = vrot.lane.b32.xlu1 %v5259_v47, %s4075_s20  ;;  %1814 = vrot.lane.b32.xlu0 %v5263_v1, %s4072_s28 }
 0x119   :  { %v5285_v22 = vpop.permute.xlu1 %1572  ;;  %v2079_v23 = vpop.permute.xlu0 %2078 }
 0x11a   :  { %v2636_v34 = vsel %vm2618_vm13, %v2571_v28, %v2079_v23 }
 0x11b   :  { %1956 = vrot.lane.b32.xlu1 %v5280_v35, %s4076_s21  ;;  %1884 = vrot.lane.b32.xlu0 %v5197_v52, %s4075_s20  ;;  %v2378_v52 = vsel %vm2358_vm9, %v2313_v59, %v5193_v13  ;;  %v5327_v13 = vcombine.low %v602_v55, %v612_v17  ;;  %v640_v17 = vrot.slane %v638_v40, 4  ;;  %v5453_v40 = vld [vmem:[%s6806_s0 + $0x124] sm:$0xf] }
 0x11c   :  { %v2443_v39 = vsel %vm2423_vm10, %v2378_v52, %v5212_v11  ;;  %v1135_v11 = vrot.slane %v5222_v61, 5  ;;  %v616_v61 = vrot.slane %v614_v0, 4  ;;  %v643_v52 = vrot.slane %v641_v6, 5 }
 0x11d   :  { %v5312_v8 = vpop.permute.xlu1 %1574  ;;  %v2149_v29 = vpop.permute.xlu0 %2148  ;;  %v2508_v62 = vsel %vm2488_vm11, %v2443_v39, %v1941_v41  ;;  %v627_v41 = vshrl.u32 %v5317_v36, 16  ;;  %v5389_v39 = vcombine.low %v5307_v32, %v5317_v36 }
 0x11e   :  { %v2701_v19 = vsel %vm2683_vm14, %v2636_v34, %v2149_v29  ;;  %v2573_v16 = vsel %vm2553_vm12, %v2508_v62, %v2011_v4  ;;  %v1137_v14 = vrot.slane %v1135_v11, 4  ;;  %v625_v4 = vrot.slane %v623_v54, 5  ;;  %v5396_v62 = vld [vmem:[%s6806_s0 + $0x11c] sm:$0x1] }
 0x11f   :  { %2026 = vrot.lane.b32.xlu1 %v5297_v2, %s4077_s26  ;;  %1954 = vrot.lane.b32.xlu0 %v5224_v44, %s4076_s21  ;;  %v2638_v50 = vsel %vm2618_vm13, %v2573_v16, %v2081_v12  ;;  %v629_v26 = vrot.slane %v627_v41, 4  ;;  %v620_v63 = vor.u32 %v619_v38, %v616_v61  ;;  %v1136_v57 = vsel %vm4160_vm2, %v3654_v27, %v1135_v11 }
 0x120   :  { %3926 = vmatprep.mubr.msk.bf16.mxu0 %vm2791_vm15, %v2701_v19  ;;  %v1139_v12 = vsel %vm4160_vm2, %v1137_v14, %v1138_v37  ;;  %v649_v34 = vrot.slane %v647_v49, 5  ;;  %v653_v29 = vrot.slane %v651_v15, 4  ;;  %v1144_v16 = vrot.slane %v1142_v18, 4 }
 0x121   :  { %v5337_v58 = vpop.permute.xlu1 %1734  ;;  %v2151_v44 = vpop.permute.xlu0 %2150  ;;  %v630_v53 = vor.u32 %v629_v26, %v625_v4  ;;  %v5380_v30 = vcombine.low %v1136_v57, %v1139_v12  ;;  %v621_v23 = vrot.slane %v620_v63, 4  ;;  %v1145_v11 = vrot.slane %v90_v25, 5 }
 0x122   :  { %v2703_v33 = vsel %vm2683_vm14, %v2638_v50, %v2151_v44  ;;  %v644_v50 = vor.u32 %v643_v52, %v640_v17  ;;  %v654_v36 = vor.u32 %v653_v29, %v649_v34  ;;  %v657_v44 = vshll.u32 %v5396_v62, 16 }
 0x123   :  { %2096 = vrot.lane.b32.xlu1 %v5327_v13, %s4078_s30  ;;  %2024 = vrot.lane.b32.xlu0 %v5241_v10, %s4077_s26  ;;  %v631_v59 = vrot.slane %v630_v53, 4  ;;  %v626_v19 = vsel %vm4185_vm5, %v621_v23, %v625_v4  ;;  %v1143_v27 = vsel %vm4160_vm2, %v3655_v43, %v1142_v18  ;;  %v1146_v32 = vsel %vm4160_vm2, %v1144_v16, %v1145_v11 }
 0x124   :  { %3927 = vmatmul.mubr.msk.bf16.gmra.mxu0 %vm2791_vm15, %v2703_v33  ;;  %v645_v14 = vrot.slane %v644_v50, 4  ;;  %v655_v37 = vrot.slane %v654_v36, 4  ;;  %v659_v4 = vrot.slane %v657_v44, 5  ;;  %v2229_v26 = vsel %vm2196_vm7, %v4583_v51, %v5285_v22  ;;  %v96_v50 = vld [vmem:[%s6806_s0 + $0x128] sm:$0x1] }
 0x125   :  { %v5347_v3 = vpop.permute.xlu1 %1804  ;;  %v1733_v46 = vpop.permute.xlu0 %1732  ;;  %v636_v0 = vsel %vm4185_vm5, %v631_v59, %v635_v42  ;;  %v5422_v25 = vcombine.low %v1143_v27, %v1146_v32  ;;  %v675_v52 = vshrl.u32 %v5453_v40, 16  ;;  %v3656_v43 = vrot.slane %v5359_v60, 9 }
 0x126   :  { %v5406_v33 = vcombine.low %v626_v19, %v636_v0  ;;  %v2315_v63 = vsel %vm2293_vm8, %v2229_v26, %v1733_v46  ;;  %v650_v22 = vsel %vm4185_vm5, %v645_v14, %v649_v34  ;;  %v5442_v46 = vcombine.low %v5359_v60, %v5364_v24 }
 0x127   :  { %1588 = vrot.lane.b32.xlu1 %v5259_v47, %s4074_s17  ;;  %2094 = vrot.lane.b32.xlu0 %v5259_v47, %s4078_s30  ;;  %v1152_v11 = vrot.slane %v5396_v62, 5 }
 0x129   :  { %v5370_v47 = vpop.permute.xlu1 %1874  ;;  %v1803_v20 = vpop.permute.xlu0 %1802 }
 0x12a   :  { %v2380_v57 = vsel %vm2358_vm9, %v2315_v63, %v1803_v20 }
 0x12b   :  { %1590 = vrot.lane.b32.xlu1 %v5327_v13, %s4074_s17  ;;  %2164 = vrot.lane.b32.xlu0 %v5280_v35, %s4079_s10 }
 0x12d   :  { %v1945_v28 = vpop.permute.xlu1 %1944  ;;  %v1873_v55 = vpop.permute.xlu0 %1872 }
 0x12f   :  { %1750 = vrot.lane.b32.xlu1 %v5380_v30, %s4073_s12  ;;  %2166 = vrot.lane.b32.xlu0 %v5380_v30, %s4079_s10 }
 0x131   :  { %v2015_v41 = vpop.permute.xlu1 %2014  ;;  %v1943_v54 = vpop.permute.xlu0 %1942 }
 0x133   :  { %1820 = vrot.lane.b32.xlu1 %v5389_v39, %s4072_s28  ;;  %1748 = vrot.lane.b32.xlu0 %v5280_v35, %s4073_s12  ;;  %v2232_v35 = vsel %vm2196_vm7, %v4640_v56, %v5312_v8  ;;  %v2445_v56 = vsel %vm2423_vm10, %v2380_v57, %v1873_v55  ;;  %v660_v8 = vsel %vm4185_vm5, %v655_v37, %v659_v4 }
 0x134   :  { %v2317_v51 = vsel %vm2293_vm8, %v2232_v35, %v5337_v58  ;;  %v2510_v5 = vsel %vm2488_vm11, %v2445_v56, %v1943_v54  ;;  %v5447_v58 = vld [vmem:[%s6806_s0 + $0x120] sm:$0xf]  ;;  %v5460_v23 = vcombine.low %v650_v22, %v660_v8  ;;  %v677_v54 = vrot.slane %v675_v52, 4 }
 0x135   :  { %v2085_v61 = vpop.permute.xlu1 %2084  ;;  %v2013_v38 = vpop.permute.xlu0 %2012  ;;  %v2382_v6 = vsel %vm2358_vm9, %v2317_v51, %v5347_v3  ;;  %v662_v18 = vshrl.u32 %v5447_v58, 16  ;;  %v665_v55 = vshll.u32 %v5447_v58, 16  ;;  %v1149_v3 = vrot.slane %v5364_v24, 5 }
 0x136   :  { %v2575_v20 = vsel %vm2553_vm12, %v2510_v5, %v2013_v38  ;;  %v2447_v59 = vsel %vm2423_vm10, %v2382_v6, %v5370_v47  ;;  %v671_v47 = vshll.u32 %v5453_v40, 16  ;;  %v5504_v38 = vld [vmem:[%s6806_s0 + $0x12c] sm:$0xf]  ;;  %v1156_v51 = vrot.slane %v5453_v40, 5 }
 0x137   :  { %1890 = vrot.lane.b32.xlu1 %v5406_v33, %s4075_s20  ;;  %1818 = vrot.lane.b32.xlu0 %v5297_v2, %s4072_s28  ;;  %v2512_v17 = vsel %vm2488_vm11, %v2447_v59, %v1945_v28  ;;  %v667_v16 = vrot.slane %v665_v55, 5  ;;  %v1151_v24 = vrot.slane %v1149_v3, 4  ;;  %v1150_v62 = vsel %vm4160_vm2, %v3656_v43, %v1149_v3 }
 0x138   :  { %v2577_v34 = vsel %vm2553_vm12, %v2512_v17, %v2015_v41  ;;  %v673_v41 = vrot.slane %v671_v47, 5  ;;  %v686_v57 = vshrl.u32 %v5504_v38, 16  ;;  %v1159_v55 = vrot.slane %v96_v50, 5  ;;  %v5542_v47 = vld [vmem:[%s6806_s0 + $0x134] sm:$0x1] }
 0x139   :  { %v5426_v12 = vpop.permute.xlu1 %1576  ;;  %v2083_v53 = vpop.permute.xlu0 %2082  ;;  %v2642_v29 = vsel %vm2618_vm13, %v2577_v34, %v2085_v61  ;;  %v1153_v27 = vsel %vm4160_vm2, %v1151_v24, %v1152_v11  ;;  %v681_v61 = vshll.u32 %v96_v50, 16  ;;  %v705_v43 = vshll.u32 %v5542_v47, 16 }
 0x13a   :  { %v678_v32 = vor.u32 %v677_v54, %v673_v41  ;;  %v5513_v4 = vcombine.low %v1150_v62, %v1153_v27  ;;  %v688_v59 = vrot.slane %v686_v57, 4  ;;  %v2235_v24 = vsel %vm2196_vm7, %v4727_v31, %v5426_v12  ;;  %v5570_v54 = vld [vmem:[%s6806_s0 + $0x138] sm:$0xf]  ;;  %v5579_v62 = vld [vmem:[%s6806_s0 + $0x13c] sm:$0xf] }
 0x13b   :  { %1960 = vrot.lane.b32.xlu1 %v5422_v25, %s4076_s21  ;;  %1888 = vrot.lane.b32.xlu0 %v5327_v13, %s4075_s20  ;;  %v2640_v13 = vsel %vm2618_vm13, %v2575_v20, %v2083_v53  ;;  %v683_v63 = vrot.slane %v681_v61, 5  ;;  %v689_v53 = vshll.u32 %v5504_v38, 16  ;;  %v5528_v20 = vcombine.low %v5447_v58, %v5453_v40 }
 0x13c   :  { %v679_v35 = vrot.slane %v678_v32, 4  ;;  %v707_v50 = vrot.slane %v705_v43, 5  ;;  %v710_v61 = vshrl.u32 %v5570_v54, 16  ;;  %v723_v57 = vshrl.u32 %v5579_v62, 16  ;;  %v5644_v43 = vld [vmem:[%s6808_s2] ss:$0 sm:$0xff] }
 0x13d   :  { %v5458_v15 = vpop.permute.xlu1 %1578  ;;  %v2153_v49 = vpop.permute.xlu0 %2152 }
 0x13e   :  { %v2705_v42 = vsel %vm2683_vm14, %v2640_v13, %v2153_v49  ;;  %v684_v13 = vsel %vm4185_vm5, %v679_v35, %v683_v63  ;;  %v3657_v49 = vrot.slane %v5447_v58, 9 }
 0x13f   :  { %2030 = vrot.lane.b32.xlu1 %v5442_v46, %s4077_s26  ;;  %1958 = vrot.lane.b32.xlu0 %v5380_v30, %s4076_s21  ;;  %v664_v30 = vrot.slane %v662_v18, 4  ;;  %v1158_v18 = vrot.slane %v1156_v51, 4 }
 0x140   :  { %3930 = vmatprep.mubr.msk.bf16.mxu0 %vm2791_vm15, %v2705_v42  ;;  %v691_v42 = vrot.slane %v689_v53, 5  ;;  %v719_v53 = vshll.u32 %v5579_v62, 16 }
 0x141   :  { %v5478_v19 = vpop.permute.xlu1 %1738  ;;  %v2155_v28 = vpop.permute.xlu0 %2154  ;;  %v668_v44 = vor.u32 %v667_v16, %v664_v30 }
 0x142   :  { %v2707_v0 = vsel %vm2683_vm14, %v2642_v29, %v2155_v28  ;;  %v692_v34 = vor.u32 %v691_v42, %v688_v59  ;;  %v1157_v29 = vsel %vm4160_vm2, %v3657_v49, %v1156_v51  ;;  %v1160_v28 = vsel %vm4160_vm2, %v1158_v18, %v1159_v55 }
 0x143   :  { %2100 = vrot.lane.b32.xlu1 %v5460_v23, %s4078_s30  ;;  %2028 = vrot.lane.b32.xlu0 %v5389_v39, %s4077_s26  ;;  %v669_v26 = vrot.slane %v668_v44, 4  ;;  %v5565_v11 = vcombine.low %v1157_v29, %v1160_v28  ;;  %v712_v49 = vrot.slane %v710_v61, 4  ;;  %v725_v18 = vrot.slane %v723_v57, 4 }
 0x144   :  { %3931 = vmatmul.mubr.msk.bf16.gmra.mxu0 %vm2791_vm15, %v2707_v0  ;;  %v1170_v57 = vrot.slane %v5579_v62, 5 }
 0x145   :  { %v5491_v60 = vpop.permute.xlu1 %1808  ;;  %v1737_v36 = vpop.permute.xlu0 %1736  ;;  %v674_v6 = vsel %vm4185_vm5, %v669_v26, %v673_v41  ;;  %v693_v41 = vrot.slane %v692_v34, 4  ;;  %v1166_v34 = vrot.slane %v5542_v47, 5 }
 0x146   :  { %v5548_v58 = vcombine.low %v674_v6, %v684_v13  ;;  %v2319_v31 = vsel %vm2293_vm8, %v2235_v24, %v1737_v36  ;;  %v713_v36 = vshll.u32 %v5570_v54, 16 }
 0x147   :  { %1592 = vrot.lane.b32.xlu1 %v5406_v33, %s4074_s17  ;;  %2098 = vrot.lane.b32.xlu0 %v5406_v33, %s4078_s30  ;;  %v5511_v33 = vld [vmem:[%s6806_s0 + $0x130] sm:$0xf] }
 0x148   :  { %v699_v56 = vshrl.u32 %v5511_v33, 16  ;;  %v695_v22 = vshll.u32 %v5511_v33, 16  ;;  %v715_v59 = vrot.slane %v713_v36, 5 }
 0x149   :  { %v5506_v14 = vpop.permute.xlu1 %1878  ;;  %v1807_v37 = vpop.permute.xlu0 %1806 }
 0x14a   :  { %v697_v40 = vrot.slane %v695_v22, 5  ;;  %v701_v17 = vrot.slane %v699_v56, 4  ;;  %v716_v29 = vor.u32 %v715_v59, %v712_v49 }
 0x14b   :  { %1594 = vrot.lane.b32.xlu1 %v5460_v23, %s4074_s17  ;;  %2168 = vrot.lane.b32.xlu0 %v5422_v25, %s4079_s10 }
 0x14c   :  { %v702_v0 = vor.u32 %v701_v17, %v697_v40  ;;  %v3658_v17 = vrot.slane %v5504_v38, 9 }
 0x14d   :  { %v5524_v8 = vpop.permute.xlu1 %1948  ;;  %v1877_v5 = vpop.permute.xlu0 %1876 }
 0x14e   :  { %v703_v12 = vrot.slane %v702_v0, 4 }
 0x14f   :  { %1754 = vrot.lane.b32.xlu1 %v5513_v4, %s4073_s12  ;;  %2170 = vrot.lane.b32.xlu0 %v5513_v4, %s4079_s10 }
 0x150   :  { %v708_v63 = vsel %vm4185_vm5, %v703_v12, %v707_v50 }
 0x151   :  { %v2019_v3 = vpop.permute.xlu1 %2018  ;;  %v1947_v52 = vpop.permute.xlu0 %1946 }
 0x153   :  { %1824 = vrot.lane.b32.xlu1 %v5528_v20, %s4072_s28  ;;  %1752 = vrot.lane.b32.xlu0 %v5422_v25, %s4073_s12  ;;  %v2238_v25 = vsel %vm2196_vm7, %v4780_v9, %v5458_v15  ;;  %v2384_v9 = vsel %vm2358_vm9, %v2319_v31, %v1807_v37  ;;  %v5593_v37 = vcombine.low %v5504_v38, %v5511_v33 }
 0x154   :  { %v2321_v27 = vsel %vm2293_vm8, %v2238_v25, %v5478_v19  ;;  %v2449_v32 = vsel %vm2423_vm10, %v2384_v9, %v1877_v5  ;;  %v698_v19 = vsel %vm4185_vm5, %v693_v41, %v697_v40  ;;  %v1163_v5 = vrot.slane %v5511_v33, 5 }
 0x155   :  { %v2089_v30 = vpop.permute.xlu1 %2088  ;;  %v2017_v16 = vpop.permute.xlu0 %2016  ;;  %v2514_v26 = vsel %vm2488_vm11, %v2449_v32, %v1947_v52  ;;  %v2386_v51 = vsel %vm2358_vm9, %v2321_v27, %v5491_v60  ;;  %v5617_v60 = vcombine.low %v698_v19, %v708_v63  ;;  %v717_v41 = vrot.slane %v716_v29, 4  ;;  %v5667_v27 = vld [vmem:[%s6806_s0 + $0x148] sm:$0xf] }
 0x156   :  { %v2579_v35 = vsel %vm2553_vm12, %v2514_v26, %v2017_v16  ;;  %v2451_v6 = vsel %vm2423_vm10, %v2386_v51, %v5506_v14  ;;  %v5621_v14 = vrot.slane %v719_v53, 5  ;;  %v1164_v24 = vsel %vm4160_vm2, %v3658_v17, %v1163_v5 }
 0x157   :  { %1894 = vrot.lane.b32.xlu1 %v5548_v58, %s4075_s20  ;;  %1822 = vrot.lane.b32.xlu0 %v5442_v46, %s4072_s28  ;;  %v2516_v42 = vsel %vm2488_vm11, %v2451_v6, %v5524_v8 }
 0x158   :  { %v2581_v33 = vsel %vm2553_vm12, %v2516_v42, %v2019_v3  ;;  %v1165_v3 = vrot.slane %v1163_v5, 4  ;;  %v726_v38 = vor.u32 %v725_v18, %v5621_v14  ;;  %v722_v63 = vsel %vm4185_vm5, %v717_v41, %v5621_v14 }
 0x159   :  { %v5574_v15 = vpop.permute.xlu1 %1580  ;;  %v2087_v44 = vpop.permute.xlu0 %2086  ;;  %v2646_v55 = vsel %vm2618_vm13, %v2581_v33, %v2089_v30  ;;  %v3659_v14 = vrot.slane %v5570_v54, 9  ;;  %v1172_v18 = vrot.slane %v1170_v57, 4 }
 0x15a   :  { %v1167_v25 = vsel %vm4160_vm2, %v1165_v3, %v1166_v34  ;;  %v727_v50 = vrot.slane %v726_v38, 4  ;;  %v5716_v38 = vld [vmem:[%s6806_s0 + $0x14c] sm:$0x1] }
 0x15b   :  { %1964 = vrot.lane.b32.xlu1 %v5565_v11, %s4076_s21  ;;  %1892 = vrot.lane.b32.xlu0 %v5460_v23, %s4075_s20  ;;  %v2644_v23 = vsel %vm2618_vm13, %v2579_v35, %v2087_v44  ;;  %v5662_v44 = vld [vmem:[%s6806_s0 + $0x144] sm:$0xf]  ;;  %v5674_v36 = vcombine.low %v1164_v24, %v1167_v25  ;;  %v5679_v35 = vcombine.low %v5570_v54, %v5579_v62  ;;  %v743_v62 = vshll.u32 %v5667_v27, 16 }
 0x15c   :  { %v734_v51 = vshrl.u32 %v5662_v44, 16  ;;  %v1171_v25 = vsel %vm4160_vm2, %v3659_v14, %v1170_v57 }
 0x15d   :  { %v5605_v56 = vpop.permute.xlu1 %1582  ;;  %v2157_v22 = vpop.permute.xlu0 %2156  ;;  %v745_v3 = vrot.slane %v743_v62, 5  ;;  %v5775_v62 = vld [vmem:[%s6806_s0 + $0x154] sm:$0xf] }
 0x15e   :  { %v2709_v13 = vsel %vm2683_vm14, %v2644_v23, %v2157_v22  ;;  %v737_v23 = vshll.u32 %v5662_v44, 16  ;;  %v747_v22 = vshrl.u32 %v5667_v27, 16 }
 0x15f   :  { %2034 = vrot.lane.b32.xlu1 %v5593_v37, %s4077_s26  ;;  %1962 = vrot.lane.b32.xlu0 %v5513_v4, %s4076_s21  ;;  %v5630_v4 = vld [vmem:[%s6806_s0 + $0x140] sm:$0x1] }
 0x160   :  { %3934 = vmatprep.mubr.msk.bf16.mxu0 %vm2791_vm15, %v2709_v13  ;;  %v729_v0 = vshll.u32 %v5630_v4, 16  ;;  %v739_v17 = vrot.slane %v737_v23, 5 }
 0x161   :  { %v5624_v40 = vpop.permute.xlu1 %1742  ;;  %v2159_v8 = vpop.permute.xlu0 %2158 }
 0x162   :  { %v2711_v52 = vsel %vm2683_vm14, %v2646_v55, %v2159_v8  ;;  %v731_v9 = vrot.slane %v729_v0, 5  ;;  %v1173_v55 = vrot.slane %v5630_v4, 5  ;;  %v736_v8 = vrot.slane %v734_v51, 4 }
 0x163   :  { %2104 = vrot.lane.b32.xlu1 %v5617_v60, %s4078_s30  ;;  %2032 = vrot.lane.b32.xlu0 %v5528_v20, %s4077_s26 }
 0x164   :  { %v3912_v28 = vpop.f32.mrf.mxu0  ;;  %3935 = vmatmul.mubr.msk.bf16.gmra.mxu0 %vm2791_vm15, %v2711_v52  ;;  %v732_v13 = vsel %vm4185_vm5, %v727_v50, %v731_v9  ;;  %v749_v52 = vrot.slane %v747_v22, 4  ;;  %v753_v9 = vshll.u32 %v5716_v38, 16 }
 0x165   :  { %v5646_v47 = vpop.permute.xlu1 %1812  ;;  %v5648_v30 = vpop.permute.xlu0 %1740  ;;  %v2903_v31 = vadd.f32 %v3912_v28, %v5644_v43  ;;  %v5726_v24 = vcombine.low %v722_v63, %v732_v13  ;;  %v2244_v63 = vsel %vm2196_vm7, %v4931_v7, %v5605_v56 }
 0x166   :  { %v2894_v16 = vpop.f32.mrf.mxu0  ;;  %v750_v50 = vor.u32 %v749_v52, %v745_v3  ;;  %v755_v22 = vrot.slane %v753_v9, 5 }
 0x167   :  { %1596 = vrot.lane.b32.xlu1 %v5548_v58, %s4074_s17  ;;  %2102 = vrot.lane.b32.xlu0 %v5548_v58, %s4078_s30  ;;  %v2895_v26 = vadd.f32 %v5644_v43, %v2894_v16  ;;  %v3215_v5 = vmul.f32 0.1, %v2903_v31  ;;  %vm3151_vm0 = vcmp.gt.f32.partialorder %v2903_v31, 0.0 }
 0x168   :  { %v3913_v12 = vpop.f32.mrf.mxu0  ;;  %v751_v23 = vrot.slane %v750_v50, 4 }
 0x169   :  { %v2906_v32 = vadd.f32 %v3913_v12, %v5644_v43  ;;  %v5670_v61 = vpop.permute.xlu1 %1882  ;;  %v5672_v58 = vpop.permute.xlu0 %1810  ;;  %v3213_v33 = vmul.f32 0.1, %v2895_v26  ;;  %vm3149_vm4 = vcmp.gt.f32.partialorder %v2895_v26, 0.0  ;;  %v5705_v34 = vsel %vm3151_vm0, %v2903_v31, %v3215_v5 }
 0x16a   :  { %v2897_v19 = vpop.f32.mrf.mxu0  ;;  %6823 = vst [vmem:[#allocation5_spill] sm:$0xff] %v5705_v34  ;;  %v1174_v31 = vsel %vm4160_vm2, %v1172_v18, %v1173_v55  ;;  %v740_v12 = vor.u32 %v739_v17, %v736_v8 }
 0x16b   :  { %v2898_v53 = vadd.f32 %v5644_v43, %v2897_v19  ;;  %1598 = vrot.lane.b32.xlu1 %v5617_v60, %s4074_s17  ;;  %2172 = vrot.lane.b32.xlu0 %v5565_v11, %s4079_s10  ;;  %v3216_v6 = vmul.f32 0.1, %v2906_v32  ;;  %vm3152_vm1 = vcmp.gt.f32.partialorder %v2906_v32, 0.0  ;;  %v5720_v16 = vsel %vm3149_vm4, %v2895_v26, %v3213_v33 }
 0x16c   :  { %6826 = vst [vmem:[#allocation8_spill] sm:$0xff] %v5720_v16  ;;  %v2241_v19 = vsel %vm2196_vm7, %v4868_v45, %v5574_v15  ;;  %v5750_v57 = vcombine.low %v1171_v25, %v1174_v31  ;;  %v741_v51 = vrot.slane %v740_v12, 4  ;;  %v1177_v33 = vrot.slane %v5667_v27, 5 }
 0x16d   :  { %vm3150_vm3 = vcmp.gt.f32.partialorder %v2898_v53, 0.0  ;;  %v3214_v49 = vmul.f32 0.1, %v2898_v53  ;;  %v5696_v59 = vpop.permute.xlu1 %1952  ;;  %v1881_v42 = vpop.permute.xlu0 %1880  ;;  %v5708_v29 = vsel %vm3152_vm1, %v2906_v32, %v3216_v6  ;;  %v2325_v6 = vsel %vm2293_vm8, %v2244_v63, %v5624_v40 }
 0x16e   :  { %6824 = vst [vmem:[#allocation6_spill] sm:$0xff] %v5708_v29  ;;  %v767_v25 = vshll.u32 %v5775_v62, 16 }
 0x16f   :  { %1758 = vrot.lane.b32.xlu1 %v5674_v36, %s4073_s12  ;;  %2174 = vrot.lane.b32.xlu0 %v5674_v36, %s4079_s10  ;;  %v5711_v54 = vsel %vm3150_vm3, %v2898_v53, %v3214_v49  ;;  %v2323_v53 = vsel %vm2293_vm8, %v2241_v19, %v5648_v30  ;;  %v746_v49 = vsel %vm4185_vm5, %v741_v51, %v745_v3 }
 0x170   :  { %6825 = vst [vmem:[#allocation7_spill] sm:$0xff] %v5711_v54  ;;  %v2388_v45 = vsel %vm2358_vm9, %v2323_v53, %v5672_v58  ;;  %v5770_v58 = vcombine.low %v5662_v44, %v5667_v27 }
 0x171   :  { %v2023_v4 = vpop.permute.xlu1 %2022  ;;  %v1951_v28 = vpop.permute.xlu0 %1950  ;;  %v2453_v13 = vsel %vm2423_vm10, %v2388_v45, %v1881_v42  ;;  %v756_v42 = vsel %vm4185_vm5, %v751_v23, %v755_v22 }
 0x172   :  { %v2518_v30 = vsel %vm2488_vm11, %v2453_v13, %v1951_v28  ;;  %v771_v28 = vshrl.u32 %v5775_v62, 16  ;;  %v5840_v13 = vld [vmem:[%s6806_s0 + $0x15c] sm:$0xf] }
 0x173   :  { %1828 = vrot.lane.b32.xlu1 %v5679_v35, %s4072_s28  ;;  %1756 = vrot.lane.b32.xlu0 %v5565_v11, %s4073_s12  ;;  %v5738_v11 = vld [vmem:[%s6806_s0 + $0x150] sm:$0xf] }
 0x174   :  { %v758_v56 = vshrl.u32 %v5738_v11, 16  ;;  %v761_v5 = vshll.u32 %v5738_v11, 16  ;;  %v773_v53 = vrot.slane %v771_v28, 4  ;;  %v782_v28 = vshrl.u32 %v5840_v13, 16 }
 0x175   :  { %v2093_v32 = vpop.permute.xlu1 %2092  ;;  %v2021_v26 = vpop.permute.xlu0 %2020 }
 0x176   :  { %v2583_v40 = vsel %vm2553_vm12, %v2518_v30, %v2021_v26  ;;  %v760_v8 = vrot.slane %v758_v56, 4  ;;  %v763_v17 = vrot.slane %v761_v5, 5  ;;  %v1180_v26 = vrot.slane %v5716_v38, 5 }
 0x177   :  { %1898 = vrot.lane.b32.xlu1 %v5726_v24, %s4075_s20  ;;  %1826 = vrot.lane.b32.xlu0 %v5593_v37, %s4072_s28 }
 0x178   :  { %v764_v19 = vor.u32 %v763_v17, %v760_v8  ;;  %v5859_v8 = vld [vmem:[%s6806_s0 + $0x160] sm:$0xf] }
 0x179   :  { %v5756_v15 = vpop.permute.xlu1 %1584  ;;  %v2091_v7 = vpop.permute.xlu0 %2090 }
 0x17a   :  { %v2648_v14 = vsel %vm2618_vm13, %v2583_v40, %v2091_v7  ;;  %v765_v45 = vrot.slane %v764_v19, 4 }
 0x17b   :  { %1968 = vrot.lane.b32.xlu1 %v5750_v57, %s4076_s21  ;;  %1896 = vrot.lane.b32.xlu0 %v5617_v60, %s4075_s20  ;;  %v2390_v60 = vsel %vm2358_vm9, %v2325_v6, %v5646_v47  ;;  %v5799_v47 = vcombine.low %v746_v49, %v756_v42  ;;  %v5846_v49 = vcombine.low %v5738_v11, %v5775_v62 }
 0x17c   :  { %v2455_v52 = vsel %vm2423_vm10, %v2390_v60, %v5670_v61  ;;  %v3660_v61 = vrot.slane %v5662_v44, 9 }
 0x17d   :  { %v5786_v18 = vpop.permute.xlu1 %1586  ;;  %v2161_v55 = vpop.permute.xlu0 %2160  ;;  %v2520_v27 = vsel %vm2488_vm11, %v2455_v52, %v5696_v59  ;;  %v1179_v59 = vrot.slane %v1177_v33, 4 }
 0x17e   :  { %v2713_v3 = vsel %vm2683_vm14, %v2648_v14, %v2161_v55  ;;  %v2585_v31 = vsel %vm2553_vm12, %v2520_v27, %v2023_v4  ;;  %v5814_v4 = vrot.slane %v767_v25, 5  ;;  %v1178_v38 = vsel %vm4160_vm2, %v3660_v61, %v1177_v33 }
 0x17f   :  { %2038 = vrot.lane.b32.xlu1 %v5770_v58, %s4077_s26  ;;  %1966 = vrot.lane.b32.xlu0 %v5674_v36, %s4076_s21  ;;  %v2650_v12 = vsel %vm2618_vm13, %v2585_v31, %v2093_v32  ;;  %v5812_v36 = vld [vmem:[%s6806_s0 + $0x158] sm:$0x1]  ;;  %v1181_v22 = vsel %vm4160_vm2, %v1179_v59, %v1180_v26  ;;  %v785_v61 = vshll.u32 %v5840_v13, 16 }
 0x180   :  { %3938 = vmatprep.mubr.msk.bf16.mxu0 %vm2791_vm15, %v2713_v3  ;;  %v777_v7 = vshll.u32 %v5812_v36, 16  ;;  %v774_v5 = vor.u32 %v773_v53, %v5814_v4  ;;  %v5842_v40 = vcombine.low %v1178_v38, %v1181_v22  ;;  %v1184_v3 = vrot.slane %v5775_v62, 5 }
 0x181   :  { %v5805_v50 = vpop.permute.xlu1 %1746  ;;  %v2163_v9 = vpop.permute.xlu0 %2162  ;;  %v791_v62 = vshll.u32 %v5859_v8, 16  ;;  %v3661_v53 = vrot.slane %v5738_v11, 9  ;;  %v784_v22 = vrot.slane %v782_v28, 4 }
 0x182   :  { %v2715_v63 = vsel %vm2683_vm14, %v2650_v12, %v2163_v9  ;;  %v779_v55 = vrot.slane %v777_v7, 5  ;;  %v775_v52 = vrot.slane %v774_v5, 4  ;;  %v795_v12 = vshrl.u32 %v5859_v8, 16 }
 0x183   :  { %2108 = vrot.lane.b32.xlu1 %v5799_v47, %s4078_s30  ;;  %2036 = vrot.lane.b32.xlu0 %v5679_v35, %s4077_s26  ;;  %v793_v11 = vrot.slane %v791_v62, 5  ;;  %v1185_v28 = vsel %vm4160_vm2, %v3661_v53, %v1184_v3 }
 0x184   :  { %v3916_v44 = vpop.f32.mrf.mxu0  ;;  %3939 = vmatmul.mubr.msk.bf16.gmra.mxu0 %vm2791_vm15, %v2715_v63  ;;  %v797_v5 = vrot.slane %v795_v12, 4 }
 0x185   :  { %v2919_v32 = vadd.f32 %v3916_v44, %v5644_v43  ;;  %v5824_v51 = vpop.permute.xlu1 %1816  ;;  %v5826_v23 = vpop.permute.xlu0 %1744  ;;  %v1186_v44 = vrot.slane %v1184_v3, 4 }
 0x186   :  { %v2910_v56 = vpop.f32.mrf.mxu0 }
 0x187   :  { %v2911_v6 = vadd.f32 %v5644_v43, %v2910_v56  ;;  %1600 = vrot.lane.b32.xlu1 %v5726_v24, %s4074_s17  ;;  %2106 = vrot.lane.b32.xlu0 %v5726_v24, %s4078_s30  ;;  %v3219_v42 = vmul.f32 0.1, %v2919_v32  ;;  %v770_v24 = vsel %vm4185_vm5, %v765_v45, %v5814_v4  ;;  %vm3155_vm6 = vcmp.gt.f32.partialorder %v2919_v32, 0.0 }
 0x188   :  { %v3917_v30 = vpop.f32.mrf.mxu0  ;;  %v780_v4 = vsel %vm4185_vm5, %v775_v52, %v779_v55  ;;  %v787_v56 = vrot.slane %v785_v61, 5  ;;  %v5898_v55 = vld [vmem:[%s6806_s0 + $0x164] sm:$0x1] }
 0x189   :  { %v2922_v33 = vadd.f32 %v3917_v30, %v5644_v43  ;;  %v5849_v60 = vpop.permute.xlu1 %1886  ;;  %v5851_v14 = vpop.permute.xlu0 %1814  ;;  %v3217_v25 = vmul.f32 0.1, %v2911_v6  ;;  %vm3153_vm1 = vcmp.gt.f32.partialorder %v2911_v6, 0.0  ;;  %v5874_v19 = vsel %vm3155_vm6, %v2919_v32, %v3219_v42 }
 0x18a   :  { %v2913_v17 = vpop.f32.mrf.mxu0  ;;  %v1187_v32 = vrot.slane %v5812_v36, 5  ;;  %v4047_v36 = vld [vmem:[%s6806_s0 + $0xd8] sm:$0xf]  ;;  %v5910_v52 = vcombine.low %v770_v24, %v780_v4  ;;  %v801_v61 = vshll.u32 %v5898_v55, 16 }
 0x18b   :  { %vm3156_vm0 = vcmp.gt.f32.partialorder %v2922_v33, 0.0  ;;  %v3220_v27 = vmul.f32 0.1, %v2922_v33  ;;  %v2914_v31 = vadd.f32 %v5644_v43, %v2913_v17  ;;  %1602 = vrot.lane.b32.xlu1 %v5799_v47, %s4074_s17  ;;  %2176 = vrot.lane.b32.xlu0 %v5750_v57, %s4079_s10  ;;  %v5889_v45 = vsel %vm3153_vm1, %v2911_v6, %v3217_v25  ;;  %v4048_v6 = vld [vmem:[%s6806_s0 + $0xdc] sm:$0xf] }
 0x18c   :  { %6827 = vst [vmem:[#allocation9_spill] sm:$0xff] %v5889_v45  ;;  %v3687_v17 = vcombine.low %v4047_v36, %v4048_v6  ;;  %v1188_v25 = vsel %vm4160_vm2, %v1186_v44, %v1187_v32  ;;  %v803_v44 = vrot.slane %v801_v61, 5 }
 0x18d   :  { %vm3154_vm3 = vcmp.gt.f32.partialorder %v2914_v31, 0.0  ;;  %v3218_v9 = vmul.f32 0.1, %v2914_v31  ;;  %v5871_v59 = vpop.permute.xlu1 %1956  ;;  %v1885_v26 = vpop.permute.xlu0 %1884  ;;  %v5876_v63 = vsel %vm3156_vm0, %v2922_v33, %v3220_v27  ;;  %v788_v27 = vor.u32 %v787_v56, %v784_v22 }
 0x18e   :  { %v5926_v24 = vcombine.low %v1185_v28, %v1188_v25 }
 0x18f   :  { %1762 = vrot.lane.b32.xlu1 %v5842_v40, %s4073_s12  ;;  %2178 = vrot.lane.b32.xlu0 %v5842_v40, %s4079_s10  ;;  %v5891_v7 = vsel %vm3154_vm3, %v2914_v31, %v3218_v9  ;;  %v798_v31 = vor.u32 %v797_v5, %v793_v11  ;;  %v2247_v9 = vsel %vm2196_vm7, %v3687_v17, %v5756_v15  ;;  %v789_v4 = vrot.slane %v788_v27, 4 }
 0x190   :  { %6828 = vst [vmem:[#allocation10_spill] sm:$0xff] %v5891_v7  ;;  %v2327_v3 = vsel %vm2293_vm8, %v2247_v9, %v5826_v23  ;;  %v5944_v23 = vcombine.low %v5840_v13, %v5859_v8 }
 0x191   :  { %v2027_v42 = vpop.permute.xlu1 %2026  ;;  %v1955_v33 = vpop.permute.xlu0 %1954  ;;  %v799_v53 = vrot.slane %v798_v31, 4  ;;  %v2392_v15 = vsel %vm2358_vm9, %v2327_v3, %v5851_v14  ;;  %v794_v5 = vsel %vm4185_vm5, %v789_v4, %v793_v11  ;;  %v5964_v11 = vld [vmem:[%s6806_s0 + $0x16c] sm:$0xf] }
 0x192   :  { %v2457_v22 = vsel %vm2423_vm10, %v2392_v15, %v1885_v26  ;;  %v5954_v26 = vld [vmem:[%s6806_s0 + $0x168] sm:$0xf] }
 0x193   :  { %1832 = vrot.lane.b32.xlu1 %v5846_v49, %s4072_s28  ;;  %1760 = vrot.lane.b32.xlu0 %v5750_v57, %s4073_s12  ;;  %v2250_v57 = vsel %vm2196_vm7, %v5263_v1, %v5786_v18  ;;  %v2522_v56 = vsel %vm2488_vm11, %v2457_v22, %v1955_v33  ;;  %v806_v27 = vshrl.u32 %v5954_v26, 16  ;;  %v809_v31 = vshll.u32 %v5954_v26, 16  ;;  %v114_v22 = vld [vmem:[%s6806_s0 + $0x170] sm:$0x1] }
 0x194   :  { %v2329_v18 = vsel %vm2293_vm8, %v2250_v57, %v5805_v50  ;;  %v804_v50 = vsel %vm4185_vm5, %v799_v53, %v803_v44 }
 0x195   :  { %v2097_v12 = vpop.permute.xlu1 %2096  ;;  %v2025_v62 = vpop.permute.xlu0 %2024  ;;  %v811_v4 = vrot.slane %v809_v31, 5 }
 0x196   :  { %v2587_v14 = vsel %vm2553_vm12, %v2522_v56, %v2025_v62  ;;  %v815_v62 = vshll.u32 %v5964_v11, 16  ;;  %v6012_v56 = vld [vmem:[%s6806_s0 + $0x178] sm:$0xf] }
 0x197   :  { %1902 = vrot.lane.b32.xlu1 %v5910_v52, %s4075_s20  ;;  %1830 = vrot.lane.b32.xlu0 %v5770_v58, %s4072_s28 }
 0x198   :  { %v817_v44 = vrot.slane %v815_v62, 5 }
 0x199   :  { %v5932_v32 = vpop.permute.xlu1 %1588  ;;  %v2095_v1 = vpop.permute.xlu0 %2094 }
 0x19a   :  { %v2652_v33 = vsel %vm2618_vm13, %v2587_v14, %v2095_v1 }
 0x19b   :  { %1972 = vrot.lane.b32.xlu1 %v5926_v24, %s4076_s21  ;;  %1900 = vrot.lane.b32.xlu0 %v5799_v47, %s4075_s20  ;;  %v2394_v47 = vsel %vm2358_vm9, %v2329_v18, %v5824_v51  ;;  %v5975_v51 = vcombine.low %v794_v5, %v804_v50 }
 0x19c   :  { %v2459_v17 = vsel %vm2423_vm10, %v2394_v47, %v5849_v60  ;;  %v1191_v60 = vrot.slane %v5859_v8, 5  ;;  %v808_v8 = vrot.slane %v806_v27, 4  ;;  %v825_v47 = vshll.u32 %v114_v22, 16 }
 0x19d   :  { %v5959_v36 = vpop.permute.xlu1 %1590  ;;  %v2165_v6 = vpop.permute.xlu0 %2164  ;;  %v2524_v25 = vsel %vm2488_vm11, %v2459_v17, %v5871_v59  ;;  %v819_v59 = vshrl.u32 %v5964_v11, 16 }
 0x19e   :  { %v2717_v28 = vsel %vm2683_vm14, %v2652_v33, %v2165_v6  ;;  %v2589_v61 = vsel %vm2553_vm12, %v2524_v25, %v2027_v42  ;;  %v3662_v42 = vrot.slane %v5840_v13, 9  ;;  %v1193_v53 = vrot.slane %v1191_v60, 4 }
 0x19f   :  { %2042 = vrot.lane.b32.xlu1 %v5944_v23, %s4077_s26  ;;  %1970 = vrot.lane.b32.xlu0 %v5842_v40, %s4076_s21  ;;  %v2654_v9 = vsel %vm2618_vm13, %v2589_v61, %v2097_v12  ;;  %v1194_v12 = vrot.slane %v5898_v55, 5  ;;  %v821_v15 = vrot.slane %v819_v59, 4  ;;  %v812_v13 = vor.u32 %v811_v4, %v808_v8  ;;  %v6007_v55 = vld [vmem:[%s6806_s0 + $0x174] sm:$0xf] }
 0x1a0   :  { %3942 = vmatprep.mubr.msk.bf16.mxu0 %vm2791_vm15, %v2717_v28  ;;  %v1192_v14 = vsel %vm4160_vm2, %v3662_v42, %v1191_v60  ;;  %v830_v6 = vshrl.u32 %v6007_v55, 16  ;;  %v833_v17 = vshll.u32 %v6007_v55, 16  ;;  %v843_v28 = vshrl.u32 %v6012_v56, 16 }
 0x1a1   :  { %v5985_v57 = vpop.permute.xlu1 %1750  ;;  %v2167_v40 = vpop.permute.xlu0 %2166  ;;  %v1195_v5 = vsel %vm4160_vm2, %v1193_v53, %v1194_v12  ;;  %v822_v50 = vor.u32 %v821_v15, %v817_v44  ;;  %v839_v25 = vshll.u32 %v6012_v56, 16  ;;  %v813_v31 = vrot.slane %v812_v13, 4  ;;  %v6044_v12 = vld [vmem:[%s6806_s0 + $0x17c] sm:$0x1] }
 0x1a2   :  { %v2719_v3 = vsel %vm2683_vm14, %v2654_v9, %v2167_v40  ;;  %v6028_v27 = vcombine.low %v1192_v14, %v1195_v5  ;;  %v827_v60 = vrot.slane %v825_v47, 5  ;;  %v1198_v59 = vrot.slane %v5964_v11, 5 }
 0x1a3   :  { %2112 = vrot.lane.b32.xlu1 %v5975_v51, %s4078_s30  ;;  %2040 = vrot.lane.b32.xlu0 %v5846_v49, %s4077_s26  ;;  %v823_v61 = vrot.slane %v822_v50, 4  ;;  %v832_v40 = vrot.slane %v830_v6, 4  ;;  %v841_v42 = vrot.slane %v839_v25, 5  ;;  %v845_v8 = vrot.slane %v843_v28, 4 }
 0x1a4   :  { %3943 = vmatmul.mubr.msk.bf16.gmra.mxu0 %vm2791_vm15, %v2719_v3  ;;  %v835_v3 = vrot.slane %v833_v17, 5  ;;  %v6037_v4 = vcombine.low %v5954_v26, %v5964_v11  ;;  %v818_v53 = vsel %vm4185_vm5, %v813_v31, %v817_v44  ;;  %v3663_v13 = vrot.slane %v5954_v26, 9 }
 0x1a5   :  { %v5995_v1 = vpop.permute.xlu1 %1820  ;;  %v1749_v18 = vpop.permute.xlu0 %1748  ;;  %v828_v15 = vsel %vm4185_vm5, %v823_v61, %v827_v60  ;;  %v1200_v14 = vrot.slane %v1198_v59, 4  ;;  %v1201_v5 = vrot.slane %v114_v22, 5  ;;  %v846_v11 = vor.u32 %v845_v8, %v841_v42 }
 0x1a6   :  { %v836_v6 = vor.u32 %v835_v3, %v832_v40  ;;  %v849_v17 = vshll.u32 %v6044_v12, 16  ;;  %v6054_v44 = vcombine.low %v818_v53, %v828_v15  ;;  %v1199_v28 = vsel %vm4160_vm2, %v3663_v13, %v1198_v59 }
 0x1a7   :  { %1604 = vrot.lane.b32.xlu1 %v5910_v52, %s4074_s17  ;;  %2110 = vrot.lane.b32.xlu0 %v5910_v52, %s4078_s30  ;;  %v1202_v26 = vsel %vm4160_vm2, %v1200_v14, %v1201_v5  ;;  %v847_v61 = vrot.slane %v846_v11, 4  ;;  %v2253_v40 = vsel %vm2196_vm7, %v5241_v10, %v5932_v32 }
 0x1a8   :  { %v837_v31 = vrot.slane %v836_v6, 4  ;;  %v851_v60 = vrot.slane %v849_v17, 5  ;;  %v6070_v59 = vcombine.low %v1199_v28, %v1202_v26  ;;  %v2331_v3 = vsel %vm2293_vm8, %v2253_v40, %v1749_v18 }
 0x1a9   :  { %v6018_v52 = vpop.permute.xlu1 %1890  ;;  %v1819_v33 = vpop.permute.xlu0 %1818  ;;  %v6090_v18 = vcombine.low %v6007_v55, %v6012_v56 }
 0x1aa   :  { %v2396_v8 = vsel %vm2358_vm9, %v2331_v3, %v1819_v33  ;;  %v842_v32 = vsel %vm4185_vm5, %v837_v31, %v841_v42 }
 0x1ab   :  { %1606 = vrot.lane.b32.xlu1 %v5975_v51, %s4074_s17  ;;  %2180 = vrot.lane.b32.xlu0 %v5926_v24, %s4079_s10 }
 0x1ad   :  { %v1961_v62 = vpop.permute.xlu1 %1960  ;;  %v1889_v9 = vpop.permute.xlu0 %1888 }
 0x1af   :  { %1766 = vrot.lane.b32.xlu1 %v6028_v27, %s4073_s12  ;;  %2182 = vrot.lane.b32.xlu0 %v6028_v27, %s4079_s10 }
 0x1b1   :  { %v2031_v50 = vpop.permute.xlu1 %2030  ;;  %v1959_v47 = vpop.permute.xlu0 %1958 }
 0x1b3   :  { %1836 = vrot.lane.b32.xlu1 %v6037_v4, %s4072_s28  ;;  %1764 = vrot.lane.b32.xlu0 %v5926_v24, %s4073_s12  ;;  %v2256_v24 = vsel %vm2196_vm7, %v5297_v2, %v5959_v36  ;;  %v2461_v2 = vsel %vm2423_vm10, %v2396_v8, %v1889_v9  ;;  %v852_v36 = vsel %vm4185_vm5, %v847_v61, %v851_v60  ;;  %v6101_v9 = vld [vmem:[%s6806_s0 + $0x184] sm:$0xf] }
 0x1b4   :  { %v2333_v10 = vsel %vm2293_vm8, %v2256_v24, %v5985_v57  ;;  %v2526_v13 = vsel %vm2488_vm11, %v2461_v2, %v1959_v47  ;;  %v6095_v57 = vld [vmem:[%s6806_s0 + $0x180] sm:$0xf]  ;;  %v6108_v47 = vcombine.low %v842_v32, %v852_v36  ;;  %v3664_v24 = vrot.slane %v6007_v55, 9 }
 0x1b5   :  { %v2101_v22 = vpop.permute.xlu1 %2100  ;;  %v2029_v25 = vpop.permute.xlu0 %2028  ;;  %v2398_v42 = vsel %vm2358_vm9, %v2333_v10, %v5995_v1  ;;  %v854_v17 = vshrl.u32 %v6095_v57, 16  ;;  %v857_v28 = vshll.u32 %v6095_v57, 16  ;;  %v1205_v1 = vrot.slane %v6012_v56, 5 }
 0x1b6   :  { %v2591_v33 = vsel %vm2553_vm12, %v2526_v13, %v2029_v25  ;;  %v2463_v6 = vsel %vm2423_vm10, %v2398_v42, %v6018_v52  ;;  %v867_v25 = vshrl.u32 %v6101_v9, 16  ;;  %v863_v52 = vshll.u32 %v6101_v9, 16  ;;  %v6156_v42 = vld [vmem:[%s6806_s0 + $0x18c] sm:$0xf] }
 0x1b7   :  { %1906 = vrot.lane.b32.xlu1 %v6054_v44, %s4075_s20  ;;  %1834 = vrot.lane.b32.xlu0 %v5944_v23, %s4072_s28  ;;  %v2528_v26 = vsel %vm2488_vm11, %v2463_v6, %v1961_v62  ;;  %v859_v3 = vrot.slane %v857_v28, 5  ;;  %v1207_v56 = vrot.slane %v1205_v1, 4 }
 0x1b8   :  { %v2593_v31 = vsel %vm2553_vm12, %v2528_v26, %v2031_v50  ;;  %v1208_v50 = vrot.slane %v6044_v12, 5  ;;  %v865_v8 = vrot.slane %v863_v52, 5  ;;  %v1206_v12 = vsel %vm4160_vm2, %v3664_v24, %v1205_v1 }
 0x1b9   :  { %v6074_v53 = vpop.permute.xlu1 %1592  ;;  %v2099_v15 = vpop.permute.xlu0 %2098  ;;  %v2658_v61 = vsel %vm2618_vm13, %v2593_v31, %v2101_v22  ;;  %v869_v22 = vrot.slane %v867_v25, 4  ;;  %v878_v26 = vshrl.u32 %v6156_v42, 16  ;;  %v881_v1 = vshll.u32 %v6156_v42, 16 }
 0x1ba   :  { %v1209_v32 = vsel %vm4160_vm2, %v1207_v56, %v1208_v50  ;;  %v1212_v52 = vrot.slane %v6101_v9, 5  ;;  %v6182_v24 = vcombine.low %v6095_v57, %v6101_v9  ;;  %v3665_v56 = vrot.slane %v6095_v57, 9 }
 0x1bb   :  { %1976 = vrot.lane.b32.xlu1 %v6070_v59, %s4076_s21  ;;  %1904 = vrot.lane.b32.xlu0 %v5975_v51, %s4075_s20  ;;  %v2656_v51 = vsel %vm2618_vm13, %v2591_v33, %v2099_v15  ;;  %v120_v15 = vld [vmem:[%s6806_s0 + $0x188] sm:$0x1]  ;;  %v870_v36 = vor.u32 %v869_v22, %v865_v8  ;;  %v6151_v33 = vpop.f32.mrf.mxu0  ;;  %v6165_v6 = vcombine.low %v1206_v12, %v1209_v32  ;;  %v880_v50 = vrot.slane %v878_v26, 4 }
 0x1bc   :  { %v873_v13 = vshll.u32 %v120_v15, 16  ;;  %6829 = vst [vmem:[#allocation11_spill] sm:$0xff] %v6182_v24  ;;  %v883_v22 = vrot.slane %v881_v1, 5  ;;  %v1214_v9 = vrot.slane %v1212_v52, 4  ;;  %v1215_v12 = vrot.slane %v120_v15, 5 }
 0x1bd   :  { %v6106_v14 = vpop.permute.xlu1 %1594  ;;  %v2169_v5 = vpop.permute.xlu0 %2168  ;;  %v1213_v15 = vsel %vm4160_vm2, %v3665_v56, %v1212_v52 }
 0x1be   :  { %v2721_v11 = vsel %vm2683_vm14, %v2656_v51, %v2169_v5  ;;  %v875_v28 = vrot.slane %v873_v13, 5  ;;  %v6173_v25 = vpop.f32.mrf.mxu0  ;;  %v1216_v26 = vsel %vm4160_vm2, %v1214_v9, %v1215_v12  ;;  %v2262_v52 = vsel %vm2196_vm7, %v5442_v46, %v6106_v14  ;;  %v6240_v46 = vld [vmem:[%s6806_s0 + $0x19c] sm:$0xf] }
 0x1bf   :  { %2046 = vrot.lane.b32.xlu1 %v6090_v18, %s4077_s26  ;;  %1974 = vrot.lane.b32.xlu0 %v6028_v27, %s4076_s21  ;;  %v856_v27 = vrot.slane %v854_v17, 4  ;;  %v871_v17 = vrot.slane %v870_v36, 4 }
 0x1c0   :  { %3946 = vmatprep.mubr.msk.bf16.mxu0 %vm2791_vm15, %v2721_v11 }
 0x1c1   :  { %v6126_v60 = vpop.permute.xlu1 %1754  ;;  %v2171_v62 = vpop.permute.xlu0 %2170  ;;  %v860_v2 = vor.u32 %v859_v3, %v856_v27  ;;  %v876_v3 = vsel %vm4185_vm5, %v871_v17, %v875_v28  ;;  %v884_v17 = vor.u32 %v883_v22, %v880_v50 }
 0x1c2   :  { %v2723_v40 = vsel %vm2683_vm14, %v2658_v61, %v2171_v62 }
 0x1c3   :  { %2116 = vrot.lane.b32.xlu1 %v6108_v47, %s4078_s30  ;;  %2044 = vrot.lane.b32.xlu0 %v6037_v4, %s4077_s26  ;;  %v861_v11 = vrot.slane %v860_v2, 4  ;;  %v6193_v2 = vpop.f32.mrf.mxu0  ;;  %v885_v56 = vrot.slane %v884_v17, 4  ;;  %v2337_v17 = vsel %vm2293_vm8, %v2262_v52, %v6126_v60 }
 0x1c4   :  { %3947 = vmatmul.mubr.msk.bf16.gmra.mxu0 %vm2791_vm15, %v2723_v40 }
 0x1c5   :  { %v6139_v55 = vpop.permute.xlu1 %1824  ;;  %v6141_v10 = vpop.permute.xlu0 %1752  ;;  %v866_v27 = vsel %vm4185_vm5, %v861_v11, %v865_v8  ;;  %v6198_v11 = vld [vmem:[%s6806_s0 + $0x194] sm:$0x1] }
 0x1c6   :  { %v6204_v57 = vcombine.low %v866_v27, %v876_v3  ;;  %v6206_v28 = vpop.f32.mrf.mxu0  ;;  %v2259_v27 = vsel %vm2196_vm7, %v5389_v39, %v6074_v53  ;;  %v6230_v3 = vcombine.low %v1213_v15, %v1216_v26 }
 0x1c7   :  { %1608 = vrot.lane.b32.xlu1 %v6054_v44, %s4074_s17  ;;  %2114 = vrot.lane.b32.xlu0 %v6054_v44, %s4078_s30  ;;  %v6163_v44 = vld [vmem:[%s6806_s0 + $0x190] sm:$0xf]  ;;  %v2335_v50 = vsel %vm2293_vm8, %v2259_v27, %v6141_v10  ;;  %v1258_v27 = vshll.u32 %v6240_v46, 16 }
 0x1c8   :  { %v891_v31 = vshrl.u32 %v6163_v44, 16  ;;  %v887_v61 = vshll.u32 %v6163_v44, 16  ;;  %v6213_v0 = vpop.f32.mrf.mxu0  ;;  %v6256_v26 = vcombine.low %v6156_v42, %v6163_v44  ;;  %v1219_v60 = vrot.slane %v6163_v44, 5 }
 0x1c9   :  { %v6158_v51 = vpop.permute.xlu1 %1894  ;;  %v1823_v5 = vpop.permute.xlu0 %1822 }
 0x1ca   :  { %v889_v32 = vrot.slane %v887_v61, 5  ;;  %v893_v36 = vrot.slane %v891_v31, 4  ;;  %v897_v31 = vshll.u32 %v6198_v11, 16  ;;  %v2400_v39 = vsel %vm2358_vm9, %v2335_v50, %v1823_v5  ;;  %v6246_v10 = vpop.f32.mrf.mxu0 }
 0x1cb   :  { %1610 = vrot.lane.b32.xlu1 %v6108_v47, %s4074_s17  ;;  %2184 = vrot.lane.b32.xlu0 %v6070_v59, %s4079_s10 }
 0x1cc   :  { %v894_v1 = vor.u32 %v893_v36, %v889_v32  ;;  %v899_v9 = vrot.slane %v897_v31, 5  ;;  %v6271_v44 = vpop.f32.mrf.mxu0 }
 0x1cd   :  { %v6178_v62 = vpop.permute.xlu1 %1964  ;;  %v1893_v40 = vpop.permute.xlu0 %1892 }
 0x1ce   :  { %v895_v22 = vrot.slane %v894_v1, 4  ;;  %v2465_v15 = vsel %vm2423_vm10, %v2400_v39, %v1893_v40  ;;  %v890_v1 = vsel %vm4185_vm5, %v885_v56, %v889_v32 }
 0x1cf   :  { %1770 = vrot.lane.b32.xlu1 %v6165_v6, %s4073_s12  ;;  %2186 = vrot.lane.b32.xlu0 %v6165_v6, %s4079_s10 }
 0x1d0   :  { %v900_v40 = vsel %vm4185_vm5, %v895_v22, %v899_v9 }
 0x1d1   :  { %v2035_v8 = vpop.permute.xlu1 %2034  ;;  %v1963_v13 = vpop.permute.xlu0 %1962 }
 0x1d2   :  { %v2530_v5 = vsel %vm2488_vm11, %v2465_v15, %v1963_v13  ;;  %v1262_v13 = vshrl.u32 %v6240_v46, 16 }
 0x1d3   :  { %1840 = vrot.lane.b32.xlu1 %v6182_v24, %s4072_s28  ;;  %1768 = vrot.lane.b32.xlu0 %v6070_v59, %s4073_s12  ;;  %v6218_v59 = vld [vmem:[%s6806_s0 + $0x198] sm:$0xf] }
 0x1d4   :  { %v1249_v14 = vshrl.u32 %v6218_v59, 16  ;;  %v1252_v36 = vshll.u32 %v6218_v59, 16 }
 0x1d5   :  { %v2105_v61 = vpop.permute.xlu1 %2104  ;;  %v2033_v41 = vpop.permute.xlu0 %2032 }
 0x1d6   :  { %v2595_v31 = vsel %vm2553_vm12, %v2530_v5, %v2033_v41  ;;  %v1251_v32 = vrot.slane %v1249_v14, 4  ;;  %v1254_v56 = vrot.slane %v1252_v36, 5  ;;  %v1221_v14 = vrot.slane %v1219_v60, 4 }
 0x1d7   :  { %1910 = vrot.lane.b32.xlu1 %v6204_v57, %s4075_s20  ;;  %1838 = vrot.lane.b32.xlu0 %v6090_v18, %s4072_s28 }
 0x1d9   :  { %v6235_v53 = vpop.permute.xlu1 %1596  ;;  %v2103_v12 = vpop.permute.xlu0 %2102 }
 0x1da   :  { %v2660_v52 = vsel %vm2618_vm13, %v2595_v31, %v2103_v12  ;;  %v3666_v12 = vrot.slane %v6156_v42, 9  ;;  %v1255_v42 = vor.u32 %v1254_v56, %v1251_v32 }
 0x1db   :  { %1980 = vrot.lane.b32.xlu1 %v6230_v3, %s4076_s21  ;;  %1908 = vrot.lane.b32.xlu0 %v6108_v47, %s4075_s20  ;;  %v2402_v47 = vsel %vm2358_vm9, %v2337_v17, %v6139_v55  ;;  %v6282_v55 = vcombine.low %v890_v1, %v900_v40  ;;  %v6288_v17 = vrot.slane %v1258_v27, 5  ;;  %v6298_v1 = vpop.f32.mrf.mxu0 }
 0x1dc   :  { %v2467_v41 = vsel %vm2423_vm10, %v2402_v47, %v6158_v51  ;;  %v1222_v51 = vrot.slane %v6198_v11, 5  ;;  %v1256_v32 = vrot.slane %v1255_v42, 4 }
 0x1dd   :  { %v6269_v50 = vpop.permute.xlu1 %1598  ;;  %v2173_v39 = vpop.permute.xlu0 %2172  ;;  %v2532_v9 = vsel %vm2488_vm11, %v2467_v41, %v6178_v62  ;;  %v1264_v62 = vrot.slane %v1262_v13, 4  ;;  %v6320_v41 = vld [vmem:[%s6806_s0 + $0x1a4] sm:$0xf] }
 0x1de   :  { %v2725_v22 = vsel %vm2683_vm14, %v2660_v52, %v2173_v39  ;;  %v2597_v36 = vsel %vm2553_vm12, %v2532_v9, %v2035_v8  ;;  %v1223_v40 = vsel %vm4160_vm2, %v1221_v14, %v1222_v51  ;;  %v6332_v9 = vld [vmem:[%s6806_s0 + $0x1a8] sm:$0xf]  ;;  %v6336_v14 = vcombine.low %v6218_v59, %v6240_v46 }
 0x1df   :  { %2050 = vrot.lane.b32.xlu1 %v6256_v26, %s4077_s26  ;;  %1978 = vrot.lane.b32.xlu0 %v6165_v6, %s4076_s21  ;;  %v2662_v15 = vsel %vm2618_vm13, %v2597_v36, %v2105_v61  ;;  %v6296_v6 = vld [vmem:[%s6806_s0 + $0x1a0] sm:$0x1]  ;;  %v1220_v61 = vsel %vm4160_vm2, %v3666_v12, %v1219_v60  ;;  %v1265_v13 = vor.u32 %v1264_v62, %v6288_v17  ;;  %v1287_v62 = vrot.slane %v6240_v46, 5 }
 0x1e0   :  { %3950 = vmatprep.mubr.msk.bf16.mxu0 %vm2791_vm15, %v2725_v22  ;;  %v1268_v27 = vshll.u32 %v6296_v6, 16  ;;  %v6327_v22 = vcombine.low %v1220_v61, %v1223_v40  ;;  %v1320_v40 = vshll.u32 %v6320_v41, 16  ;;  %v1326_v46 = vshll.u32 %v6332_v9, 16 }
 0x1e1   :  { %v6291_v5 = vpop.permute.xlu1 %1758  ;;  %v2175_v31 = vpop.permute.xlu0 %2174  ;;  %v1266_v36 = vrot.slane %v1265_v13, 4  ;;  %v1330_v13 = vshrl.u32 %v6332_v9, 16  ;;  %v1289_v30 = vrot.slane %v1287_v62, 4  ;;  %v1290_v29 = vrot.slane %v6296_v6, 5  ;;  %v129_v6 = vld [vmem:[%s6806_s0 + $0x1ac] sm:$0x1] }
 0x1e2   :  { %v2727_v8 = vsel %vm2683_vm14, %v2662_v15, %v2175_v31  ;;  %v1270_v51 = vrot.slane %v1268_v27, 5  ;;  %v1322_v7 = vrot.slane %v1320_v40, 5 }
 0x1e3   :  { %2120 = vrot.lane.b32.xlu1 %v6282_v55, %s4078_s30  ;;  %2048 = vrot.lane.b32.xlu0 %v6182_v24, %s4077_s26  ;;  %v1291_v40 = vsel %vm4160_vm2, %v1289_v30, %v1290_v29 }
 0x1e4   :  { %v3928_v11 = vpop.f32.mrf.mxu0  ;;  %3951 = vmatmul.mubr.msk.bf16.gmra.mxu0 %vm2791_vm15, %v2727_v8  ;;  %v1261_v8 = vsel %vm4185_vm5, %v1256_v32, %v6288_v17  ;;  %v1271_v17 = vsel %vm4185_vm5, %v1266_v36, %v1270_v51  ;;  %v3668_v32 = vrot.slane %v6218_v59, 9  ;;  %v1328_v59 = vrot.slane %v1326_v46, 5 }
 0x1e5   :  { %v2967_v47 = vadd.f32 %v3928_v11, %v5644_v43  ;;  %v6313_v52 = vpop.permute.xlu1 %1828  ;;  %v6315_v39 = vpop.permute.xlu0 %1756  ;;  %v1317_v11 = vshrl.u32 %v6320_v41, 16  ;;  %v1336_v46 = vshll.u32 %v129_v6, 16 }
 0x1e6   :  { %v2958_v56 = vpop.f32.mrf.mxu0 }
 0x1e7   :  { %v2959_v60 = vadd.f32 %v5644_v43, %v2958_v56  ;;  %1612 = vrot.lane.b32.xlu1 %v6204_v57, %s4074_s17  ;;  %2118 = vrot.lane.b32.xlu0 %v6204_v57, %s4078_s30  ;;  %v3231_v15 = vmul.f32 0.1, %v2967_v47  ;;  %vm3167_vm4 = vcmp.gt.f32.partialorder %v2967_v47, 0.0  ;;  %v1319_v45 = vrot.slane %v1317_v11, 4 }
 0x1e8   :  { %v3929_v12 = vpop.f32.mrf.mxu0  ;;  %v1288_v11 = vsel %vm4160_vm2, %v3668_v32, %v1287_v62  ;;  %v1338_v30 = vrot.slane %v1336_v46, 5  ;;  %v1355_v62 = vrot.slane %v6332_v9, 5 }
 0x1e9   :  { %v2970_v31 = vadd.f32 %v3929_v12, %v5644_v43  ;;  %v6340_v57 = vpop.permute.xlu1 %1898  ;;  %v1827_v42 = vpop.permute.xlu0 %1826  ;;  %v3229_v27 = vmul.f32 0.1, %v2959_v60  ;;  %vm3165_vm0 = vcmp.gt.f32.partialorder %v2959_v60, 0.0  ;;  %v6357_v38 = vsel %vm3167_vm4, %v2967_v47, %v3231_v15 }
 0x1ea   :  { %v2961_v61 = vpop.f32.mrf.mxu0  ;;  %v1332_v47 = vrot.slane %v1330_v13, 4 }
 0x1eb   :  { %vm3168_vm6 = vcmp.gt.f32.partialorder %v2970_v31, 0.0  ;;  %v3232_v56 = vmul.f32 0.1, %v2970_v31  ;;  %v2962_v12 = vadd.f32 %v5644_v43, %v2961_v61  ;;  %1614 = vrot.lane.b32.xlu1 %v6282_v55, %s4074_s17  ;;  %2188 = vrot.lane.b32.xlu0 %v6230_v3, %s4079_s10  ;;  %v6364_v24 = vsel %vm3165_vm0, %v2959_v60, %v3229_v27 }
 0x1ec   :  { %v1333_v13 = vor.u32 %v1332_v47, %v1328_v59  ;;  %v1357_v47 = vrot.slane %v1355_v62, 4 }
 0x1ed   :  { %v6359_v16 = vsel %vm3168_vm6, %v2970_v31, %v3232_v56  ;;  %vm3166_vm1 = vcmp.gt.f32.partialorder %v2962_v12, 0.0  ;;  %v3230_v54 = vmul.f32 0.1, %v2962_v12  ;;  %v1969_v43 = vpop.permute.xlu1 %1968  ;;  %v1897_v61 = vpop.permute.xlu0 %1896  ;;  %v3770_v31 = vcombine.low %v1261_v8, %v1271_v17 }
 0x1ee   :  { %v3353_v34 = vpack.c.bf16 %v6359_v16, %v6357_v38  ;;  %v1334_v29 = vrot.slane %v1333_v13, 4  ;;  %v6835_v38 = vld [vmem:[#allocation6_spill] sm:$0xff] }
 0x1ef   :  { %v6366_v36 = vsel %vm3166_vm1, %v2962_v12, %v3230_v54  ;;  %1774 = vrot.lane.b32.xlu1 %v6327_v22, %s4073_s12  ;;  %2190 = vrot.lane.b32.xlu0 %v6327_v22, %s4079_s10  ;;  %v1323_v54 = vor.u32 %v1322_v7, %v1319_v45  ;;  %v3772_v12 = vcombine.low %v1288_v11, %v1291_v40 }
 0x1f0   :  { %v2265_v45 = vsel %vm2196_vm7, %v5528_v20, %v6235_v53  ;;  %v2268_v7 = vsel %vm2196_vm7, %v5593_v37, %v6269_v50  ;;  %v3774_v50 = vcombine.low %v6320_v41, %v6332_v9 }
 0x1f1   :  { %v2039_v15 = vpop.permute.xlu1 %2038  ;;  %v1967_v60 = vpop.permute.xlu0 %1966  ;;  %v1324_v51 = vrot.slane %v1323_v54, 4  ;;  %v2341_v53 = vsel %vm2293_vm8, %v2268_v7, %v6291_v5  ;;  %v1358_v54 = vrot.slane %v129_v6, 5 }
 0x1f2   :  { %v2406_v9 = vsel %vm2358_vm9, %v2341_v53, %v6313_v52 }
 0x1f3   :  { %1844 = vrot.lane.b32.xlu1 %v6336_v14, %s4072_s28  ;;  %1772 = vrot.lane.b32.xlu0 %v6230_v3, %s4073_s12  ;;  %v2339_v3 = vsel %vm2293_vm8, %v2265_v45, %v6315_v39  ;;  %v1329_v39 = vsel %vm4185_vm5, %v1324_v51, %v1328_v59 }
 0x1f4   :  { %v2404_v8 = vsel %vm2358_vm9, %v2339_v3, %v1827_v42  ;;  %v1339_v42 = vsel %vm4185_vm5, %v1334_v29, %v1338_v30 }
 0x1f5   :  { %v2109_v27 = vpop.permute.xlu1 %2108  ;;  %v2037_v56 = vpop.permute.xlu0 %2036  ;;  %v2469_v37 = vsel %vm2423_vm10, %v2404_v8, %v1897_v61  ;;  %v3670_v61 = vrot.slane %v6320_v41, 9  ;;  %v3776_v41 = vcombine.low %v1329_v39, %v1339_v42 }
 0x1f6   :  { %v2534_v32 = vsel %vm2488_vm11, %v2469_v37, %v1967_v60 }
 0x1f7   :  { %1914 = vrot.lane.b32.xlu1 %v3770_v31, %s4075_s20  ;;  %1842 = vrot.lane.b32.xlu0 %v6256_v26, %s4072_s28  ;;  %v2599_v5 = vsel %vm2553_vm12, %v2534_v32, %v2037_v56  ;;  %v1356_v52 = vsel %vm4160_vm2, %v3670_v61, %v1355_v62 }
 0x1f9   :  { %v1601_v17 = vpop.permute.xlu1 %1600  ;;  %v2107_v20 = vpop.permute.xlu0 %2106 }
 0x1fa   :  { %v2664_v60 = vsel %vm2618_vm13, %v2599_v5, %v2107_v20 }
 0x1fb   :  { %1984 = vrot.lane.b32.xlu1 %v3772_v12, %s4076_s21  ;;  %1912 = vrot.lane.b32.xlu0 %v6282_v55, %s4075_s20  ;;  %v2471_v55 = vsel %vm2423_vm10, %v2406_v9, %v6340_v57  ;;  %v1359_v57 = vsel %vm4160_vm2, %v1357_v47, %v1358_v54 }
 0x1fc   :  { %v2536_v48 = vsel %vm2488_vm11, %v2471_v55, %v1969_v43 }
 0x1fd   :  { %v1603_v11 = vpop.permute.xlu1 %1602  ;;  %v2177_v40 = vpop.permute.xlu0 %2176  ;;  %v2601_v51 = vsel %vm2553_vm12, %v2536_v48, %v2039_v15 }
 0x1fe   :  { %v2729_v59 = vsel %vm2683_vm14, %v2664_v60, %v2177_v40  ;;  %v2666_v6 = vsel %vm2618_vm13, %v2601_v51, %v2109_v27  ;;  %v2274_v8 = vsel %vm2196_vm7, %v5770_v58, %v1603_v11 }
 0x1ff   :  { %2054 = vrot.lane.b32.xlu1 %v3774_v50, %s4077_s26  ;;  %1982 = vrot.lane.b32.xlu0 %v6327_v22, %s4076_s21  ;;  %v3778_v22 = vcombine.low %v1356_v52, %v1359_v57 }
 0x200   :  { %3954 = vmatprep.mubr.msk.bf16.mxu0 %vm2791_vm15, %v2729_v59 }
 0x201   :  { %v1763_v13 = vpop.permute.xlu1 %1762  ;;  %v2179_v43 = vpop.permute.xlu0 %2178 }
 0x202   :  { %v2731_v46 = vsel %vm2683_vm14, %v2666_v6, %v2179_v43 }
 0x203   :  { %2124 = vrot.lane.b32.xlu1 %v3776_v41, %s4078_s30  ;;  %2052 = vrot.lane.b32.xlu0 %v6336_v14, %s4077_s26  ;;  %v2271_v14 = vsel %vm2196_vm7, %v5679_v35, %v1601_v17 }
 0x204   :  { %3955 = vmatmul.mubr.msk.bf16.gmra.mxu0 %vm2791_vm15, %v2731_v46  ;;  %v6458_v48 = vpop.f32.mrf.mxu0 }
 0x205   :  { %v1833_v15 = vpop.permute.xlu1 %1832  ;;  %v1761_v56 = vpop.permute.xlu0 %1760 }
 0x206   :  { %v2343_v20 = vsel %vm2293_vm8, %v2271_v14, %v1761_v56  ;;  %v6460_v52 = vpop.f32.mrf.mxu0 }
 0x207   :  { %2194 = vrot.lane.b32.xlu1 %v3778_v22, %s4079_s10  ;;  %2122 = vrot.lane.b32.xlu0 %v3770_v31, %s4078_s30 }
 0x209   :  { %v1903_v21 = vpop.permute.xlu1 %1902  ;;  %v1831_v27 = vpop.permute.xlu0 %1830 }
 0x20a   :  { %v2408_v31 = vsel %vm2358_vm9, %v2343_v20, %v1831_v27 }
 0x20b   :  { %2192 = vrot.lane.b32.xlu0 %v3772_v12, %s4079_s10  ;;  %v2345_v12 = vsel %vm2293_vm8, %v2274_v8, %v1763_v13  ;;  %v6462_v13 = vpop.f32.mrf.mxu0 }
 0x20c   :  { %v2410_v42 = vsel %vm2358_vm9, %v2345_v12, %v1833_v15 }
 0x20d   :  { %v1973_v45 = vpop.permute.xlu1 %1972  ;;  %v1901_v7 = vpop.permute.xlu0 %1900  ;;  %v2475_v5 = vsel %vm2423_vm10, %v2410_v42, %v1903_v21 }
 0x20e   :  { %v2473_v50 = vsel %vm2423_vm10, %v2408_v31, %v1901_v7  ;;  %v2540_v47 = vsel %vm2488_vm11, %v2475_v5, %v1973_v45  ;;  %v6464_v22 = vpop.f32.mrf.mxu0 }
 0x211   :  { %v2043_v29 = vpop.permute.xlu1 %2042  ;;  %v1971_v30 = vpop.permute.xlu0 %1970 }
 0x212   :  { %v2538_v32 = vsel %vm2488_vm11, %v2473_v50, %v1971_v30  ;;  %v2605_v54 = vsel %vm2553_vm12, %v2540_v47, %v2043_v29 }
 0x215   :  { %v2113_v3 = vpop.permute.xlu1 %2112  ;;  %v2041_v62 = vpop.permute.xlu0 %2040 }
 0x216   :  { %v2603_v39 = vsel %vm2553_vm12, %v2538_v32, %v2041_v62  ;;  %v2670_v9 = vsel %vm2618_vm13, %v2605_v54, %v2113_v3 }
 0x219   :  { %v1605_v53 = vpop.permute.xlu1 %1604  ;;  %v2111_v37 = vpop.permute.xlu0 %2110 }
 0x21a   :  { %v2668_v35 = vsel %vm2618_vm13, %v2603_v39, %v2111_v37  ;;  %v2277_v27 = vsel %vm2196_vm7, %v5846_v49, %v1605_v53 }
 0x21d   :  { %v1607_v17 = vpop.permute.xlu1 %1606  ;;  %v2181_v58 = vpop.permute.xlu0 %2180 }
 0x21e   :  { %v2733_v61 = vsel %vm2683_vm14, %v2668_v35, %v2181_v58  ;;  %v2280_v45 = vsel %vm2196_vm7, %v5944_v23, %v1607_v17  ;;  %v6494_v35 = vld [vmem:[%s6808_s2] ss:$0 sm:$0xff] }
 0x21f   :  { %3958 = vmatprep.mubr.msk.bf16.mxu0 %vm2791_vm15, %v2733_v61  ;;  %v2954_v17 = vadd.f32 %v6494_v35, %v6271_v44  ;;  %v2951_v47 = vadd.f32 %v6494_v35, %v6213_v0 }
 0x221   :  { %v1767_v60 = vpop.permute.xlu1 %1766  ;;  %v2183_v11 = vpop.permute.xlu0 %2182  ;;  %vm3164_vm2 = vcmp.gt.f32.partialorder %v2954_v17, 0.0  ;;  %vm3163_vm5 = vcmp.gt.f32.partialorder %v2951_v47, 0.0 }
 0x222   :  { %v2735_v40 = vsel %vm2683_vm14, %v2670_v9, %v2183_v11  ;;  %v2349_v62 = vsel %vm2293_vm8, %v2280_v45, %v1767_v60  ;;  %v3228_v11 = vmul.f32 0.1, %v2954_v17 }
 0x223   :  { %3959 = vmatmul.mubr.msk.bf16.gmra.mxu0 %vm2791_vm15, %v2735_v40 }
 0x224   :  { %v6466_v21 = vpop.f32.mrf.mxu0 }
 0x225   :  { %v1837_v55 = vpop.permute.xlu1 %1836  ;;  %v1765_v59 = vpop.permute.xlu0 %1764 }
 0x226   :  { %v2347_v7 = vsel %vm2293_vm8, %v2277_v27, %v1765_v59  ;;  %v6477_v14 = vpop.f32.mrf.mxu0  ;;  %v2414_v31 = vsel %vm2358_vm9, %v2349_v62, %v1837_v55  ;;  %v3227_v59 = vmul.f32 0.1, %v2951_v47  ;;  %v2943_v27 = vadd.f32 %v6494_v35, %v6246_v10 }
 0x228   :  { %v3937_v12 = vpop.f32.mrf.mxu0 }
 0x229   :  { %v1907_v41 = vpop.permute.xlu1 %1906  ;;  %v1835_v51 = vpop.permute.xlu0 %1834 }
 0x22a   :  { %v2412_v29 = vsel %vm2358_vm9, %v2347_v7, %v1835_v51  ;;  %v2479_v50 = vsel %vm2423_vm10, %v2414_v31, %v1907_v41  ;;  %v6503_v54 = vpop.f32.mrf.mxu0  ;;  %v2946_v51 = vadd.f32 %v6494_v35, %v6298_v1  ;;  %v3291_v7 = vsel %vm3163_vm5, %v2951_v47, %v3227_v59 }
 0x22c   :  { %v3226_v1 = vmul.f32 0.1, %v2946_v51  ;;  %vm3162_vm1 = vcmp.gt.f32.partialorder %v2946_v51, 0.0 }
 0x22d   :  { %v1977_v57 = vpop.permute.xlu1 %1976  ;;  %v1905_v6 = vpop.permute.xlu0 %1904 }
 0x22e   :  { %v2477_v8 = vsel %vm2423_vm10, %v2412_v29, %v1905_v6  ;;  %v2544_v39 = vsel %vm2488_vm11, %v2479_v50, %v1977_v57 }
 0x231   :  { %v2047_v43 = vpop.permute.xlu1 %2046  ;;  %v1975_v46 = vpop.permute.xlu0 %1974 }
 0x232   :  { %v2542_v20 = vsel %vm2488_vm11, %v2477_v8, %v1975_v46  ;;  %v2609_v42 = vsel %vm2553_vm12, %v2544_v39, %v2047_v43  ;;  %v3002_v8 = vadd.f32 %v6494_v35, %v3937_v12  ;;  %v2999_v39 = vadd.f32 %v6494_v35, %v6466_v21 }
 0x234   :  { %v3240_v47 = vmul.f32 0.1, %v3002_v8  ;;  %vm3176_vm5 = vcmp.gt.f32.partialorder %v3002_v8, 0.0  ;;  %v3239_v21 = vmul.f32 0.1, %v2999_v39 }
 0x235   :  { %v2117_v15 = vpop.permute.xlu1 %2116  ;;  %v2045_v56 = vpop.permute.xlu0 %2044 }
 0x236   :  { %v2607_v49 = vsel %vm2553_vm12, %v2542_v20, %v2045_v56  ;;  %v2674_v58 = vsel %vm2618_vm13, %v2609_v42, %v2117_v15  ;;  %v3292_v56 = vsel %vm3164_vm2, %v2954_v17, %v3228_v11  ;;  %vm3161_vm2 = vcmp.gt.f32.partialorder %v2943_v27, 0.0 }
 0x237   :  { %v3351_v20 = vpack.c.bf16 %v3292_v56, %v3291_v7  ;;  %v3290_v11 = vsel %vm3162_vm1, %v2946_v51, %v3226_v1 }
 0x239   :  { %v6474_v30 = vpop.permute.xlu1 %1608  ;;  %v2115_v3 = vpop.permute.xlu0 %2114  ;;  %v3430_v12 = vsel %vm2293_vm8, %v3351_v20, 0 }
 0x23a   :  { %v2672_v23 = vsel %vm2618_vm13, %v2607_v49, %v2115_v3 }
 0x23d   :  { %v6484_v53 = vpop.permute.xlu1 %1610  ;;  %v2185_v37 = vpop.permute.xlu0 %2184 }
 0x23e   :  { %v2737_v32 = vsel %vm2683_vm14, %v2672_v23, %v2185_v37 }
 0x23f   :  { %3962 = vmatprep.mubr.msk.bf16.mxu0 %vm2791_vm15, %v2737_v32  ;;  %v3225_v32 = vmul.f32 0.1, %v2943_v27 }
 0x241   :  { %v6499_v5 = vpop.permute.xlu1 %1770  ;;  %v2187_v61 = vpop.permute.xlu0 %2186  ;;  %v3289_v59 = vsel %vm3161_vm2, %v2943_v27, %v3225_v32  ;;  %v2283_v27 = vsel %vm2196_vm7, %v6037_v4, %v6474_v30 }
 0x242   :  { %v2739_v9 = vsel %vm2683_vm14, %v2674_v58, %v2187_v61  ;;  %v2938_v61 = vadd.f32 %v6494_v35, %v6193_v2  ;;  %v2994_v2 = vadd.f32 %v6494_v35, %v6503_v54  ;;  %v2930_v54 = vadd.f32 %v6494_v35, %v6206_v28 }
 0x243   :  { %3963 = vmatmul.mubr.msk.bf16.gmra.mxu0 %vm2791_vm15, %v2739_v9 }
 0x244   :  { %v3940_v60 = vpop.f32.mrf.mxu0  ;;  %v3222_v20 = vmul.f32 0.1, %v2930_v54  ;;  %vm3158_vm2 = vcmp.gt.f32.partialorder %v2930_v54, 0.0 }
 0x245   :  { %v3015_v40 = vadd.f32 %v6494_v35, %v3940_v60  ;;  %v6508_v55 = vpop.permute.xlu1 %1840  ;;  %v6510_v44 = vpop.permute.xlu0 %1768 }
 0x246   :  { %v3006_v41 = vpop.f32.mrf.mxu0 }
 0x247   :  { %v3007_v0 = vadd.f32 %v6494_v35, %v3006_v41  ;;  %v3243_v6 = vmul.f32 0.1, %v3015_v40  ;;  %vm3179_vm3 = vcmp.gt.f32.partialorder %v3015_v40, 0.0  ;;  %v3350_v41 = vpack.c.bf16 %v3290_v11, %v3289_v59 }
 0x248   :  { %v3941_v57 = vpop.f32.mrf.mxu0  ;;  %v2978_v59 = vadd.f32 %v6494_v35, %v6464_v22 }
 0x249   :  { %v3018_v43 = vadd.f32 %v6494_v35, %v3941_v57  ;;  %v6516_v46 = vpop.permute.xlu1 %1910  ;;  %v1839_v15 = vpop.permute.xlu0 %1838  ;;  %v3241_v29 = vmul.f32 0.1, %v3007_v0  ;;  %vm3177_vm6 = vcmp.gt.f32.partialorder %v3007_v0, 0.0  ;;  %v3307_v37 = vsel %vm3179_vm3, %v3015_v40, %v3243_v6 }
 0x24a   :  { %v3009_v45 = vpop.f32.mrf.mxu0  ;;  %v2935_v40 = vadd.f32 %v6494_v35, %v6151_v33  ;;  %vm3175_vm3 = vcmp.gt.f32.partialorder %v2999_v39, 0.0  ;;  %v3304_v57 = vsel %vm3176_vm5, %v3002_v8, %v3240_v47  ;;  %v2991_v33 = vadd.f32 %v6494_v35, %v6477_v14 }
 0x24b   :  { %v3244_v3 = vmul.f32 0.1, %v3018_v43  ;;  %v3010_v62 = vadd.f32 %v6494_v35, %v3009_v45  ;;  %vm3180_vm4 = vcmp.gt.f32.partialorder %v3018_v43, 0.0  ;;  %v3305_v42 = vsel %vm3177_vm6, %v3007_v0, %v3241_v29 }
 0x24c   :  { %v3224_v0 = vmul.f32 0.1, %v2938_v61  ;;  %v3223_v56 = vmul.f32 0.1, %v2935_v40  ;;  %vm3160_vm6 = vcmp.gt.f32.partialorder %v2938_v61, 0.0  ;;  %v3303_v51 = vsel %vm3175_vm3, %v2999_v39, %v3239_v21 }
 0x24d   :  { %vm3178_vm0 = vcmp.gt.f32.partialorder %v3010_v62, 0.0  ;;  %v3242_v49 = vmul.f32 0.1, %v3010_v62  ;;  %v6522_v31 = vpop.permute.xlu1 %1980  ;;  %v1909_v23 = vpop.permute.xlu0 %1908  ;;  %v3308_v10 = vsel %vm3180_vm4, %v3018_v43, %v3244_v3  ;;  %vm3159_vm4 = vcmp.gt.f32.partialorder %v2935_v40, 0.0 }
 0x24e   :  { %v3359_v50 = vpack.c.bf16 %v3308_v10, %v3307_v37  ;;  %v2286_v45 = vsel %vm2196_vm7, %v6090_v18, %v6484_v53  ;;  %v3357_v7 = vpack.c.bf16 %v3304_v57, %v3303_v51  ;;  %v2351_v29 = vsel %vm2293_vm8, %v2283_v27, %v6510_v44 }
 0x24f   :  { %v3306_v17 = vsel %vm3178_vm0, %v3010_v62, %v3242_v49  ;;  %v3427_v3 = vsel %vm2293_vm8, %v3350_v41, 0  ;;  %v3238_v62 = vmul.f32 0.1, %v2994_v2  ;;  %v2416_v14 = vsel %vm2358_vm9, %v2351_v29, %v1839_v15 }
 0x250   :  { %v3358_v58 = vpack.c.bf16 %v3306_v17, %v3305_v42  ;;  %3975 = vmatprep.subr.msk.bf16.mxu1 %vm2293_vm8, %v3359_v50  ;;  %v3288_v30 = vsel %vm3160_vm6, %v2938_v61, %v3224_v0  ;;  %vm3174_vm0 = vcmp.gt.f32.partialorder %v2994_v2, 0.0  ;;  %v2353_v18 = vsel %vm2293_vm8, %v2286_v45, %v6499_v5 }
 0x251   :  { %3861 = vmatpush3.bf16.xpose.msra.mxu1 %v3430_v12  ;;  %v2051_v9 = vpop.permute.xlu1 %2050  ;;  %v1979_v60 = vpop.permute.xlu0 %1978  ;;  %v2481_v28 = vsel %vm2423_vm10, %v2416_v14, %v1909_v23  ;;  %v2927_v53 = vadd.f32 %v6494_v35, %v6173_v25  ;;  %v3237_v44 = vmul.f32 0.1, %v2991_v33  ;;  %v3287_v15 = vsel %vm3159_vm4, %v2935_v40, %v3223_v56 }
 0x252   :  { %3976 = vmatprep.subr.msk.bf16.mxu1 %vm2293_vm8, %v3358_v58  ;;  %v2546_v8 = vsel %vm2488_vm11, %v2481_v28, %v1979_v60  ;;  %vm3173_vm1 = vcmp.gt.f32.partialorder %v2991_v33, 0.0  ;;  %v3349_v37 = vpack.c.bf16 %v3288_v30, %v3287_v15  ;;  %v2986_v5 = vadd.f32 %v6494_v35, %v6462_v13 }
 0x253   :  { %v3302_v10 = vsel %vm3174_vm0, %v2994_v2, %v3238_v62  ;;  %v2418_v23 = vsel %vm2358_vm9, %v2353_v18, %v6508_v55  ;;  %v3221_v17 = vmul.f32 0.1, %v2927_v53  ;;  %v2983_v58 = vadd.f32 %v6494_v35, %v6458_v48 }
 0x254   :  { %v2483_v39 = vsel %vm2423_vm10, %v2418_v23, %v6516_v46  ;;  %v3301_v13 = vsel %vm3173_vm1, %v2991_v33, %v3237_v44  ;;  %vm3157_vm5 = vcmp.gt.f32.partialorder %v2927_v53, 0.0  ;;  %v3424_v47 = vsel %vm2293_vm8, %v3349_v37, 0 }
 0x255   :  { %v2121_v6 = vpop.permute.xlu1 %2120  ;;  %v2049_v43 = vpop.permute.xlu0 %2048  ;;  %v2548_v12 = vsel %vm2488_vm11, %v2483_v39, %v6522_v31  ;;  %v3356_v55 = vpack.c.bf16 %v3302_v10, %v3301_v13  ;;  %v3236_v60 = vmul.f32 0.1, %v2986_v5  ;;  %v3286_v48 = vsel %vm3158_vm2, %v2930_v54, %v3222_v20 }
 0x256   :  { %v2611_v49 = vsel %vm2553_vm12, %v2546_v8, %v2049_v43  ;;  %v2613_v61 = vsel %vm2553_vm12, %v2548_v12, %v2051_v9  ;;  %vm3172_vm3 = vcmp.gt.f32.partialorder %v2986_v5, 0.0  ;;  %v3235_v21 = vmul.f32 0.1, %v2983_v58 }
 0x257   :  { %v2678_v46 = vsel %vm2618_vm13, %v2613_v61, %v2121_v6  ;;  %v3285_v9 = vsel %vm3157_vm5, %v2927_v53, %v3221_v17  ;;  %vm3171_vm4 = vcmp.gt.f32.partialorder %v2983_v58, 0.0  ;;  %v3300_v57 = vsel %vm3172_vm3, %v2986_v5, %v3236_v60  ;;  %v6831_v61 = vld [vmem:[#allocation11_spill] sm:$0xff]  ;;  %v6832_v60 = vld [vmem:[#allocation10_spill] sm:$0xff] }
 0x258   :  { %v3348_v0 = vpack.c.bf16 %v3286_v48, %v3285_v9  ;;  %v2975_v56 = vadd.f32 %v6494_v35, %v6460_v52  ;;  %v3299_v33 = vsel %vm3171_vm4, %v2983_v58, %v3235_v21  ;;  %v3234_v54 = vmul.f32 0.1, %v2978_v59 }
 0x259   :  { %3863 = vmatpush3.bf16.xpose.msra.mxu1 %v3427_v3  ;;  %v6549_v1 = vpop.permute.xlu1 %1612  ;;  %v2119_v4 = vpop.permute.xlu0 %2118  ;;  %v3355_v45 = vpack.c.bf16 %v3300_v57, %v3299_v33  ;;  %vm3170_vm6 = vcmp.gt.f32.partialorder %v2978_v59, 0.0  ;;  %v6838_v33 = vpack.c.bf16 %v6366_v36, %v6364_v24 }
 0x25a   :  { %3977 = vmatprep.subr.msk.bf16.mxu1 %vm2293_vm8, %v3357_v7  ;;  %v2676_v50 = vsel %vm2618_vm13, %v2611_v49, %v2119_v4  ;;  %v3421_v29 = vsel %vm2293_vm8, %v3348_v0, 0  ;;  %v3233_v4 = vmul.f32 0.1, %v2975_v56  ;;  %vm3169_vm2 = vcmp.gt.f32.partialorder %v2975_v56, 0.0 }
 0x25b   :  { %v3298_v53 = vsel %vm3170_vm6, %v2978_v59, %v3234_v54 }
 0x25c   :  { %v3297_v5 = vsel %vm3169_vm2, %v2975_v56, %v3233_v4 }
 0x25d   :  { %v6565_v25 = vpop.permute.xlu1 %1614  ;;  %v2189_v32 = vpop.permute.xlu0 %2188 }
 0x25e   :  { %v2741_v42 = vsel %vm2683_vm14, %v2676_v50, %v2189_v32  ;;  %v3354_v50 = vpack.c.bf16 %v3298_v53, %v3297_v5  ;;  %v6830_v32 = vpack.c.bf16 %v5876_v63, %v5874_v19  ;;  %v2292_v13 = vsel %vm2196_vm7, %v6256_v26, %v6565_v25 }
 0x25f   :  { %3966 = vmatprep.mubr.msk.bf16.mxu0 %vm2791_vm15, %v2741_v42  ;;  %v2289_v19 = vsel %vm2196_vm7, %v6831_v61, %v6549_v1 }
 0x260   :  { %v3418_v39 = vsel %vm2293_vm8, %v6830_v32, 0 }
 0x261   :  { %3865 = vmatpush3.bf16.xpose.msra.mxu1 %v3424_v47  ;;  %v6578_v11 = vpop.permute.xlu1 %1774  ;;  %v2191_v40 = vpop.permute.xlu0 %2190 }
 0x262   :  { %3978 = vmatprep.subr.msk.bf16.mxu1 %vm2293_vm8, %v3356_v55  ;;  %v2743_v31 = vsel %vm2683_vm14, %v2678_v46, %v2191_v40  ;;  %v2357_v63 = vsel %vm2293_vm8, %v2292_v13, %v6578_v11  ;;  %v6833_v46 = vld [vmem:[#allocation9_spill] sm:$0xff] }
 0x263   :  { %3967 = vmatmul.mubr.msk.bf16.gmra.mxu0 %vm2791_vm15, %v2743_v31  ;;  %v6834_v40 = vpack.c.bf16 %v6832_v60, %v6833_v46 }
 0x264   :  { %v3944_v41 = vpop.f32.mrf.mxu0 }
 0x265   :  { %v3031_v2 = vadd.f32 %v6494_v35, %v3944_v41  ;;  %v1845_v6 = vpop.permute.xlu1 %1844  ;;  %v1773_v43 = vpop.permute.xlu0 %1772  ;;  %v3415_v48 = vsel %vm2293_vm8, %v6834_v40, 0 }
 0x266   :  { %v3022_v51 = vpop.f32.mrf.mxu0  ;;  %v2355_v47 = vsel %vm2293_vm8, %v2289_v19, %v1773_v43  ;;  %v2422_v25 = vsel %vm2358_vm9, %v2357_v63, %v1845_v6  ;;  %v6836_v43 = vld [vmem:[#allocation5_spill] sm:$0xff] }
 0x267   :  { %v3023_v27 = vadd.f32 %v6494_v35, %v3022_v51  ;;  %v3247_v22 = vmul.f32 0.1, %v3031_v2  ;;  %vm3183_vm0 = vcmp.gt.f32.partialorder %v3031_v2, 0.0  ;;  %v6837_v56 = vpack.c.bf16 %v6835_v38, %v6836_v43  ;;  %v3378_v43 = vld [vmem:[%s6810_s4 + $0x10] sm:$0xff] }
 0x268   :  { %v3945_v7 = vpop.f32.mrf.mxu0  ;;  %v4080_v38 = vmov 0  }
 0x269   :  { %v3034_v3 = vadd.f32 %v6494_v35, %v3945_v7  ;;  %3867 = vmatpush3.bf16.xpose.msra.mxu1 %v3421_v29  ;;  %v1915_v62 = vpop.permute.xlu1 %1914  ;;  %v1843_v14 = vpop.permute.xlu0 %1842  ;;  %v3245_v52 = vmul.f32 0.1, %v3023_v27  ;;  %vm3181_vm5 = vcmp.gt.f32.partialorder %v3023_v27, 0.0  ;;  %v6594_v44 = vsel %vm3183_vm0, %v3031_v2, %v3247_v22  ;;  %v6839_v22 = vld [vmem:[#allocation7_spill] sm:$0xff]  ;;  %4003 = vset.pattern.permute.xlu1 %v4080_v38 }
 0x26a   :  { %v3025_v30 = vpop.f32.mrf.mxu0  ;;  %3979 = vmatprep.subr.msk.bf16.mxu1 %vm2293_vm8, %v3355_v45  ;;  %v2420_v31 = vsel %vm2358_vm9, %v2355_v47, %v1843_v14  ;;  %v2487_v1 = vsel %vm2423_vm10, %v2422_v25, %v1915_v62  ;;  %v3412_v51 = vsel %vm2293_vm8, %v6837_v56, 0  ;;  %4002 = vset.pattern.permute.xlu0 %v4080_v38 }
 0x26b   :  { %vm3184_vm1 = vcmp.gt.f32.partialorder %v3034_v3, 0.0  ;;  %v3248_v18 = vmul.f32 0.1, %v3034_v3  ;;  %v3026_v28 = vadd.f32 %v6494_v35, %v3025_v30  ;;  %v6600_v10 = vsel %vm3181_vm5, %v3023_v27, %v3245_v52 }
 0x26d   :  { %v6596_v8 = vsel %vm3184_vm1, %v3034_v3, %v3248_v18  ;;  %vm3182_vm3 = vcmp.gt.f32.partialorder %v3026_v28, 0.0  ;;  %v3246_v15 = vmul.f32 0.1, %v3026_v28  ;;  %v1985_v20 = vpop.permute.xlu1 %1984  ;;  %v1913_v49 = vpop.permute.xlu0 %1912  ;;  %v6840_v3 = vld [vmem:[#allocation8_spill] sm:$0xff] }
 0x26e   :  { %v3361_v37 = vpack.c.bf16 %v6596_v8, %v6594_v44  ;;  %v2485_v21 = vsel %vm2423_vm10, %v2420_v31, %v1913_v49  ;;  %v2552_v9 = vsel %vm2488_vm11, %v2487_v1, %v1985_v20  ;;  %v6841_v62 = vpack.c.bf16 %v6839_v22, %v6840_v3 }
 0x26f   :  { %v6602_v23 = vsel %vm3182_vm3, %v3026_v28, %v3246_v15 }
 0x270   :  { %v3360_v42 = vpack.c.bf16 %v6602_v23, %v6600_v10  ;;  %v3409_v14 = vsel %vm2293_vm8, %v6841_v62, 0 }
 0x271   :  { %3869 = vmatpush3.bf16.xpose.msra.mxu1 %v3418_v39  ;;  %v2055_v17 = vpop.permute.xlu1 %2054  ;;  %v1983_v58 = vpop.permute.xlu0 %1982  ;;  %v6675_v39 = vld [vmem:[%s6809_s3] sm:$0xff]  }
 0x272   :  { %3980 = vmatprep.subr.msk.bf16.mxu1 %vm2293_vm8, %v3354_v50  ;;  %v2550_v11 = vsel %vm2488_vm11, %v2485_v21, %v1983_v58  ;;  %v2617_v0 = vsel %vm2553_vm12, %v2552_v9, %v2055_v17  ;;  %3876 = vmatprep.mubr.msk.bf16.mxu1 %vm2293_vm8, %v6675_v39 }
 0x275   :  { %v2053_v12 = vpop.permute.xlu0 %2052  ;;  %v2125_v55 = vpop.permute.xlu1 %2124 }
 0x276   :  { %v2615_v59 = vsel %vm2553_vm12, %v2550_v11, %v2053_v12  ;;  %v2682_v6 = vsel %vm2618_vm13, %v2617_v0, %v2125_v55 }
 0x279   :  { %3871 = vmatpush3.bf16.xpose.msra.mxu1 %v3415_v48  ;;  %v2123_v26 = vpop.permute.xlu0 %2122  ;;  %v2195_v41 = vpop.permute.xlu1 %2194 }
 0x27a   :  { %3981 = vmatprep.subr.msk.bf16.mxu1 %vm2293_vm8, %v3353_v34  ;;  %v2680_v57 = vsel %vm2618_vm13, %v2615_v59, %v2123_v26  ;;  %v2747_v34 = vsel %vm2683_vm14, %v2682_v6, %v2195_v41  ;;  %v6708_v6 = vld [vmem:[%s6809_s3 + $0x8] ss:$0 sps:$4 sm:$0xff]  }
 0x27d   :  { %v2193_v2 = vpop.permute.xlu0 %2192 }
 0x27e   :  { %v2745_v16 = vsel %vm2683_vm14, %v2680_v57, %v2193_v2 }
 0x27f   :  { %3970 = vmatprep.mubr.msk.bf16.mxu0 %vm2791_vm15, %v2745_v16  ;;  %v3377_v16 = vld [vmem:[%s6810_s4 + $0x8] sm:$0xff] }
 0x280   :  { %3971 = vmatmul.mubr.msk.bf16.gmra.mxu0 %vm2791_vm15, %v2747_v34  ;;  %v3376_v34 = vld [vmem:[%s6810_s4] sm:$0xff]  ;;  %3386 = vperm.xlu1 %4003, %v3377_v16   ;;  %s4081_s4 = smov [#allocation2]  }
 0x281   :  { %3873 = vmatpush3.bf16.xpose.msra.mxu1 %v3412_v51  ;;  %3381 = vperm.xlu0 %4002, %v3376_v34   ;;  %s3624_s15 = sshll.u32 %s4081_s4, 4  ;;  %s3625_s15 = int_to_ptr.vmem [resolvable:$true] %s3624_s15 }
 0x282   :  { %3982 = vmatprep.subr.msk.bf16.mxu1 %vm2293_vm8, %v6838_v33  ;;  %s4050_s16 = scalar_lea.vmem %s3625_s15, 1536  ;;  %p4055_p1 = scmp.lt.s32.totalorder %s3625_s15, %s3625_s15 }
 0x283   :  { %p4051_p0 = scmp.ne.s32.totalorder %s3625_s15, %s4050_s16  ;;  %p4056_p2 = scmp.lt.s32.totalorder %s4050_s16, %s4050_s16 }
 0x284   :  { %v3948_v27 = vpop.f32.mrf.mxu0  ;;  %3391 = vperm.xlu1 %4003, %v3378_v43  }
 0x285   :  { %v3047_v45 = vadd.f32 %v6494_v35, %v3948_v27  ;;  %p4057_p3 = por %p4056_p2, %p4055_p1 }
 0x286   :  { %v3038_v54 = vpop.f32.mrf.mxu0 }
 0x287   :  { %v3039_v7 = vadd.f32 %v6494_v35, %v3038_v54  ;;  %v3251_v4 = vmul.f32 0.1, %v3047_v45  ;;  %vm3187_vm7 = vcmp.gt.f32.partialorder %v3047_v45, 0.0  ;;  %p4058_p4 = pnand %p4057_p3, %p4051_p0 }
 0x288   :  { %v3949_v29 = vpop.f32.mrf.mxu0 }
 0x289   :  { %v3050_v30 = vadd.f32 %v6494_v35, %v3949_v29  ;;  %3875 = vmatpush3.bf16.xpose.msra.mxu1 %v3409_v14  ;;  %v3249_v36 = vmul.f32 0.1, %v3039_v7  ;;  %vm3185_vm10 = vcmp.gt.f32.partialorder %v3039_v7, 0.0  ;;  %v6658_v28 = vsel %vm3187_vm7, %v3047_v45, %v3251_v4 }
 0x28a   :  { %v3041_v24 = vpop.f32.mrf.mxu0 }
 0x28b   :  { %vm3188_vm9 = vcmp.gt.f32.partialorder %v3050_v30, 0.0  ;;  %v3252_v52 = vmul.f32 0.1, %v3050_v30  ;;  %v3042_v18 = vadd.f32 %v6494_v35, %v3041_v24  ;;  %v6664_v49 = vsel %vm3185_vm10, %v3039_v7, %v3249_v36 }
 0x28d   :  { %v6660_v53 = vsel %vm3188_vm9, %v3050_v30, %v3252_v52  ;;  %vm3186_vm11 = vcmp.gt.f32.partialorder %v3042_v18, 0.0  ;;  %v3250_v15 = vmul.f32 0.1, %v3042_v18 }
 0x28e   :  { %v3363_v20 = vpack.c.bf16 %v6660_v53, %v6658_v28  ;;  %v3460_v28 = vsel %vm2293_vm8, %v3361_v37, 0  ;;  %v3457_v53 = vsel %vm2293_vm8, %v3360_v42, 0 }
 0x28f   :  { %v6666_v5 = vsel %vm3186_vm11, %v3042_v18, %v3250_v15 }
 0x290   :  { %v3362_v50 = vpack.c.bf16 %v6666_v5, %v6664_v49  ;;  %3877 = vmatmul.mubr.msk.bf16.vlgmr.msra.gmra.mxu1 %vm2293_vm8, %v6675_v39 }
 0x291   :  { %3878 = vmatprep.mubr.msk.bf16.mxu1 %vm2293_vm8, %v6708_v6 }
 0x298   :  { %3879 = vmatmul.mubr.msk.bf16.gmra.mxu1 %vm2293_vm8, %v6708_v6 }
 0x299   :  { %3896 = vmatprep.mubr.msk.bf16.mxu1 %vm2293_vm8, %v6675_v39 }
 0x2a4   :  { %v6670_v32 = vpop.f32.mrf.mxu0 }
 0x2a6   :  { %v6679_v17 = vpop.f32.mrf.mxu0 }
 0x2a8   :  { %v6683_v58 = vpop.f32.mrf.mxu0 }
 0x2aa   :  { %v6685_v13 = vpop.f32.mrf.mxu0 }
 0x2c4   :  { %v3956_v12 = vpop.f32.mrf.mxu0 }
 0x2c5   :  { %v3079_v22 = vadd.f32 %v6494_v35, %v3956_v12 }
 0x2c6   :  { %v6687_v55 = vpop.f32.mrf.mxu0 }
 0x2c7   :  { %v3259_v30 = vmul.f32 0.1, %v3079_v22  ;;  %vm3195_vm6 = vcmp.gt.f32.partialorder %v3079_v22, 0.0  ;;  %v3071_v12 = vadd.f32 %v6494_v35, %v6687_v55 }
 0x2c8   :  { %v3957_v61 = vpop.f32.mrf.mxu0 }
 0x2c9   :  { %v3082_v29 = vadd.f32 %v6494_v35, %v3957_v61  ;;  %v3257_v16 = vmul.f32 0.1, %v3071_v12  ;;  %vm3193_vm7 = vcmp.gt.f32.partialorder %v3071_v12, 0.0 }
 0x2ca   :  { %v3073_v19 = vpop.f32.mrf.mxu0 }
 0x2cb   :  { %v3260_v14 = vmul.f32 0.1, %v3082_v29  ;;  %vm3196_vm4 = vcmp.gt.f32.partialorder %v3082_v29, 0.0  ;;  %v3074_v52 = vadd.f32 %v6494_v35, %v3073_v19 }
 0x2cd   :  { %v3324_v15 = vsel %vm3196_vm4, %v3082_v29, %v3260_v14  ;;  %vm3194_vm3 = vcmp.gt.f32.partialorder %v3074_v52, 0.0  ;;  %v3321_v14 = vsel %vm3193_vm7, %v3071_v12, %v3257_v16 }
 0x2e3   :  { %v3960_v63 = vpop.f32.mrf.mxu0 }
 0x2e4   :  { %v3095_v47 = vadd.f32 %v6494_v35, %v3960_v63 }
 0x2e5   :  { %v3086_v60 = vpop.f32.mrf.mxu0 }
 0x2e6   :  { %v3087_v46 = vadd.f32 %v6494_v35, %v3086_v60  ;;  %v3263_v48 = vmul.f32 0.1, %v3095_v47  ;;  %vm3199_vm12 = vcmp.gt.f32.partialorder %v3095_v47, 0.0 }
 0x2e7   :  { %v3961_v40 = vpop.f32.mrf.mxu0 }
 0x2e8   :  { %v3098_v31 = vadd.f32 %v6494_v35, %v3961_v40  ;;  %v3261_v25 = vmul.f32 0.1, %v3087_v46  ;;  %vm3197_vm14 = vcmp.gt.f32.partialorder %v3087_v46, 0.0  ;;  %v6693_v11 = vsel %vm3199_vm12, %v3095_v47, %v3263_v48 }
 0x2e9   :  { %v3089_v26 = vpop.f32.mrf.mxu0  ;;  %v3323_v47 = vsel %vm3195_vm6, %v3079_v22, %v3259_v30 }
 0x2ea   :  { %vm3200_vm13 = vcmp.gt.f32.partialorder %v3098_v31, 0.0  ;;  %v3264_v21 = vmul.f32 0.1, %v3098_v31  ;;  %v3090_v1 = vadd.f32 %v6494_v35, %v3089_v26  ;;  %v6699_v0 = vsel %vm3197_vm14, %v3087_v46, %v3261_v25 }
 0x2eb   :  { %v3367_v19 = vpack.c.bf16 %v3324_v15, %v3323_v47 }
 0x2ec   :  { %v6695_v9 = vsel %vm3200_vm13, %v3098_v31, %v3264_v21  ;;  %vm3198_vm15 = vcmp.gt.f32.partialorder %v3090_v1, 0.0  ;;  %v3262_v59 = vmul.f32 0.1, %v3090_v1  ;;  %v3258_v31 = vmul.f32 0.1, %v3074_v52 }
 0x2ed   :  { %v3369_v41 = vpack.c.bf16 %v6695_v9, %v6693_v11  ;;  %v3478_v29 = vsel %vm2293_vm8, %v3367_v19, 0 }
 0x2ee   :  { %v6701_v57 = vsel %vm3198_vm15, %v3090_v1, %v3262_v59  ;;  %v3322_v22 = vsel %vm3194_vm3, %v3074_v52, %v3258_v31 }
 0x2ef   :  { %v3368_v2 = vpack.c.bf16 %v6701_v57, %v6699_v0  ;;  %v3366_v30 = vpack.c.bf16 %v3322_v22, %v3321_v14 }
 0x2fb   :  { %v3387_v37 = vpop.permute.xlu1 %3386 }
 0x2ff   :  { %v3392_v42 = vpop.permute.xlu1 %3391 }
 0x303   :  { %v6725_v56 = vpop.f32.mrf.mxu0 }
 0x305   :  { %v6727_v51 = vpop.f32.mrf.mxu0 }
 0x307   :  { %v6729_v33 = vpop.f32.mrf.mxu0 }
 0x309   :  { %v6731_v27 = vpop.f32.mrf.mxu0 }
 0x323   :  { %v3968_v45 = vpop.f32.mrf.mxu0 }
 0x324   :  { %v3127_v55 = vadd.f32 %v6494_v35, %v3968_v45  ;;  %v3063_v45 = vadd.f32 %v6494_v35, %v6670_v32  ;;  %v3058_v32 = vadd.f32 %v6494_v35, %v6685_v13  ;;  %v3111_v13 = vadd.f32 %v6494_v35, %v6725_v56 }
 0x325   :  { %v3118_v54 = vpop.f32.mrf.mxu0 }
 0x326   :  { %vm3207_vm10 = vcmp.gt.f32.partialorder %v3127_v55, 0.0  ;;  %v3255_v15 = vmul.f32 0.1, %v3063_v45  ;;  %v3119_v52 = vadd.f32 %v6494_v35, %v3118_v54  ;;  %vm3191_vm12 = vcmp.gt.f32.partialorder %v3063_v45, 0.0 }
 0x327   :  { %v3969_v7 = vpop.f32.mrf.mxu0  ;;  %vm3190_vm15 = vcmp.gt.f32.partialorder %v3058_v32, 0.0  ;;  %v3267_v16 = vmul.f32 0.1, %v3111_v13 }
 0x328   :  { %v3130_v26 = vadd.f32 %v6494_v35, %v3969_v7  ;;  %v3066_v7 = vadd.f32 %v6494_v35, %v6683_v58  ;;  %vm3205_vm14 = vcmp.gt.f32.partialorder %v3119_v52, 0.0 }
 0x329   :  { %v3121_v3 = vpop.f32.mrf.mxu0 }
 0x32a   :  { %vm3208_vm9 = vcmp.gt.f32.partialorder %v3130_v26, 0.0  ;;  %vm3192_vm11 = vcmp.gt.f32.partialorder %v3066_v7, 0.0 }
 0x340   :  { %v3972_v62 = vpop.f32.mrf.mxu0 }
 0x341   :  { %v3143_v4 = vadd.f32 %v6494_v35, %v3972_v62  ;;  %v3272_v62 = vmul.f32 0.1, %v3130_v26 }
 0x342   :  { %v3134_v24 = vpop.f32.mrf.mxu0 }
 0x343   :  { %v3135_v36 = vadd.f32 %v6494_v35, %v3134_v24  ;;  %v3275_v63 = vmul.f32 0.1, %v3143_v4  ;;  %vm3211_vm0 = vcmp.gt.f32.partialorder %v3143_v4, 0.0  ;;  %v3256_v24 = vmul.f32 0.1, %v3066_v7 }
 0x344   :  { %v3973_v18 = vpop.f32.mrf.mxu0 }
 0x345   :  { %v3146_v61 = vadd.f32 %v6494_v35, %v3973_v18  ;;  %v3273_v46 = vmul.f32 0.1, %v3135_v36  ;;  %vm3209_vm2 = vcmp.gt.f32.partialorder %v3135_v36, 0.0  ;;  %v3339_v25 = vsel %vm3211_vm0, %v3143_v4, %v3275_v63 }
 0x346   :  { %v3137_v60 = vpop.f32.mrf.mxu0  ;;  %v3271_v4 = vmul.f32 0.1, %v3127_v55  ;;  %v3122_v18 = vadd.f32 %v6494_v35, %v3121_v3  ;;  %v3320_v47 = vsel %vm3192_vm11, %v3066_v7, %v3256_v24  ;;  %v3055_v3 = vadd.f32 %v6494_v35, %v6679_v17 }
 0x347   :  { %vm3212_vm1 = vcmp.gt.f32.partialorder %v3146_v61, 0.0  ;;  %v3276_v40 = vmul.f32 0.1, %v3146_v61  ;;  %v3138_v48 = vadd.f32 %v6494_v35, %v3137_v60  ;;  %v3337_v34 = vsel %vm3209_vm2, %v3135_v36, %v3273_v46 }
 0x348   :  { %v3336_v36 = vsel %vm3208_vm9, %v3130_v26, %v3272_v62  ;;  %v3335_v58 = vsel %vm3207_vm10, %v3127_v55, %v3271_v4  ;;  %v3270_v12 = vmul.f32 0.1, %v3122_v18  ;;  %vm3206_vm13 = vcmp.gt.f32.partialorder %v3122_v18, 0.0 }
 0x349   :  { %v3340_v21 = vsel %vm3212_vm1, %v3146_v61, %v3276_v40  ;;  %vm3210_vm5 = vcmp.gt.f32.partialorder %v3138_v48, 0.0  ;;  %v3274_v1 = vmul.f32 0.1, %v3138_v48  ;;  %v3373_v63 = vpack.c.bf16 %v3336_v36, %v3335_v58 }
 0x34a   :  { %v3375_v59 = vpack.c.bf16 %v3340_v21, %v3339_v25  ;;  %v3475_v61 = vsel %vm2293_vm8, %v3366_v30, 0  ;;  %v3319_v60 = vsel %vm3191_vm12, %v3063_v45, %v3255_v15  ;;  %v3269_v46 = vmul.f32 0.1, %v3119_v52 }
 0x34b   :  { %v3338_v38 = vsel %vm3210_vm5, %v3138_v48, %v3274_v1  ;;  %v3365_v54 = vpack.c.bf16 %v3320_v47, %v3319_v60  ;;  %v3254_v40 = vmul.f32 0.1, %v3058_v32  ;;  %v3114_v48 = vadd.f32 %v6494_v35, %v6729_v33 }
 0x34c   :  { %v3374_v43 = vpack.c.bf16 %v3338_v38, %v3337_v34  ;;  %3983 = vmatprep.subr.msk.bf16.mxu1 %vm2293_vm8, %v3375_v59  ;;  %v3334_v31 = vsel %vm3206_vm13, %v3122_v18, %v3270_v12  ;;  %v3253_v26 = vmul.f32 0.1, %v3055_v3  ;;  %v3333_v19 = vsel %vm3205_vm14, %v3119_v52, %v3269_v46 }
 0x34d   :  { %3881 = vmatpush3.bf16.xpose.msra.mxu1 %v3478_v29  ;;  %vm3189_vm4 = vcmp.gt.f32.partialorder %v3055_v3, 0.0  ;;  %v3372_v25 = vpack.c.bf16 %v3334_v31, %v3333_v19  ;;  %v3472_v21 = vsel %vm2293_vm8, %v3365_v54, 0  ;;  %v3318_v1 = vsel %vm3190_vm15, %v3058_v32, %v3254_v40 }
 0x34e   :  { %3984 = vmatprep.subr.msk.bf16.mxu1 %vm2293_vm8, %v3374_v43  ;;  %v3268_v17 = vmul.f32 0.1, %v3114_v48  ;;  %vm3204_vm6 = vcmp.gt.f32.partialorder %v3114_v48, 0.0  ;;  %v3317_v59 = vsel %vm3189_vm4, %v3055_v3, %v3253_v26  ;;  %vm3203_vm0 = vcmp.gt.f32.partialorder %v3111_v13, 0.0 }
 0x34f   :  { %v3364_v33 = vpack.c.bf16 %v3318_v1, %v3317_v59  ;;  %v3106_v34 = vadd.f32 %v6494_v35, %v6731_v27  ;;  %v3331_v56 = vsel %vm3203_vm0, %v3111_v13, %v3267_v16  ;;  %v3103_v38 = vadd.f32 %v6494_v35, %v6727_v51 }
 0x350   :  { %v3332_v55 = vsel %vm3204_vm6, %v3114_v48, %v3268_v17  ;;  %v3466_v27 = vsel %vm2293_vm8, %v3363_v20, 0  ;;  %v3463_v35 = vsel %vm2293_vm8, %v3362_v50, 0  ;;  %v3382_v20 = vpop.permute.xlu0 %3381  ;;  %v3538_v49 = vpop.f32.mrf.mxu1 }
 0x351   :  { %v3371_v43 = vpack.c.bf16 %v3332_v55, %v3331_v56  ;;  %v3469_v29 = vsel %vm2293_vm8, %v3364_v33, 0  ;;  %v3266_v7 = vmul.f32 0.1, %v3106_v34  ;;  %vm3202_vm1 = vcmp.gt.f32.partialorder %v3106_v34, 0.0 }
 0x352   :  { %v3265_v22 = vmul.f32 0.1, %v3103_v38  ;;  %vm3201_vm2 = vcmp.gt.f32.partialorder %v3103_v38, 0.0  ;;  %v3539_v44 = vadd.f32 %v3538_v49, %v3382_v20  ;;  %v3540_v8 = vpop.f32.mrf.mxu1 }
 0x353   :  { %v3330_v62 = vsel %vm3202_vm1, %v3106_v34, %v3266_v7  ;;  %v3541_v5 = vadd.f32 %v3540_v8, %v3382_v20 }
 0x354   :  { %v3329_v45 = vsel %vm3201_vm2, %v3103_v38, %v3265_v22  ;;  %3606 = vst [vmem:[#allocation2] sm:$0xff] %v3539_v44  ;;  %v3542_v50 = vpop.f32.mrf.mxu1 }
 0x355   :  { %3883 = vmatpush3.bf16.xpose.msra.mxu1 %v3475_v61  ;;  %v3370_v14 = vpack.c.bf16 %v3330_v62, %v3329_v45  ;;  %v3543_v11 = vadd.f32 %v3542_v50, %v3387_v37  ;;  %3607 = vst [vmem:[#allocation2 + $0x8] sm:$0xff] %v3541_v5 }
 0x356   :  { %3985 = vmatprep.subr.msk.bf16.mxu1 %vm2293_vm8, %v3373_v63  ;;  %v3544_v10 = vpop.f32.mrf.mxu1 }
 0x357   :  { %3608 = vst [vmem:[#allocation2 + $0x10] sm:$0xff] %v3543_v11  ;;  %v3545_v23 = vadd.f32 %v3544_v10, %v3387_v37 }
 0x359   :  { %3609 = vst [vmem:[#allocation2 + $0x18] sm:$0xff] %v3545_v23 }
 0x35d   :  { %3885 = vmatpush3.bf16.xpose.msra.mxu1 %v3472_v21 }
 0x35e   :  { %3986 = vmatprep.subr.msk.bf16.mxu1 %vm2293_vm8, %v3372_v25 }
 0x365   :  { %3887 = vmatpush3.bf16.xpose.msra.mxu1 %v3469_v29 }
 0x366   :  { %3987 = vmatprep.subr.msk.bf16.mxu1 %vm2293_vm8, %v3371_v43 }
 0x36d   :  { %3889 = vmatpush3.bf16.xpose.msra.mxu1 %v3466_v27 }
 0x36e   :  { %3988 = vmatprep.subr.msk.bf16.mxu1 %vm2293_vm8, %v3370_v14 }
 0x375   :  { %3891 = vmatpush3.bf16.xpose.msra.mxu1 %v3463_v35 }
 0x376   :  { %3989 = vmatprep.subr.msk.bf16.mxu1 %vm2293_vm8, %v3369_v41 }
 0x37d   :  { %3893 = vmatpush3.bf16.xpose.msra.mxu1 %v3460_v28 }
 0x37e   :  { %3990 = vmatprep.subr.msk.bf16.mxu1 %vm2293_vm8, %v3368_v2 }
 0x385   :  { %3895 = vmatpush3.bf16.xpose.msra.mxu1 %v3457_v53 }
 0x38c   :  { %3897 = vmatmul.mubr.msk.bf16.vlgmr.msra.gmra.mxu1 %vm2293_vm8, %v6675_v39  ;;  %v3548_v39 = vpop.f32.mrf.mxu1 }
 0x38d   :  { %3898 = vmatprep.mubr.msk.bf16.mxu1 %vm2293_vm8, %v6708_v6  ;;  %v3549_v9 = vadd.f32 %v3548_v39, %v3392_v42 }
 0x38e   :  { %v3550_v41 = vpop.f32.mrf.mxu1 }
 0x38f   :  { %v3551_v0 = vadd.f32 %v3550_v41, %v3392_v42  ;;  %3610 = vst [vmem:[#allocation2 + $0x20] sm:$0xff] %v3549_v9 }
 0x390   :  { %v3552_v57 = vpop.f32.mrf.mxu1 }
 0x391   :  { %3611 = vst [vmem:[#allocation2 + $0x28] sm:$0xff] %v3551_v0 }
 0x392   :  { %v3553_v2 = vpop.f32.mrf.mxu1 }
 0x394   :  { %3899 = vmatmul.mubr.msk.bf16.gmra.mxu1 %vm2293_vm8, %v6708_v6 }
 0x44c   :  { %v3589_v51 = vpop.f32.mrf.mxu1 }
 0x44d   :  { %v3590_v4 = vadd.f32 %v3589_v51, %v3382_v20 }
 0x44e   :  { %v3591_v30 = vpop.f32.mrf.mxu1 }
 0x44f   :  { %3613 = vst [vmem:[#allocation2 + $0x30] sm:$0xff] %v3590_v4  ;;  %v3592_v24 = vadd.f32 %v3591_v30, %v3382_v20 }
 0x450   :  { %v3593_v36 = vpop.f32.mrf.mxu1 }
 0x451   :  { %3614 = vst [vmem:[#allocation2 + $0x38] sm:$0xff] %v3592_v24  ;;  %v3594_v18 = vadd.f32 %v3593_v36, %v3387_v37 }
 0x452   :  { %v3595_v15 = vpop.f32.mrf.mxu1 }
 0x453   :  { %3615 = vst [vmem:[#allocation2 + $0x40] sm:$0xff] %v3594_v18  ;;  %v3596_v6 = vadd.f32 %v3595_v15, %v3387_v37 }
 0x454   :  { %v3599_v58 = vpop.f32.mrf.mxu1 }
 0x455   :  { %3616 = vst [vmem:[#allocation2 + $0x48] sm:$0xff] %v3596_v6  ;;  %v3600_v52 = vadd.f32 %v3599_v58, %v3392_v42 }
 0x456   :  { %v3601_v63 = vpop.f32.mrf.mxu1 }
 0x457   :  { %3617 = vst [vmem:[#allocation2 + $0x50] sm:$0xff] %v3600_v52  ;;  %v3602_v61 = vadd.f32 %v3601_v63, %v3392_v42 }
 0x458   :  { %v3603_v47 = vpop.f32.mrf.mxu1 }
 0x459   :  { %3618 = vst [vmem:[#allocation2 + $0x58] sm:$0xff] %v3602_v61 }
 0x45a   :  { %v3604_v32 = vpop.f32.mrf.mxu1 }
 0x45b   :  { %4061 = shalt.err (!%p4058_p4)
}
 0x45c   :  { %s4082_s1 = smov 256  }
 0x45d   :  { %3630 = dma.vmem_to_hbm [thread:$0]  %s3625_s15, 1536, %s6811_s5, [#allocation3], %s4082_s1, %s4082_s1, %s4073_s12  }
 0x45e   :  { %4070 = dma.done.wait [#allocation3], 1536  }
 0x45f   :  { %4071 = vsyncadd [#allocation3], 4294965760 }
 0x460   :  { %3634 = vsyncpa [#allocation3], 1 }

</bundles_post_ra>
